<compile_context>
chip_gen: v7x
topology: tpu7x:2x2x1
jax: 0.10.0
libtpu: 0.0.40
codegen_flags: <defaults>
</compile_context>

<pallas_src>
import jax
import jax.numpy as jnp
from jax.experimental import pallas as pl
from jax.experimental.pallas import tpu as pltpu

# ---- model / problem sizes (small, consistent with an image classifier) ----
N, CIN, H, W = 2, 4, 16, 16
COUT = 8
NUM_CLASSES = 10
KH, KW = 3, 3


def _engine_forward_kernel(xpad_ref, wconv_ref, bconv_ref, wfc_ref, bfc_ref,
                           out_ref):
    """conv3x3 (fused im2col, 9 accumulated matmuls) + bias + ReLU
    -> global average pool (in-kernel reduction) -> linear classifier."""
    wc = wconv_ref[...]                               # (KH*KW, CIN, COUT)

    # conv as accumulation of per-tap matmuls; all slicing happens in VMEM.
    acc = jnp.zeros((N * H * W, COUT), jnp.float32)
    for kh in range(KH):
        # leading-dim slice of the ref: loads only the (N, H, W+2, CIN) slab.
        xs = xpad_ref[:, kh:kh + H, :, :]
        for kw in range(KW):
            tap = xs[:, :, kw:kw + W, :].reshape(N * H * W, CIN)  # (512, 4)
            acc = acc + jnp.dot(tap, wc[kh * KW + kw],
                                preferred_element_type=jnp.float32)

    # bias + ReLU (VPU)
    y = jnp.maximum(acc + bconv_ref[...], 0.0)        # (N*H*W, COUT)

    # global average pool: sublane-axis reduction, no pooling matrix.
    pooled = jnp.sum(y.reshape(N, H * W, COUT), axis=1) * (1.0 / (H * W))

    # classifier head
    logits = jnp.dot(pooled, wfc_ref[...],
                     preferred_element_type=jnp.float32) + bfc_ref[...]
    out_ref[...] = logits                             # (N, NUM_CLASSES)


_VMEM_SPEC = pl.BlockSpec(memory_space=pltpu.MemorySpace.VMEM)


@jax.jit
def engine_forward(x_nchw, w_conv, b_conv, w_fc, b_fc):
    """Pallas implementation of TorchEngine.forward for the synthetic model.

    x_nchw: (N, CIN, H, W) float32, PyTorch NCHW layout.
    returns logits (N, NUM_CLASSES) float32.
    """
    # plain-JAX glue (folded into this jitted program): layout + SAME padding.
    x_nhwc = jnp.transpose(x_nchw, (0, 2, 3, 1))                 # NCHW -> NHWC
    x_pad = jnp.pad(x_nhwc, ((0, 0), (1, 1), (1, 1), (0, 0)))    # (N,H+2,W+2,CIN)

    w_taps = w_conv.reshape(KH * KW, CIN, COUT)      # HWIO taps, (9, CIN, COUT)
    b_conv2d = b_conv.reshape(1, COUT)
    b_fc2d = b_fc.reshape(1, NUM_CLASSES)

    return pl.pallas_call(
        _engine_forward_kernel,
        out_shape=jax.ShapeDtypeStruct((N, NUM_CLASSES), jnp.float32),
        in_specs=[_VMEM_SPEC] * 5,
        out_specs=_VMEM_SPEC,
    )(x_pad, w_taps, b_conv2d, w_fc, b_fc2d)


def reference_forward(x_nchw, w_conv, b_conv, w_fc, b_fc):
    """Pure-JAX reference matching the PyTorch model semantics."""
    x_nhwc = jnp.transpose(x_nchw, (0, 2, 3, 1))
    y = jax.lax.conv_general_dilated(
        x_nhwc, w_conv, window_strides=(1, 1), padding="SAME",
        dimension_numbers=("NHWC", "HWIO", "NHWC"))
    y = jax.nn.relu(y + b_conv[None, None, None, :])
    pooled = y.mean(axis=(1, 2))
    return pooled @ w_fc + b_fc[None, :]


if __name__ == "__main__":
    key = jax.random.PRNGKey(0)
    kx, kw1, kb1, kw2, kb2 = jax.random.split(key, 5)

    # deterministic synthetic parameters (shapes implied by the model choice)
    w_conv = 0.1 * jax.random.normal(kw1, (KH, KW, CIN, COUT), jnp.float32)
    b_conv = 0.1 * jax.random.normal(kb1, (COUT,), jnp.float32)
    w_fc = 0.1 * jax.random.normal(kw2, (COUT, NUM_CLASSES), jnp.float32)
    b_fc = 0.1 * jax.random.normal(kb2, (NUM_CLASSES,), jnp.float32)

    # deterministic example input, PyTorch NCHW layout
    x = jax.random.normal(kx, (N, CIN, H, W), jnp.float32)

    logits = engine_forward(x, w_conv, b_conv, w_fc, b_fc)
    logits = jax.block_until_ready(logits)

    ref = reference_forward(x, w_conv, b_conv, w_fc, b_fc)
    assert logits.shape == (N, NUM_CLASSES)
    assert jnp.allclose(logits, ref, rtol=1e-4, atol=1e-4), (
        f"mismatch: max abs err = {jnp.max(jnp.abs(logits - ref))}")

    print("KERNEL_OK")
</pallas_src>

<mosaic_0001>
module attributes {stable_mosaic.version = 11 : i64} {
  func.func @_engine_forward_kernel(%arg0: memref<2x18x18x4xf32, #tpu.memory_space<vmem>>, %arg1: memref<9x4x8xf32, #tpu.memory_space<vmem>>, %arg2: memref<1x8xf32, #tpu.memory_space<vmem>>, %arg3: memref<8x10xf32, #tpu.memory_space<vmem>>, %arg4: memref<1x10xf32, #tpu.memory_space<vmem>>, %arg5: memref<2x10xf32, #tpu.memory_space<vmem>>) attributes {dimension_semantics = [], scalar_prefetch = 0 : i64, scratch_operands = 0 : i64, tpu.core_type = #tpu.core_type<tc>} {
    %c0 = arith.constant 0 : index
    %c0_0 = arith.constant 0 : index
    %c0_1 = arith.constant 0 : index
    %0 = vector.load %arg1[%c0, %c0_0, %c0_1] : memref<9x4x8xf32, #tpu.memory_space<vmem>>, vector<9x4x8xf32>
    %cst = arith.constant 0.000000e+00 : f32
    %1 = vector.broadcast %cst : f32 to vector<512x8xf32>
    %c0_2 = arith.constant 0 : index
    %c0_3 = arith.constant 0 : index
    %c0_4 = arith.constant 0 : index
    %c0_5 = arith.constant 0 : index
    %2 = vector.load %arg0[%c0_2, %c0_3, %c0_4, %c0_5] : memref<2x18x18x4xf32, #tpu.memory_space<vmem>>, vector<2x16x18x4xf32>
    %3 = vector.extract_strided_slice %2 {offsets = [0, 0, 0, 0], sizes = [2, 16, 16, 4], strides = [1, 1, 1, 1]} : vector<2x16x18x4xf32> to vector<2x16x16x4xf32>
    %4 = vector.shape_cast %3 : vector<2x16x16x4xf32> to vector<512x4xf32>
    %5 = vector.extract_strided_slice %0 {offsets = [0, 0, 0], sizes = [1, 4, 8], strides = [1, 1, 1]} : vector<9x4x8xf32> to vector<1x4x8xf32>
    %6 = vector.shape_cast %5 : vector<1x4x8xf32> to vector<4x8xf32>
    %cst_6 = arith.constant dense<0.000000e+00> : vector<512x8xf32>
    %7 = tpu.matmul %4, %6, %cst_6 {dimension_numbers = #tpu.dot_dimension_numbers<[1], [0], [0], [1], [0, 0, 1, 1], [], []>} : vector<512x4xf32>, vector<4x8xf32>, vector<512x8xf32> -> vector<512x8xf32>
    %8 = arith.addf %1, %7 : vector<512x8xf32>
    %9 = vector.extract_strided_slice %2 {offsets = [0, 0, 1, 0], sizes = [2, 16, 16, 4], strides = [1, 1, 1, 1]} : vector<2x16x18x4xf32> to vector<2x16x16x4xf32>
    %10 = vector.shape_cast %9 : vector<2x16x16x4xf32> to vector<512x4xf32>
    %11 = vector.extract_strided_slice %0 {offsets = [1, 0, 0], sizes = [1, 4, 8], strides = [1, 1, 1]} : vector<9x4x8xf32> to vector<1x4x8xf32>
    %12 = vector.shape_cast %11 : vector<1x4x8xf32> to vector<4x8xf32>
    %cst_7 = arith.constant dense<0.000000e+00> : vector<512x8xf32>
    %13 = tpu.matmul %10, %12, %cst_7 {dimension_numbers = #tpu.dot_dimension_numbers<[1], [0], [0], [1], [0, 0, 1, 1], [], []>} : vector<512x4xf32>, vector<4x8xf32>, vector<512x8xf32> -> vector<512x8xf32>
    %14 = arith.addf %8, %13 : vector<512x8xf32>
    %15 = vector.extract_strided_slice %2 {offsets = [0, 0, 2, 0], sizes = [2, 16, 16, 4], strides = [1, 1, 1, 1]} : vector<2x16x18x4xf32> to vector<2x16x16x4xf32>
    %16 = vector.shape_cast %15 : vector<2x16x16x4xf32> to vector<512x4xf32>
    %17 = vector.extract_strided_slice %0 {offsets = [2, 0, 0], sizes = [1, 4, 8], strides = [1, 1, 1]} : vector<9x4x8xf32> to vector<1x4x8xf32>
    %18 = vector.shape_cast %17 : vector<1x4x8xf32> to vector<4x8xf32>
    %cst_8 = arith.constant dense<0.000000e+00> : vector<512x8xf32>
    %19 = tpu.matmul %16, %18, %cst_8 {dimension_numbers = #tpu.dot_dimension_numbers<[1], [0], [0], [1], [0, 0, 1, 1], [], []>} : vector<512x4xf32>, vector<4x8xf32>, vector<512x8xf32> -> vector<512x8xf32>
    %20 = arith.addf %14, %19 : vector<512x8xf32>
    %c0_9 = arith.constant 0 : index
    %c1 = arith.constant 1 : index
    %c0_10 = arith.constant 0 : index
    %c0_11 = arith.constant 0 : index
    %21 = vector.load %arg0[%c0_9, %c1, %c0_10, %c0_11] : memref<2x18x18x4xf32, #tpu.memory_space<vmem>>, vector<2x16x18x4xf32>
    %22 = vector.extract_strided_slice %21 {offsets = [0, 0, 0, 0], sizes = [2, 16, 16, 4], strides = [1, 1, 1, 1]} : vector<2x16x18x4xf32> to vector<2x16x16x4xf32>
    %23 = vector.shape_cast %22 : vector<2x16x16x4xf32> to vector<512x4xf32>
    %24 = vector.extract_strided_slice %0 {offsets = [3, 0, 0], sizes = [1, 4, 8], strides = [1, 1, 1]} : vector<9x4x8xf32> to vector<1x4x8xf32>
    %25 = vector.shape_cast %24 : vector<1x4x8xf32> to vector<4x8xf32>
    %cst_12 = arith.constant dense<0.000000e+00> : vector<512x8xf32>
    %26 = tpu.matmul %23, %25, %cst_12 {dimension_numbers = #tpu.dot_dimension_numbers<[1], [0], [0], [1], [0, 0, 1, 1], [], []>} : vector<512x4xf32>, vector<4x8xf32>, vector<512x8xf32> -> vector<512x8xf32>
    %27 = arith.addf %20, %26 : vector<512x8xf32>
    %28 = vector.extract_strided_slice %21 {offsets = [0, 0, 1, 0], sizes = [2, 16, 16, 4], strides = [1, 1, 1, 1]} : vector<2x16x18x4xf32> to vector<2x16x16x4xf32>
    %29 = vector.shape_cast %28 : vector<2x16x16x4xf32> to vector<512x4xf32>
    %30 = vector.extract_strided_slice %0 {offsets = [4, 0, 0], sizes = [1, 4, 8], strides = [1, 1, 1]} : vector<9x4x8xf32> to vector<1x4x8xf32>
    %31 = vector.shape_cast %30 : vector<1x4x8xf32> to vector<4x8xf32>
    %cst_13 = arith.constant dense<0.000000e+00> : vector<512x8xf32>
    %32 = tpu.matmul %29, %31, %cst_13 {dimension_numbers = #tpu.dot_dimension_numbers<[1], [0], [0], [1], [0, 0, 1, 1], [], []>} : vector<512x4xf32>, vector<4x8xf32>, vector<512x8xf32> -> vector<512x8xf32>
    %33 = arith.addf %27, %32 : vector<512x8xf32>
    %34 = vector.extract_strided_slice %21 {offsets = [0, 0, 2, 0], sizes = [2, 16, 16, 4], strides = [1, 1, 1, 1]} : vector<2x16x18x4xf32> to vector<2x16x16x4xf32>
    %35 = vector.shape_cast %34 : vector<2x16x16x4xf32> to vector<512x4xf32>
    %36 = vector.extract_strided_slice %0 {offsets = [5, 0, 0], sizes = [1, 4, 8], strides = [1, 1, 1]} : vector<9x4x8xf32> to vector<1x4x8xf32>
    %37 = vector.shape_cast %36 : vector<1x4x8xf32> to vector<4x8xf32>
    %cst_14 = arith.constant dense<0.000000e+00> : vector<512x8xf32>
    %38 = tpu.matmul %35, %37, %cst_14 {dimension_numbers = #tpu.dot_dimension_numbers<[1], [0], [0], [1], [0, 0, 1, 1], [], []>} : vector<512x4xf32>, vector<4x8xf32>, vector<512x8xf32> -> vector<512x8xf32>
    %39 = arith.addf %33, %38 : vector<512x8xf32>
    %c0_15 = arith.constant 0 : index
    %c2 = arith.constant 2 : index
    %c0_16 = arith.constant 0 : index
    %c0_17 = arith.constant 0 : index
    %40 = vector.load %arg0[%c0_15, %c2, %c0_16, %c0_17] : memref<2x18x18x4xf32, #tpu.memory_space<vmem>>, vector<2x16x18x4xf32>
    %41 = vector.extract_strided_slice %40 {offsets = [0, 0, 0, 0], sizes = [2, 16, 16, 4], strides = [1, 1, 1, 1]} : vector<2x16x18x4xf32> to vector<2x16x16x4xf32>
    %42 = vector.shape_cast %41 : vector<2x16x16x4xf32> to vector<512x4xf32>
    %43 = vector.extract_strided_slice %0 {offsets = [6, 0, 0], sizes = [1, 4, 8], strides = [1, 1, 1]} : vector<9x4x8xf32> to vector<1x4x8xf32>
    %44 = vector.shape_cast %43 : vector<1x4x8xf32> to vector<4x8xf32>
    %cst_18 = arith.constant dense<0.000000e+00> : vector<512x8xf32>
    %45 = tpu.matmul %42, %44, %cst_18 {dimension_numbers = #tpu.dot_dimension_numbers<[1], [0], [0], [1], [0, 0, 1, 1], [], []>} : vector<512x4xf32>, vector<4x8xf32>, vector<512x8xf32> -> vector<512x8xf32>
    %46 = arith.addf %39, %45 : vector<512x8xf32>
    %47 = vector.extract_strided_slice %40 {offsets = [0, 0, 1, 0], sizes = [2, 16, 16, 4], strides = [1, 1, 1, 1]} : vector<2x16x18x4xf32> to vector<2x16x16x4xf32>
    %48 = vector.shape_cast %47 : vector<2x16x16x4xf32> to vector<512x4xf32>
    %49 = vector.extract_strided_slice %0 {offsets = [7, 0, 0], sizes = [1, 4, 8], strides = [1, 1, 1]} : vector<9x4x8xf32> to vector<1x4x8xf32>
    %50 = vector.shape_cast %49 : vector<1x4x8xf32> to vector<4x8xf32>
    %cst_19 = arith.constant dense<0.000000e+00> : vector<512x8xf32>
    %51 = tpu.matmul %48, %50, %cst_19 {dimension_numbers = #tpu.dot_dimension_numbers<[1], [0], [0], [1], [0, 0, 1, 1], [], []>} : vector<512x4xf32>, vector<4x8xf32>, vector<512x8xf32> -> vector<512x8xf32>
    %52 = arith.addf %46, %51 : vector<512x8xf32>
    %53 = vector.extract_strided_slice %40 {offsets = [0, 0, 2, 0], sizes = [2, 16, 16, 4], strides = [1, 1, 1, 1]} : vector<2x16x18x4xf32> to vector<2x16x16x4xf32>
    %54 = vector.shape_cast %53 : vector<2x16x16x4xf32> to vector<512x4xf32>
    %55 = vector.extract_strided_slice %0 {offsets = [8, 0, 0], sizes = [1, 4, 8], strides = [1, 1, 1]} : vector<9x4x8xf32> to vector<1x4x8xf32>
    %56 = vector.shape_cast %55 : vector<1x4x8xf32> to vector<4x8xf32>
    %cst_20 = arith.constant dense<0.000000e+00> : vector<512x8xf32>
    %57 = tpu.matmul %54, %56, %cst_20 {dimension_numbers = #tpu.dot_dimension_numbers<[1], [0], [0], [1], [0, 0, 1, 1], [], []>} : vector<512x4xf32>, vector<4x8xf32>, vector<512x8xf32> -> vector<512x8xf32>
    %58 = arith.addf %52, %57 : vector<512x8xf32>
    %c0_21 = arith.constant 0 : index
    %c0_22 = arith.constant 0 : index
    %59 = vector.load %arg2[%c0_21, %c0_22] : memref<1x8xf32, #tpu.memory_space<vmem>>, vector<1x8xf32>
    %60 = vector.broadcast %59 : vector<1x8xf32> to vector<512x8xf32>
    %61 = arith.addf %58, %60 : vector<512x8xf32>
    %cst_23 = arith.constant 0.000000e+00 : f32
    %62 = vector.broadcast %cst_23 : f32 to vector<512x8xf32>
    %63 = arith.maximumf %61, %62 : vector<512x8xf32>
    %64 = vector.shape_cast %63 : vector<512x8xf32> to vector<2x256x8xf32>
    %cst_24 = arith.constant dense<0.000000e+00> : vector<2x8xf32>
    %65 = vector.multi_reduction <add>, %64, %cst_24 [1] : vector<2x256x8xf32> to vector<2x8xf32>
    %cst_25 = arith.constant 3.906250e-03 : f32
    %66 = vector.broadcast %cst_25 : f32 to vector<2x8xf32>
    %67 = arith.mulf %65, %66 : vector<2x8xf32>
    %c0_26 = arith.constant 0 : index
    %c0_27 = arith.constant 0 : index
    %68 = vector.load %arg3[%c0_26, %c0_27] : memref<8x10xf32, #tpu.memory_space<vmem>>, vector<8x10xf32>
    %cst_28 = arith.constant dense<0.000000e+00> : vector<2x10xf32>
    %69 = tpu.matmul %67, %68, %cst_28 {dimension_numbers = #tpu.dot_dimension_numbers<[1], [0], [0], [1], [0, 0, 1, 1], [], []>} : vector<2x8xf32>, vector<8x10xf32>, vector<2x10xf32> -> vector<2x10xf32>
    %c0_29 = arith.constant 0 : index
    %c0_30 = arith.constant 0 : index
    %70 = vector.load %arg4[%c0_29, %c0_30] : memref<1x10xf32, #tpu.memory_space<vmem>>, vector<1x10xf32>
    %71 = vector.broadcast %70 : vector<1x10xf32> to vector<2x10xf32>
    %72 = arith.addf %69, %71 : vector<2x10xf32>
    %c0_31 = arith.constant 0 : index
    %c0_32 = arith.constant 0 : index
    %73 = vector.load %arg5[%c0_31, %c0_32] : memref<2x10xf32, #tpu.memory_space<vmem>>, vector<2x10xf32>
    tpu.vector_store %arg5[%c0_31, %c0_32], %72 {strides = array<i32>} : memref<2x10xf32, #tpu.memory_space<vmem>>, vector<2x10xf32>,
    return
  }
}

</mosaic_0001>

<bundles_post_ra>
// kernel: engine_forward.1
= control target key start
LH: loop header
LB: loop body
LE: loop exit
PB: predicated region body
PF: predicated region fallthrough
CT: control target
= control target key end

     0   :  { %vm512_vm0 = vcmask 1043456   ;;  %vm222_vm1 = vcmask 1046528   ;;  %vm383_vm2 = vcmask 31744   ;;  %s13667_s0 = inlined_call_operand.vmem [shape: f32[2,18,18,4], index: 0, kind: input, shape index: {}]   ;;  %s13668_s1 = inlined_call_operand.vmem [shape: f32[9,4,8], index: 1, kind: input, shape index: {}]   ;;  %s13669_s2 = inlined_call_operand.vmem [shape: f32[1,8], index: 2, kind: input, shape index: {}]   ;;  %s13670_s3 = inlined_call_operand.vmem [shape: f32[8,10], index: 3, kind: input, shape index: {}]   ;;  %s13671_s4 = inlined_call_operand.vmem [shape: f32[1,10], index: 4, kind: input, shape index: {}]   ;;  %s13672_s5 = inlined_call_operand.hbm [shape: f32[2,10], index: 5, kind: output, shape index: {}]  }
   0x1   :  { %v25_v0 = vld [vmem:[%s13668_s1 + $0x10] sm:$0xf]  ;;  %v22_v1 = vld [vmem:[%s13668_s1 + $0x4] sm:$0xf]  ;;  %v31_v3 = vld [vmem:[%s13667_s0 + $0x8] sm:$0xff] }
   0x2   :  { %v30_v2 = vld [vmem:[%s13667_s0] sm:$0xff]  ;;  %8799 = vmatprep.subr.msk.mxu0 %vm512_vm0, %v25_v0  ;;  %8407 = vmatprep.subr.msk.mxu1 %vm512_vm0, %v22_v1  ;;  %v10092_v5 = vld [vmem:[%s13667_s0 + $0x18] sm:$0xff]  ;;  %v224_v7 = vrot.slane %v31_v3, 1  ;;  %v26_v10 = vld [vmem:[%s13668_s1 + $0x14] sm:$0xf] }
   0x3   :  { %v223_v4 = vrot.slane %v30_v2, 1  ;;  %v10097_v6 = vld [vmem:[%s13667_s0 + $0x20] sm:$0xff]  ;;  %8800 = vmatpush3.msk.msra.mxu0 %vm512_vm0, %v25_v0  ;;  %8408 = vmatpush3.msk.msra.mxu1 %vm512_vm0, %v22_v1  ;;  %v2931_v8 = vrot.slane %v10092_v5, 1  ;;  %v10109_v11 = vld [vmem:[%s13667_s0 + $0x30] sm:$0xff]  ;;  %v10118_v13 = vld [vmem:[%s13667_s0 + $0x28] sm:$0x3] }
   0x4   :  { %v2932_v9 = vrot.slane %v10097_v6, 1  ;;  %8897 = vmatprep.subr.msk.mxu0 %vm512_vm0, %v26_v10  ;;  %v32_v12 = vld [vmem:[%s13667_s0 + $0x10] sm:$0x3]  ;;  %v10123_v14 = vld [vmem:[%s13667_s0 + $0x38] sm:$0xff]  ;;  %v2936_v15 = vrot.slane %v10109_v11, 1  ;;  %v2934_v21 = vrot.slane %v10118_v13, 1 }
   0x5   :  { %v225_v16 = vsel %vm222_vm1, %v223_v4, %v224_v7  ;;  %v226_v18 = vrot.slane %v32_v12, 1  ;;  %v35_v19 = vld [vmem:[%s13667_s0 + $0x28] sm:$0x3]  ;;  %v10134_v20 = vld [vmem:[%s13667_s0 + $0x40] sm:$0x3]  ;;  %v2937_v22 = vrot.slane %v10123_v14, 1 }
   0x6   :  { %v2933_v17 = vsel %vm222_vm1, %v2931_v8, %v2932_v9  ;;  %8409 = vmatprep.mubr.msk.f32.mxu1 %vm383_vm2, %v225_v16  ;;  %v231_v23 = vrot.slane %v35_v19, 1  ;;  %v21_v24 = vld [vmem:[%s13668_s1] sm:$0xf]  ;;  %v2939_v26 = vrot.slane %v10134_v20, 1  ;;  %v10149_v27 = vld [vmem:[%s13667_s0 + $0x48] sm:$0xff]  ;;  %v10154_v28 = vld [vmem:[%s13667_s0 + $0x50] sm:$0xff]  ;;  %v2935_v30 = vsel %vm222_vm1, %v2932_v9, %v2934_v21 }
   0x7   :  { %8801 = vmatprep.mubr.msk.f32.mxu0 %vm383_vm2, %v2933_v17  ;;  %v227_v25 = vsel %vm222_vm1, %v224_v7, %v226_v18  ;;  %8505 = vmatprep.subr.msk.mxu1 %vm512_vm0, %v21_v24  ;;  %v38_v29 = vld [vmem:[%s13667_s0 + $0x40] sm:$0x3]  ;;  %v2938_v31 = vsel %vm222_vm1, %v2936_v15, %v2937_v22  ;;  %v2941_v32 = vrot.slane %v10149_v27, 1  ;;  %v10166_v33 = vld [vmem:[%s13667_s0 + $0x58] sm:$0x3]  ;;  %v10176_v35 = vld [vmem:[%s13667_s0 + $0x68] sm:$0xff] }
   0x8   :  { %8410 = vmatmul.mubr.msk.f32.vlgmr.msra.gmra.mrb[0].mxu1 %vm383_vm2, %v227_v25  ;;  %v10171_v34 = vld [vmem:[%s13667_s0 + $0x60] sm:$0xff]  ;;  %8802 = vmatmul.mubr.msk.f32.vlgmr.msra.gmra.mrb[0].mxu0 %vm383_vm2, %v2935_v30  ;;  %v232_v36 = vsel %vm222_vm1, %v2932_v9, %v231_v23  ;;  %v2942_v37 = vrot.slane %v10154_v28, 1  ;;  %v236_v38 = vrot.slane %v38_v29, 1  ;;  %v2940_v39 = vsel %vm222_vm1, %v2937_v22, %v2939_v26  ;;  %v41_v41 = vld [vmem:[%s13667_s0 + $0x58] sm:$0x3]  ;;  %v10230_v57 = vld [vmem:[%s13667_s0 + $0x90] sm:$0xff] }
   0x9   :  { %8412 = vmatprep.mubr.msk.f32.mxu1 %vm383_vm2, %v2933_v17  ;;  %8898 = vmatpush3.msk.msra.mxu0 %vm512_vm0, %v26_v10  ;;  %v2944_v40 = vrot.slane %v10166_v33, 1  ;;  %v2946_v43 = vrot.slane %v10171_v34, 1  ;;  %v2947_v44 = vrot.slane %v10176_v35, 1  ;;  %v10196_v45 = vld [vmem:[%s13667_s0 + $0x70] sm:$0x3]  ;;  %v10202_v46 = vld [vmem:[%s13667_s0 + $0x78] sm:$0xff] }
   0xa   :  { %8804 = vmatprep.mubr.msk.f32.mxu0 %vm383_vm2, %v2938_v31  ;;  %v2943_v42 = vsel %vm222_vm1, %v2941_v32, %v2942_v37  ;;  %8506 = vmatpush3.msk.msra.mxu1 %vm512_vm0, %v21_v24  ;;  %v10207_v47 = vld [vmem:[%s13667_s0 + $0x80] sm:$0xff]  ;;  %v237_v48 = vsel %vm222_vm1, %v2937_v22, %v236_v38  ;;  %v241_v49 = vrot.slane %v41_v41, 1  ;;  %v2949_v51 = vrot.slane %v10196_v45, 1  ;;  %v44_v52 = vld [vmem:[%s13667_s0 + $0x70] sm:$0x3]  ;;  %v10235_v58 = vld [vmem:[%s13667_s0 + $0x98] sm:$0xff] }
   0xb   :  { %v2945_v50 = vsel %vm222_vm1, %v2942_v37, %v2944_v40  ;;  %v2948_v53 = vsel %vm222_vm1, %v2946_v43, %v2947_v44  ;;  %v2951_v54 = vrot.slane %v10202_v46, 1  ;;  %v2952_v55 = vrot.slane %v10207_v47, 1  ;;  %v10224_v56 = vld [vmem:[%s13667_s0 + $0x88] sm:$0x3]  ;;  %v10252_v3 = vld [vmem:[%s13667_s0 + $0xa0] sm:$0x3] }
   0xc   :  { %8413 = vmatmul.mubr.msk.f32.gmra.mrb[2].mxu1 %vm383_vm2, %v232_v36  ;;  %8805 = vmatmul.mubr.msk.f32.gmra.mrb[2].mxu0 %vm383_vm2, %v2940_v39  ;;  %v242_v59 = vsel %vm222_vm1, %v2942_v37, %v241_v49  ;;  %v246_v60 = vrot.slane %v44_v52, 1  ;;  %v2950_v61 = vsel %vm222_vm1, %v2947_v44, %v2949_v51  ;;  %v2954_v62 = vrot.slane %v10224_v56, 1  ;;  %v47_v63 = vld [vmem:[%s13667_s0 + $0x88] sm:$0x3]  ;;  %v10263_v7 = vld [vmem:[%s13667_s0 + $0xb0] sm:$0xff]  ;;  %v10286_v21 = vld [vmem:[%s13667_s0 + $0xc0] sm:$0xff] }
   0xd   :  { %8415 = vmatprep.mubr.msk.f32.mxu1 %vm383_vm2, %v2938_v31  ;;  %8807 = vmatprep.mubr.msk.f32.mxu0 %vm383_vm2, %v2943_v42  ;;  %v2953_v0 = vsel %vm222_vm1, %v2951_v54, %v2952_v55  ;;  %v2956_v1 = vrot.slane %v10230_v57, 1  ;;  %v2957_v2 = vrot.slane %v10235_v58, 1  ;;  %v10258_v4 = vld [vmem:[%s13667_s0 + $0xa8] sm:$0xff]  ;;  %v251_v9 = vrot.slane %v47_v63, 1  ;;  %v50_v15 = vld [vmem:[%s13667_s0 + $0xa0] sm:$0x3] }
   0xe   :  { %v247_v8 = vsel %vm222_vm1, %v2947_v44, %v246_v60  ;;  %v2955_v10 = vsel %vm222_vm1, %v2952_v55, %v2954_v62  ;;  %v2959_v12 = vrot.slane %v10252_v3, 1  ;;  %v2961_v17 = vrot.slane %v10258_v4, 1  ;;  %v10280_v19 = vld [vmem:[%s13667_s0 + $0xb8] sm:$0x3]  ;;  %v10291_v22 = vld [vmem:[%s13667_s0 + $0xc8] sm:$0xff]  ;;  %v10319_v38 = vld [vmem:[%s13667_s0 + $0xe0] sm:$0xff] }
   0xf   :  { %v2958_v16 = vsel %vm222_vm1, %v2956_v1, %v2957_v2  ;;  %v2962_v18 = vrot.slane %v10263_v7, 1  ;;  %v252_v23 = vsel %vm222_vm1, %v2952_v55, %v251_v9  ;;  %v256_v24 = vrot.slane %v50_v15, 1  ;;  %v53_v29 = vld [vmem:[%s13667_s0 + $0xb8] sm:$0x3]  ;;  %v10308_v36 = vld [vmem:[%s13667_s0 + $0xd0] sm:$0x3] }
  0x10   :  { %8416 = vmatmul.mubr.msk.f32.gmra.mrb[4].mxu1 %vm383_vm2, %v237_v48  ;;  %8808 = vmatmul.mubr.msk.f32.gmra.mrb[4].mxu0 %vm383_vm2, %v2945_v50  ;;  %v2960_v25 = vsel %vm222_vm1, %v2957_v2, %v2959_v12  ;;  %v2964_v26 = vrot.slane %v10280_v19, 1  ;;  %v2966_v31 = vrot.slane %v10286_v21, 1  ;;  %v2967_v32 = vrot.slane %v10291_v22, 1  ;;  %v10314_v37 = vld [vmem:[%s13667_s0 + $0xd8] sm:$0xff]  ;;  %v56_v43 = vld [vmem:[%s13667_s0 + $0xd0] sm:$0x3] }
  0x11   :  { %8418 = vmatprep.mubr.msk.f32.mxu1 %vm383_vm2, %v2943_v42  ;;  %8810 = vmatprep.mubr.msk.f32.mxu0 %vm383_vm2, %v2948_v53  ;;  %v2963_v30 = vsel %vm222_vm1, %v2961_v17, %v2962_v18  ;;  %v257_v39 = vsel %vm222_vm1, %v2957_v2, %v256_v24  ;;  %v261_v40 = vrot.slane %v53_v29, 1  ;;  %v2969_v42 = vrot.slane %v10308_v36, 1  ;;  %v10336_v50 = vld [vmem:[%s13667_s0 + $0xe8] sm:$0x3]  ;;  %v10342_v51 = vld [vmem:[%s13667_s0 + $0xf0] sm:$0xff]  ;;  %v10347_v52 = vld [vmem:[%s13667_s0 + $0xf8] sm:$0xff] }
  0x12   :  { %v2965_v41 = vsel %vm222_vm1, %v2962_v18, %v2964_v26  ;;  %v2968_v44 = vsel %vm222_vm1, %v2966_v31, %v2967_v32  ;;  %v2971_v48 = vrot.slane %v10314_v37, 1  ;;  %v2972_v49 = vrot.slane %v10319_v38, 1  ;;  %v10371_v1 = vld [vmem:[%s13667_s0 + $0x100] sm:$0x3]  ;;  %v10377_v2 = vld [vmem:[%s13667_s0 + $0x108] sm:$0xff] }
  0x13   :  { %v262_v54 = vsel %vm222_vm1, %v2962_v18, %v261_v40  ;;  %v266_v55 = vrot.slane %v56_v43, 1  ;;  %v2974_v60 = vrot.slane %v10336_v50, 1  ;;  %v2976_v63 = vrot.slane %v10342_v51, 1  ;;  %v10399_v24 = vld [vmem:[%s13667_s0 + $0x118] sm:$0x3]  ;;  %v10410_v26 = vld [vmem:[%s13667_s0 + $0x128] sm:$0xff] }
  0x14   :  { %8419 = vmatmul.mubr.msk.f32.gmra.mrb[6].mxu1 %vm383_vm2, %v242_v59  ;;  %8811 = vmatmul.mubr.msk.f32.gmra.mrb[6].mxu0 %vm383_vm2, %v2950_v61  ;;  %v2970_v59 = vsel %vm222_vm1, %v2967_v32, %v2969_v42  ;;  %v59_v61 = vld [vmem:[%s13667_s0 + $0xe8] sm:$0x3]  ;;  %v2973_v62 = vsel %vm222_vm1, %v2971_v48, %v2972_v49  ;;  %v2979_v15 = vrot.slane %v10371_v1, 1  ;;  %v2981_v18 = vrot.slane %v10377_v2, 1  ;;  %v10427_v43 = vld [vmem:[%s13667_s0 + $0x130] sm:$0x3] }
  0x15   :  { %8421 = vmatprep.mubr.msk.f32.mxu1 %vm383_vm2, %v2948_v53  ;;  %8813 = vmatprep.mubr.msk.f32.mxu0 %vm383_vm2, %v2953_v0  ;;  %v10352_v53 = vld [vmem:[%s13668_s1 + $0x18] sm:$0xf]  ;;  %v267_v9 = vsel %vm222_vm1, %v2967_v32, %v266_v55  ;;  %v2975_v12 = vsel %vm222_vm1, %v2972_v49, %v2974_v60  ;;  %v2984_v32 = vrot.slane %v10399_v24, 1  ;;  %v2987_v42 = vrot.slane %v10410_v26, 1  ;;  %v10438_v48 = vld [vmem:[%s13667_s0 + $0x140] sm:$0xff] }
  0x16   :  { %8995 = vmatprep.subr.msk.mxu0 %vm512_vm0, %v10352_v53  ;;  %v68_v60 = vld [vmem:[%s13667_s0 + $0x130] sm:$0x3] }
  0x18   :  { %8422 = vmatmul.mubr.msk.f32.gmra.mrb[8].mxu1 %vm383_vm2, %v247_v8  ;;  %8814 = vmatmul.mubr.msk.f32.gmra.mrb[8].mxu0 %vm383_vm2, %v2955_v10  ;;  %v10382_v8 = vld [vmem:[%s13667_s0 + $0x110] sm:$0xff]  ;;  %v271_v10 = vrot.slane %v59_v61, 1 }
  0x19   :  { %8424 = vmatprep.mubr.msk.f32.mxu1 %vm383_vm2, %v2953_v0  ;;  %8816 = vmatprep.mubr.msk.f32.mxu0 %vm383_vm2, %v2958_v16  ;;  %v2977_v0 = vrot.slane %v10347_v52, 1 }
  0x1a   :  { %v272_v29 = vsel %vm222_vm1, %v2972_v49, %v271_v10  ;;  %v10466_v10 = vld [vmem:[%s13667_s0 + $0x158] sm:$0xff] }
  0x1b   :  { %v2978_v17 = vsel %vm222_vm1, %v2976_v63, %v2977_v0  ;;  %v2980_v31 = vsel %vm222_vm1, %v2977_v0, %v2979_v15  ;;  %v2992_v63 = vrot.slane %v10438_v48, 1  ;;  %v286_v15 = vrot.slane %v68_v60, 1 }
  0x1c   :  { %8425 = vmatmul.mubr.msk.f32.gmra.mrb[10].mxu1 %vm383_vm2, %v252_v23  ;;  %8817 = vmatmul.mubr.msk.f32.gmra.mrb[10].mxu0 %vm383_vm2, %v2960_v25  ;;  %v2982_v23 = vrot.slane %v10382_v8, 1  ;;  %v10405_v25 = vld [vmem:[%s13667_s0 + $0x120] sm:$0xff] }
  0x1d   :  { %8427 = vmatprep.mubr.msk.f32.mxu1 %vm383_vm2, %v2958_v16  ;;  %8819 = vmatprep.mubr.msk.f32.mxu0 %vm383_vm2, %v2963_v30  ;;  %v62_v16 = vld [vmem:[%s13667_s0 + $0x100] sm:$0x3] }
  0x1e   :  { %v2983_v40 = vsel %vm222_vm1, %v2981_v18, %v2982_v23  ;;  %v2985_v55 = vsel %vm222_vm1, %v2982_v23, %v2984_v32  ;;  %v10490_v32 = vld [vmem:[%s13667_s0 + $0x160] sm:$0x3] }
  0x1f   :  { %13752 = vst [vmem:[#allocation6_spill] sm:$0xff] %v10490_v32 }
  0x20   :  { %8428 = vmatmul.mubr.msk.f32.gmra.mrb[12].mxu1 %vm383_vm2, %v257_v39  ;;  %8820 = vmatmul.mubr.msk.f32.gmra.mrb[12].mxu0 %vm383_vm2, %v2965_v41  ;;  %v65_v39 = vld [vmem:[%s13667_s0 + $0x118] sm:$0x3]  ;;  %v2986_v41 = vrot.slane %v10405_v25, 1 }
  0x21   :  { %8430 = vmatprep.mubr.msk.f32.mxu1 %vm383_vm2, %v2963_v30  ;;  %8822 = vmatprep.mubr.msk.f32.mxu0 %vm383_vm2, %v2968_v44  ;;  %v276_v30 = vrot.slane %v62_v16, 1  ;;  %v10474_v16 = vld [vmem:[%s13668_s1 + $0x8] sm:$0xf] }
  0x22   :  { %v2988_v61 = vsel %vm222_vm1, %v2986_v41, %v2987_v42  ;;  %13751 = vst [vmem:[#allocation5_spill] sm:$0xff] %v10474_v16  ;;  %8603 = vmatprep.subr.msk.mxu1 %vm512_vm0, %v10474_v16  ;;  %v287_v41 = vsel %vm222_vm1, %v2987_v42, %v286_v15  ;;  %v10529_v15 = vld [vmem:[%s13667_s0 + $0x188] sm:$0xff] }
  0x23   :  { %v277_v49 = vsel %vm222_vm1, %v2977_v0, %v276_v30  ;;  %v10455_v0 = vld [vmem:[%s13667_s0 + $0x148] sm:$0x3]  ;;  %13757 = vst [vmem:[#allocation11_spill] sm:$0xff] %v10529_v15 }
  0x24   :  { %8431 = vmatmul.mubr.msk.f32.gmra.mrb[14].mxu1 %vm383_vm2, %v262_v54  ;;  %8823 = vmatmul.mubr.msk.f32.gmra.mrb[14].mxu0 %vm383_vm2, %v2970_v59  ;;  %v281_v54 = vrot.slane %v65_v39, 1  ;;  %v2989_v59 = vrot.slane %v10427_v43, 1  ;;  %v2994_v18 = vrot.slane %v10455_v0, 1  ;;  %v10496_v39 = vld [vmem:[%s13667_s0 + $0x168] sm:$0xff] }
  0x25   :  { %8433 = vmatprep.mubr.msk.f32.mxu1 %vm383_vm2, %v2968_v44  ;;  %8825 = vmatprep.mubr.msk.f32.mxu0 %vm383_vm2, %v2973_v62  ;;  %v10433_v44 = vld [vmem:[%s13667_s0 + $0x138] sm:$0xff]  ;;  %13753 = vst [vmem:[#allocation7_spill] sm:$0xff] %v10496_v39 }
  0x28   :  { %8434 = vmatmul.mubr.msk.f32.gmra.mrb[16].mxu1 %vm383_vm2, %v267_v9  ;;  %8826 = vmatmul.mubr.msk.f32.gmra.mrb[16].mxu0 %vm383_vm2, %v2975_v12  ;;  %v10461_v9 = vld [vmem:[%s13667_s0 + $0x150] sm:$0xff]  ;;  %v282_v12 = vsel %vm222_vm1, %v2982_v23, %v281_v54  ;;  %v2995_v54 = vsel %vm222_vm1, %v2992_v63, %v2994_v18 }
  0x29   :  { %8436 = vmatprep.mubr.msk.f32.mxu1 %vm383_vm2, %v2973_v62  ;;  %8828 = vmatprep.mubr.msk.f32.mxu0 %vm383_vm2, %v2978_v17  ;;  %v2991_v62 = vrot.slane %v10433_v44, 1  ;;  %v2996_v30 = vrot.slane %v10461_v9, 1 }
  0x2b   :  { %v2993_v23 = vsel %vm222_vm1, %v2991_v62, %v2992_v63  ;;  %v3001_v62 = vrot.slane %v10496_v39, 1 }
  0x2c   :  { %8437 = vmatmul.mubr.msk.f32.gmra.mrb[18].mxu1 %vm383_vm2, %v272_v29  ;;  %8829 = vmatmul.mubr.msk.f32.gmra.mrb[18].mxu0 %vm383_vm2, %v2980_v31  ;;  %v71_v29 = vld [vmem:[%s13667_s0 + $0x148] sm:$0x3]  ;;  %v2997_v31 = vrot.slane %v10466_v10, 1 }
  0x2d   :  { %8439 = vmatprep.mubr.msk.f32.mxu1 %vm383_vm2, %v2978_v17  ;;  %8831 = vmatprep.mubr.msk.f32.mxu0 %vm383_vm2, %v2983_v40  ;;  %v2990_v17 = vsel %vm222_vm1, %v2987_v42, %v2989_v59  ;;  %v74_v59 = vld [vmem:[%s13667_s0 + $0x160] sm:$0x3]  ;;  %v10518_v42 = vld [vmem:[%s13667_s0 + $0x178] sm:$0x3] }
  0x2e   :  { %v2998_v60 = vsel %vm222_vm1, %v2996_v30, %v2997_v31  ;;  %13755 = vst [vmem:[#allocation9_spill] sm:$0xff] %v10518_v42 }
  0x30   :  { %8440 = vmatmul.mubr.msk.f32.gmra.mrb[20].mxu1 %vm383_vm2, %v277_v49  ;;  %8832 = vmatmul.mubr.msk.f32.gmra.mrb[20].mxu0 %vm383_vm2, %v2985_v55  ;;  %v291_v49 = vrot.slane %v71_v29, 1  ;;  %v2999_v55 = vrot.slane %v10490_v32, 1 }
  0x31   :  { %8442 = vmatprep.mubr.msk.f32.mxu1 %vm383_vm2, %v2983_v40  ;;  %8834 = vmatprep.mubr.msk.f32.mxu0 %vm383_vm2, %v2988_v61  ;;  %v10501_v40 = vld [vmem:[%s13667_s0 + $0x170] sm:$0xff] }
  0x32   :  { %13754 = vst [vmem:[#allocation8_spill] sm:$0xff] %v10501_v40 }
  0x34   :  { %8443 = vmatmul.mubr.msk.f32.gmra.mrb[22].mxu1 %vm383_vm2, %v282_v12  ;;  %8835 = vmatmul.mubr.msk.f32.gmra.mrb[22].mxu0 %vm383_vm2, %v2990_v17  ;;  %v3002_v12 = vrot.slane %v10501_v40, 1 }
  0x35   :  { %8445 = vmatprep.mubr.msk.f32.mxu1 %vm383_vm2, %v2988_v61  ;;  %8837 = vmatprep.mubr.msk.f32.mxu0 %vm383_vm2, %v2993_v23  ;;  %v10524_v61 = vld [vmem:[%s13667_s0 + $0x180] sm:$0xff] }
  0x36   :  { %13756 = vst [vmem:[#allocation10_spill] sm:$0xff] %v10524_v61 }
  0x38   :  { %8446 = vmatmul.mubr.msk.f32.gmra.mrb[24].mxu1 %vm383_vm2, %v287_v41 }
  0x39   :  { %10 = vsyncpa [#allocation3], 0  ;;  %8838 = vmatmul.mubr.msk.f32.gmra.mrb[24].mxu0 %vm383_vm2, %v2995_v54  ;;  %8448 = vmatprep.mubr.msk.f32.mxu1 %vm383_vm2, %v2993_v23  ;;  %v292_v17 = vsel %vm222_vm1, %v2992_v63, %v291_v49  ;;  %v296_v18 = vrot.slane %v74_v59, 1  ;;  %v3000_v29 = vsel %vm222_vm1, %v2997_v31, %v2999_v55  ;;  %v3004_v30 = vrot.slane %v10518_v42, 1  ;;  %v77_v41 = vld [vmem:[%s13667_s0 + $0x178] sm:$0x3] }
  0x3a   :  { %8840 = vmatprep.mubr.msk.f32.mxu0 %vm383_vm2, %v2998_v60  ;;  %v3003_v16 = vsel %vm222_vm1, %v3001_v62, %v3002_v12  ;;  %v3006_v40 = vrot.slane %v10524_v61, 1  ;;  %v3007_v54 = vrot.slane %v10529_v15, 1  ;;  %v10546_v63 = vld [vmem:[%s13667_s0 + $0x190] sm:$0x3]  ;;  %v10556_v49 = vld [vmem:[%s13667_s0 + $0x1b8] sm:$0xff]  ;;  %v10562_v55 = vld [vmem:[%s13667_s0 + $0x1c8] sm:$0xff] }
  0x3b   :  { %v10551_v23 = vld [vmem:[%s13667_s0 + $0x1b0] sm:$0xff]  ;;  %13759 = vst [vmem:[#allocation13_spill] sm:$0xff] %v10556_v49  ;;  %v297_v62 = vsel %vm222_vm1, %v2997_v31, %v296_v18  ;;  %v301_v15 = vrot.slane %v77_v41, 1  ;;  %v3009_v61 = vrot.slane %v10546_v63, 1  ;;  %v304_v39 = vrot.slane %v10556_v49, 1  ;;  %s10044_s11 = smov [#allocation2]  }
  0x3c   :  { %13758 = vst [vmem:[#allocation12_spill] sm:$0xff] %v10551_v23  ;;  %8449 = vmatmul.mubr.msk.f32.gmra.mrb[26].mxu1 %vm383_vm2, %v292_v17  ;;  %v10567_v59 = vld [vmem:[%s13667_s0 + $0x1d0] sm:$0xff]  ;;  %v3005_v17 = vsel %vm222_vm1, %v3002_v12, %v3004_v30  ;;  %v303_v42 = vrot.slane %v10551_v23, 1  ;;  %v80_v32 = vld [vmem:[%s13667_s0 + $0x1c0] sm:$0x3]  ;;  %vm1417_vm3 = vcmask 1045504  }
  0x3d   :  { %13760 = vst [vmem:[#allocation14_spill] sm:$0xff] %v10567_v59  ;;  %8841 = vmatmul.mubr.msk.f32.gmra.mrb[26].mxu0 %vm383_vm2, %v3000_v29  ;;  %8451 = vmatprep.mubr.msk.f32.mxu1 %vm383_vm2, %v2998_v60  ;;  %v3008_v29 = vsel %vm222_vm1, %v3006_v40, %v3007_v54  ;;  %v3011_v60 = vrot.slane %v10562_v55, 1  ;;  %v3012_v31 = vrot.slane %v10567_v59, 1  ;;  %v10586_v18 = vld [vmem:[%s13667_s0 + $0x1d8] sm:$0x3]  ;;  %v302_v30 = vsel %vm222_vm1, %v3002_v12, %v301_v15  ;;  %v10610_v12 = vld [vmem:[%s13667_s0 + $0x1e8] sm:$0xff] }
  0x3e   :  { %8843 = vmatprep.mubr.msk.f32.mxu0 %vm383_vm2, %v3003_v16  ;;  %v306_v41 = vrot.slane %v80_v32, 1  ;;  %v3010_v40 = vsel %vm222_vm1, %v3007_v54, %v3009_v61  ;;  %v305_v49 = vsel %vm222_vm1, %v303_v42, %v304_v39  ;;  %v3014_v23 = vrot.slane %v10586_v18, 1  ;;  %v83_v59 = vld [vmem:[%s13667_s0 + $0x1d8] sm:$0x3]  ;;  %v10605_v32 = vld [vmem:[%s13667_s0 + $0x1e0] sm:$0xff]  ;;  %s7032_s12 = sshll.u32 %s10044_s11, 4  ;;  %s7033_s12 = int_to_ptr.vmem [resolvable:$true] %s7032_s12 }
  0x3f   :  { %v3674_v42 = vrot.slane %v10118_v13, 2  ;;  %v313_v15 = vrot.slane %v10605_v32, 1  ;;  %v314_v54 = vrot.slane %v10610_v12, 1  ;;  %vm6799_vm4 = vcmask 64512   ;;  %s10018_s13 = scalar_lea.vmem %s7033_s12, 32  ;;  %p10023_p1 = scmp.lt.s32.totalorder %s7033_s12, %s7033_s12 }
  0x40   :  { %8452 = vmatmul.mubr.msk.f32.gmra.mrb[28].mxu1 %vm383_vm2, %v297_v62  ;;  %v3013_v62 = vsel %vm222_vm1, %v3011_v60, %v3012_v31  ;;  %v3015_v61 = vsel %vm222_vm1, %v3012_v31, %v3014_v23  ;;  %v3676_v60 = vrot.slane %v10109_v11, 2  ;;  %v10635_v23 = vld [vmem:[%s13667_s0 + $0x200] sm:$0xff]  ;;  %vm10043_vm5 = vmmov 0   ;;  %p10019_p0 = scmp.ne.s32.totalorder %s7033_s12, %s10018_s13  ;;  %p10024_p2 = scmp.lt.s32.totalorder %s10018_s13, %s10018_s13 }
  0x41   :  { %8844 = vmatmul.mubr.msk.f32.gmra.mrb[28].mxu0 %vm383_vm2, %v3005_v17  ;;  %8454 = vmatprep.mubr.msk.f32.mxu1 %vm383_vm2, %v3003_v16  ;;  %v3671_v17 = vrot.slane %v10092_v5, 2  ;;  %v3672_v16 = vrot.slane %v10097_v6, 2  ;;  %v307_v5 = vsel %vm222_vm1, %v304_v39, %v306_v41  ;;  %v311_v6 = vrot.slane %v83_v59, 1  ;;  %v10630_v39 = vld [vmem:[%s13667_s0 + $0x1f8] sm:$0xff] }
  0x42   :  { %8846 = vmatprep.mubr.msk.f32.mxu0 %vm383_vm2, %v3008_v29  ;;  %v86_v29 = vld [vmem:[%s13667_s0 + $0x1f0] sm:$0x3]  ;;  %v3679_v41 = vrot.slane %v10134_v20, 2  ;;  %v10661_v20 = vld [vmem:[%s13667_s0 + $0x218] sm:$0xff]  ;;  %vm6950_vm6 = vcmask 1041409   ;;  %vm7024_vm7 = vcmask 74752   ;;  %p10025_p3 = por %p10024_p2, %p10023_p1 }
  0x43   :  { %v3673_v13 = vsel %vm1417_vm3, %v3671_v17, %v3672_v16  ;;  %v312_v11 = vsel %vm222_vm1, %v3012_v31, %v311_v6  ;;  %v316_v59 = vrot.slane %v86_v29, 1  ;;  %v319_v17 = vrot.slane %v10635_v23, 1  ;;  %v10667_v6 = vld [vmem:[%s13668_s1 + $0x1c] sm:$0xf] }
  0x44   :  { %8455 = vmatmul.mubr.msk.f32.gmra.mrb[30].mxu1 %vm383_vm2, %v302_v30  ;;  %v315_v30 = vsel %vm222_vm1, %v313_v15, %v314_v54  ;;  %v3681_v31 = vrot.slane %v10149_v27, 2  ;;  %13761 = vst [vmem:[#allocation15_spill] sm:$0xff] %v10667_v6  ;;  %p10026_p4 = pnand %p10025_p3, %p10019_p0 }
  0x45   :  { %8847 = vmatmul.mubr.msk.f32.gmra.mrb[30].mxu0 %vm383_vm2, %v3010_v40  ;;  %8457 = vmatprep.mubr.msk.f32.mxu1 %vm383_vm2, %v305_v49  ;;  %v3677_v49 = vrot.slane %v10123_v14, 2  ;;  %v3675_v14 = vsel %vm1417_vm3, %v3672_v16, %v3674_v42  ;;  %v318_v40 = vrot.slane %v10630_v39, 1  ;;  %v3682_v16 = vrot.slane %v10154_v28, 2  ;;  %v10656_v42 = vld [vmem:[%s13667_s0 + $0x210] sm:$0xff] }
  0x46   :  { %8849 = vmatprep.mubr.msk.f32.mxu0 %vm383_vm2, %v3013_v62  ;;  %v317_v27 = vsel %vm222_vm1, %v314_v54, %v316_v59  ;;  %v92_v54 = vld [vmem:[%s13667_s0 + $0x220] sm:$0x3] }
  0x47   :  { %v3680_v15 = vsel %vm1417_vm3, %v3677_v49, %v3679_v41  ;;  %v320_v29 = vsel %vm222_vm1, %v318_v40, %v319_v17  ;;  %v326_v59 = vrot.slane %v92_v54, 1  ;;  %v3689_v41 = vrot.slane %v10196_v45, 2  ;;  %v10722_v45 = vld [vmem:[%s13667_s0 + $0x248] sm:$0xff]  ;;  %v98_v54 = vld [vmem:[%s13667_s0 + $0x250] sm:$0x3] }
  0x48   :  { %8458 = vmatmul.mubr.msk.f32.gmra.mrb[32].mxu1 %vm383_vm2, %v307_v5  ;;  %v89_v5 = vld [vmem:[%s13667_s0 + $0x208] sm:$0x3] }
  0x49   :  { %8850 = vmatmul.mubr.msk.f32.gmra.mrb[32].mxu0 %vm383_vm2, %v3015_v61  ;;  %8460 = vmatprep.mubr.msk.f32.mxu1 %vm383_vm2, %v3013_v62  ;;  %v3678_v62 = vsel %vm1417_vm3, %v3676_v60, %v3677_v49  ;;  %v321_v28 = vrot.slane %v89_v5, 1  ;;  %v3684_v61 = vrot.slane %v10166_v33, 2  ;;  %v324_v60 = vrot.slane %v10661_v20, 1  ;;  %v10689_v49 = vld [vmem:[%s13667_s0 + $0x228] sm:$0xff] }
  0x4a   :  { %8899 = vmatprep.mubr.msk.f32.mxu0 %vm383_vm2, %v3673_v13  ;;  %v323_v13 = vrot.slane %v10656_v42, 1  ;;  %v3686_v33 = vrot.slane %v10171_v34, 2  ;;  %v328_v40 = vrot.slane %v10689_v49, 1 }
  0x4b   :  { %v322_v34 = vsel %vm222_vm1, %v319_v17, %v321_v28  ;;  %v3691_v17 = vrot.slane %v10202_v46, 2  ;;  %v327_v46 = vsel %vm222_vm1, %v324_v60, %v326_v59  ;;  %v3699_v59 = vrot.slane %v10252_v3, 2  ;;  %v10774_v3 = vld [vmem:[%s13667_s0 + $0x278] sm:$0xff] }
  0x4c   :  { %8461 = vmatmul.mubr.msk.f32.gmra.mrb[34].mxu1 %vm383_vm2, %v312_v11  ;;  %v3683_v11 = vsel %vm1417_vm3, %v3681_v31, %v3682_v16 }
  0x4d   :  { %8900 = vmatmul.mubr.msk.f32.vlgmr.msra.gmra.mrb[0].mxu0 %vm383_vm2, %v3675_v14  ;;  %8463 = vmatprep.mubr.msk.f32.mxu1 %vm383_vm2, %v315_v30  ;;  %v10694_v14 = vld [vmem:[%s13667_s0 + $0x230] sm:$0xff]  ;;  %v325_v30 = vsel %vm222_vm1, %v323_v13, %v324_v60  ;;  %v334_v13 = vrot.slane %v10722_v45, 1  ;;  %v3696_v60 = vrot.slane %v10230_v57, 2 }
  0x4e   :  { %8996 = vmatpush3.msk.msra.mxu0 %vm512_vm0, %v10352_v53  ;;  %8902 = vmatprep.mubr.msk.f32.mxu0 %vm383_vm2, %v3678_v62  ;;  %v3687_v53 = vrot.slane %v10176_v35, 2  ;;  %v3685_v35 = vsel %vm1417_vm3, %v3682_v16, %v3684_v61  ;;  %v329_v5 = vrot.slane %v10694_v14, 1  ;;  %v95_v62 = vld [vmem:[%s13667_s0 + $0x238] sm:$0x3]  ;;  %v3692_v16 = vrot.slane %v10207_v47, 2 }
  0x4f   :  { %9093 = vmatprep.subr.msk.mxu0 %vm512_vm0, %v10667_v6  ;;  %v331_v28 = vrot.slane %v95_v62, 1  ;;  %v3694_v47 = vrot.slane %v10224_v56, 2  ;;  %v3697_v56 = vrot.slane %v10235_v58, 2 }
  0x50   :  { %8464 = vmatmul.mubr.msk.f32.gmra.mrb[36].mxu1 %vm383_vm2, %v317_v27  ;;  %v3688_v31 = vsel %vm1417_vm3, %v3686_v33, %v3687_v53  ;;  %v10717_v27 = vld [vmem:[%s13667_s0 + $0x240] sm:$0xff]  ;;  %v3690_v61 = vsel %vm1417_vm3, %v3687_v53, %v3689_v41  ;;  %v10743_v33 = vld [vmem:[%s13667_s0 + $0x258] sm:$0xff] }
  0x51   :  { %8903 = vmatmul.mubr.msk.f32.gmra.mrb[2].mxu0 %vm383_vm2, %v3680_v15  ;;  %8466 = vmatprep.mubr.msk.f32.mxu1 %vm383_vm2, %v320_v29  ;;  %v330_v15 = vsel %vm222_vm1, %v328_v40, %v329_v5  ;;  %v333_v29 = vrot.slane %v10717_v27, 1  ;;  %v10748_v53 = vld [vmem:[%s13667_s0 + $0x260] sm:$0xff]  ;;  %v332_v57 = vsel %vm222_vm1, %v329_v5, %v331_v28  ;;  %v3695_v58 = vsel %vm1417_vm3, %v3692_v16, %v3694_v47  ;;  %v101_v40 = vld [vmem:[%s13667_s0 + $0x268] sm:$0x3] }
  0x52   :  { %8905 = vmatprep.mubr.msk.f32.mxu0 %vm383_vm2, %v3683_v11  ;;  %v3693_v11 = vsel %vm1417_vm3, %v3691_v17, %v3692_v16  ;;  %v339_v41 = vrot.slane %v10748_v53, 1  ;;  %v3698_v62 = vsel %vm1417_vm3, %v3696_v60, %v3697_v56  ;;  %v3701_v5 = vrot.slane %v10258_v4, 2  ;;  %v10769_v17 = vld [vmem:[%s13667_s0 + $0x270] sm:$0xff] }
  0x53   :  { %v341_v16 = vrot.slane %v101_v40, 1  ;;  %v343_v47 = vrot.slane %v10769_v17, 1  ;;  %v10821_v40 = vld [vmem:[%s13667_s0 + $0x2a0] sm:$0xff] }
  0x54   :  { %8467 = vmatmul.mubr.msk.f32.gmra.mrb[38].mxu1 %vm383_vm2, %v322_v34  ;;  %v336_v34 = vrot.slane %v98_v54, 1  ;;  %v10795_v54 = vld [vmem:[%s13667_s0 + $0x288] sm:$0xff] }
  0x55   :  { %8906 = vmatmul.mubr.msk.f32.gmra.mrb[4].mxu0 %vm383_vm2, %v3685_v35  ;;  %8469 = vmatprep.mubr.msk.f32.mxu1 %vm383_vm2, %v325_v30  ;;  %v335_v35 = vsel %vm222_vm1, %v333_v29, %v334_v13  ;;  %v338_v30 = vrot.slane %v10743_v33, 1 }
  0x56   :  { %8908 = vmatprep.mubr.msk.f32.mxu0 %vm383_vm2, %v3688_v31  ;;  %v3702_v31 = vrot.slane %v10263_v7, 2  ;;  %v337_v4 = vsel %vm222_vm1, %v334_v13, %v336_v34  ;;  %v3704_v7 = vrot.slane %v10280_v19, 2  ;;  %v3706_v13 = vrot.slane %v10286_v21, 2 }
  0x57   :  { %v340_v28 = vsel %vm222_vm1, %v338_v30, %v339_v41  ;;  %v3707_v19 = vrot.slane %v10291_v22, 2  ;;  %v342_v21 = vsel %vm222_vm1, %v339_v41, %v341_v16  ;;  %v3711_v30 = vrot.slane %v10314_v37, 2 }
  0x58   :  { %8470 = vmatmul.mubr.msk.f32.gmra.mrb[40].mxu1 %vm383_vm2, %v327_v46  ;;  %v3700_v46 = vsel %vm1417_vm3, %v3697_v56, %v3699_v59  ;;  %v3703_v29 = vsel %vm1417_vm3, %v3701_v5, %v3702_v31  ;;  %v3705_v22 = vsel %vm1417_vm3, %v3702_v31, %v3704_v7  ;;  %v3712_v41 = vrot.slane %v10319_v38, 2  ;;  %v110_v7 = vld [vmem:[%s13667_s0 + $0x2b0] sm:$0x3] }
  0x59   :  { %8909 = vmatmul.mubr.msk.f32.gmra.mrb[6].mxu0 %vm383_vm2, %v3690_v61  ;;  %8472 = vmatprep.mubr.msk.f32.mxu1 %vm383_vm2, %v330_v15  ;;  %v344_v61 = vrot.slane %v10774_v3, 1  ;;  %v104_v15 = vld [vmem:[%s13667_s0 + $0x280] sm:$0x3]  ;;  %v3708_v59 = vsel %vm1417_vm3, %v3706_v13, %v3707_v19  ;;  %v3714_v38 = vrot.slane %v10336_v50, 2  ;;  %v3717_v50 = vrot.slane %v10347_v52, 2 }
  0x5a   :  { %8911 = vmatprep.mubr.msk.f32.mxu0 %vm383_vm2, %v3693_v11  ;;  %v10800_v11 = vld [vmem:[%s13667_s0 + $0x290] sm:$0xff]  ;;  %v346_v60 = vrot.slane %v104_v15, 1 }
  0x5b   :  { %v345_v56 = vsel %vm222_vm1, %v343_v47, %v344_v61  ;;  %v349_v34 = vrot.slane %v10800_v11, 1  ;;  %v10847_v47 = vld [vmem:[%s13667_s0 + $0x2b8] sm:$0xff]  ;;  %v3715_v52 = vsel %vm1417_vm3, %v3712_v41, %v3714_v38 }
  0x5c   :  { %8473 = vmatmul.mubr.msk.f32.gmra.mrb[42].mxu1 %vm383_vm2, %v332_v57  ;;  %v3709_v57 = vrot.slane %v10308_v36, 2  ;;  %v10826_v36 = vld [vmem:[%s13667_s0 + $0x2a8] sm:$0xff]  ;;  %v347_v37 = vsel %vm222_vm1, %v344_v61, %v346_v60  ;;  %v10852_v61 = vld [vmem:[%s13667_s0 + $0x2c0] sm:$0xff] }
  0x5d   :  { %8912 = vmatmul.mubr.msk.f32.gmra.mrb[8].mxu0 %vm383_vm2, %v3695_v58  ;;  %8475 = vmatprep.mubr.msk.f32.mxu1 %vm383_vm2, %v335_v35  ;;  %v348_v58 = vrot.slane %v10795_v54, 1  ;;  %v107_v35 = vld [vmem:[%s13667_s0 + $0x298] sm:$0x3]  ;;  %v354_v16 = vrot.slane %v10826_v36, 1  ;;  %v113_v60 = vld [vmem:[%s13667_s0 + $0x2c8] sm:$0x3] }
  0x5e   :  { %8914 = vmatprep.mubr.msk.f32.mxu0 %vm383_vm2, %v3698_v62  ;;  %v351_v62 = vrot.slane %v107_v35, 1  ;;  %v3710_v5 = vsel %vm1417_vm3, %v3707_v19, %v3709_v57  ;;  %v3719_v19 = vrot.slane %v10371_v1, 2  ;;  %v3721_v57 = vrot.slane %v10377_v2, 2  ;;  %v10878_v1 = vld [vmem:[%s13667_s0 + $0x2d8] sm:$0xff] }
  0x5f   :  { %v350_v31 = vsel %vm222_vm1, %v348_v58, %v349_v34  ;;  %v3722_v58 = vrot.slane %v10382_v8, 2  ;;  %v364_v38 = vrot.slane %v10878_v1, 1 }
  0x60   :  { %8476 = vmatmul.mubr.msk.f32.gmra.mrb[44].mxu1 %vm383_vm2, %v337_v4  ;;  %v353_v4 = vrot.slane %v10821_v40, 1  ;;  %v352_v15 = vsel %vm222_vm1, %v349_v34, %v351_v62  ;;  %v10873_v34 = vld [vmem:[%s13667_s0 + $0x2d0] sm:$0xff] }
  0x61   :  { %8915 = vmatmul.mubr.msk.f32.gmra.mrb[10].mxu0 %vm383_vm2, %v3700_v46  ;;  %8478 = vmatprep.mubr.msk.f32.mxu1 %vm383_vm2, %v340_v28  ;;  %v3713_v46 = vsel %vm1417_vm3, %v3711_v30, %v3712_v41  ;;  %v3716_v28 = vrot.slane %v10342_v51, 2  ;;  %v3724_v30 = vrot.slane %v10399_v24, 2  ;;  %v3720_v41 = vsel %vm1417_vm3, %v3717_v50, %v3719_v19  ;;  %v119_v19 = vld [vmem:[%s13667_s0 + $0x2f8] sm:$0x3] }
  0x62   :  { %8917 = vmatprep.mubr.msk.f32.mxu0 %vm383_vm2, %v3703_v29  ;;  %v356_v29 = vrot.slane %v110_v7, 1  ;;  %v355_v13 = vsel %vm222_vm1, %v353_v4, %v354_v16  ;;  %v363_v62 = vrot.slane %v10873_v34, 1  ;;  %v3726_v4 = vrot.slane %v10405_v25, 2  ;;  %v10904_v7 = vld [vmem:[%s13667_s0 + $0x2f0] sm:$0xff] }
  0x63   :  { %v3727_v24 = vrot.slane %v10410_v26, 2 }
  0x64   :  { %8479 = vmatmul.mubr.msk.f32.gmra.mrb[46].mxu1 %vm383_vm2, %v342_v21  ;;  %v358_v21 = vrot.slane %v10847_v47, 1  ;;  %v357_v35 = vsel %vm222_vm1, %v354_v16, %v356_v29  ;;  %v10899_v16 = vld [vmem:[%s13667_s0 + $0x2e8] sm:$0xff] }
  0x65   :  { %8918 = vmatmul.mubr.msk.f32.gmra.mrb[12].mxu0 %vm383_vm2, %v3705_v22  ;;  %8481 = vmatprep.mubr.msk.f32.mxu1 %vm383_vm2, %v345_v56  ;;  %v359_v22 = vrot.slane %v10852_v61, 1  ;;  %v3718_v56 = vsel %vm1417_vm3, %v3716_v28, %v3717_v50  ;;  %v3725_v28 = vsel %vm1417_vm3, %v3722_v58, %v3724_v30  ;;  %v368_v29 = vrot.slane %v10899_v16, 1 }
  0x66   :  { %8920 = vmatprep.mubr.msk.f32.mxu0 %vm383_vm2, %v3708_v59  ;;  %v361_v59 = vrot.slane %v113_v60, 1  ;;  %v3732_v60 = vrot.slane %v10438_v48, 2 }
  0x68   :  { %8482 = vmatmul.mubr.msk.f32.gmra.mrb[48].mxu1 %vm383_vm2, %v347_v37  ;;  %v360_v37 = vsel %vm222_vm1, %v358_v21, %v359_v22  ;;  %v3728_v21 = vsel %vm1417_vm3, %v3726_v4, %v3727_v24  ;;  %v10956_v4 = vld [vmem:[%s13667_s0 + $0x320] sm:$0xff] }
  0x69   :  { %8921 = vmatmul.mubr.msk.f32.gmra.mrb[14].mxu0 %vm383_vm2, %v3710_v5  ;;  %8484 = vmatprep.mubr.msk.f32.mxu1 %vm383_vm2, %v350_v31  ;;  %v116_v5 = vld [vmem:[%s13667_s0 + $0x2e0] sm:$0x3]  ;;  %v3723_v31 = vsel %vm1417_vm3, %v3721_v57, %v3722_v58  ;;  %v371_v58 = vrot.slane %v119_v19, 1  ;;  %v379_v19 = vrot.slane %v10956_v4, 1 }
  0x6a   :  { %8923 = vmatprep.mubr.msk.f32.mxu0 %vm383_vm2, %v3713_v46  ;;  %v362_v46 = vsel %vm222_vm1, %v359_v22, %v361_v59  ;;  %v366_v50 = vrot.slane %v116_v5, 1  ;;  %v3731_v22 = vrot.slane %v10433_v44, 2 }
  0x6c   :  { %8485 = vmatmul.mubr.msk.f32.gmra.mrb[50].mxu1 %vm383_vm2, %v352_v15  ;;  %v365_v15 = vsel %vm222_vm1, %v363_v62, %v364_v38  ;;  %v367_v57 = vsel %vm222_vm1, %v364_v38, %v366_v50  ;;  %v122_v62 = vld [vmem:[%s13667_s0 + $0x310] sm:$0x3]  ;;  %v3733_v5 = vsel %vm1417_vm3, %v3731_v22, %v3732_v60  ;;  %v3736_v38 = vrot.slane %v10461_v9, 2 }
  0x6d   :  { %8924 = vmatmul.mubr.msk.f32.gmra.mrb[16].mxu0 %vm383_vm2, %v3715_v52  ;;  %8487 = vmatprep.mubr.msk.f32.mxu1 %vm383_vm2, %v355_v13  ;;  %v3729_v52 = vrot.slane %v10427_v43, 2  ;;  %v369_v13 = vrot.slane %v10904_v7, 1  ;;  %v10930_v43 = vld [vmem:[%s13667_s0 + $0x308] sm:$0xff] }
  0x6e   :  { %8926 = vmatprep.mubr.msk.f32.mxu0 %vm383_vm2, %v3718_v56  ;;  %v10925_v56 = vld [vmem:[%s13667_s0 + $0x300] sm:$0xff] }
  0x6f   :  { %v3730_v59 = vsel %vm1417_vm3, %v3727_v24, %v3729_v52  ;;  %v370_v30 = vsel %vm222_vm1, %v368_v29, %v369_v13  ;;  %v372_v24 = vsel %vm222_vm1, %v369_v13, %v371_v58  ;;  %v13763_v13 = vld [vmem:[#allocation7_spill] sm:$0xff] }
  0x70   :  { %8488 = vmatmul.mubr.msk.f32.gmra.mrb[52].mxu1 %vm383_vm2, %v357_v35  ;;  %v3734_v35 = vrot.slane %v10455_v0, 2  ;;  %v3737_v0 = vrot.slane %v10466_v10, 2 }
  0x71   :  { %8927 = vmatmul.mubr.msk.f32.gmra.mrb[18].mxu0 %vm383_vm2, %v3720_v41  ;;  %8490 = vmatprep.mubr.msk.f32.mxu1 %vm383_vm2, %v360_v37  ;;  %v373_v41 = vrot.slane %v10925_v56, 1  ;;  %v374_v37 = vrot.slane %v10930_v43, 1 }
  0x72   :  { %8929 = vmatprep.mubr.msk.f32.mxu0 %vm383_vm2, %v3723_v31  ;;  %v10951_v31 = vld [vmem:[%s13667_s0 + $0x318] sm:$0xff]  ;;  %v3738_v22 = vsel %vm1417_vm3, %v3736_v38, %v3737_v0 }
  0x73   :  { %v375_v50 = vsel %vm222_vm1, %v373_v41, %v374_v37  ;;  %v378_v29 = vrot.slane %v10951_v31, 1 }
  0x74   :  { %8491 = vmatmul.mubr.msk.f32.gmra.mrb[54].mxu1 %vm383_vm2, %v362_v46  ;;  %v3735_v46 = vsel %vm1417_vm3, %v3732_v60, %v3734_v35  ;;  %v13764_v60 = vld [vmem:[#allocation8_spill] sm:$0xff] }
  0x75   :  { %8930 = vmatmul.mubr.msk.f32.gmra.mrb[20].mxu0 %vm383_vm2, %v3725_v28  ;;  %8493 = vmatprep.mubr.msk.f32.mxu1 %vm383_vm2, %v365_v15  ;;  %v376_v28 = vrot.slane %v122_v62, 1  ;;  %v13762_v15 = vld [vmem:[#allocation6_spill] sm:$0xff]  ;;  %v3742_v58 = vrot.slane %v13764_v60, 2  ;;  %v380_v41 = vsel %vm222_vm1, %v378_v29, %v379_v19  ;;  %v13765_v62 = vld [vmem:[#allocation9_spill] sm:$0xff] }
  0x76   :  { %8932 = vmatprep.mubr.msk.f32.mxu0 %vm383_vm2, %v3728_v21  ;;  %v3739_v52 = vrot.slane %v13762_v15, 2  ;;  %v125_v21 = vld [vmem:[%s13667_s0 + $0x328] sm:$0x3]  ;;  %v13766_v15 = vld [vmem:[#allocation10_spill] sm:$0xff] }
  0x77   :  { %v377_v35 = vsel %vm222_vm1, %v374_v37, %v376_v28  ;;  %v3746_v6 = vrot.slane %v13766_v15, 2  ;;  %v11041_v15 = vld [vmem:[%s13667_s0 + $0x20] sm:$0xff] }
  0x78   :  { %8494 = vmatmul.mubr.msk.f32.gmra.mrb[56].mxu1 %vm383_vm2, %v367_v57  ;;  %v3741_v57 = vrot.slane %v13763_v13, 2 }
  0x79   :  { %8933 = vmatmul.mubr.msk.f32.gmra.mrb[22].mxu0 %vm383_vm2, %v3730_v59  ;;  %8496 = vmatprep.mubr.msk.f32.mxu1 %vm383_vm2, %v370_v30  ;;  %v381_v59 = vrot.slane %v125_v21, 1  ;;  %v3740_v30 = vsel %vm1417_vm3, %v3737_v0, %v3739_v52  ;;  %v13768_v52 = vld [vmem:[#allocation14_spill] sm:$0xff] }
  0x7a   :  { %8935 = vmatprep.mubr.msk.f32.mxu0 %vm383_vm2, %v3733_v5  ;;  %v3744_v5 = vrot.slane %v13765_v62, 2  ;;  %v3743_v38 = vsel %vm1417_vm3, %v3741_v57, %v3742_v58  ;;  %v3752_v29 = vrot.slane %v13768_v52, 2  ;;  %v3757_v57 = vrot.slane %v10610_v12, 2 }
  0x7b   :  { %v382_v37 = vsel %vm222_vm1, %v379_v19, %v381_v59  ;;  %v11000_v19 = vld [vmem:[%s13667_s0] sm:$0xff]  ;;  %v3761_v62 = vrot.slane %v10630_v39, 2 }
  0x7c   :  { %8497 = vmatmul.mubr.msk.f32.gmra.mrb[58].mxu1 %vm383_vm2, %v372_v24  ;;  %v13767_v24 = vld [vmem:[#allocation11_spill] sm:$0xff]  ;;  %v3745_v0 = vsel %vm1417_vm3, %v3742_v58, %v3744_v5  ;;  %v7288_v58 = vld [vmem:[%s13667_s0 + $0x1f0] sm:$0x3]  ;;  %v13769_v59 = vld [vmem:[#allocation5_spill] sm:$0xff]  ;;  %v3762_v5 = vrot.slane %v10635_v23, 2 }
  0x7d   :  { %8936 = vmatmul.mubr.msk.f32.gmra.mrb[24].mxu0 %vm383_vm2, %v3735_v46  ;;  %8499 = vmatprep.mubr.msk.f32.mxu1 %vm383_vm2, %v375_v50  ;;  %v3747_v60 = vrot.slane %v13767_v24, 2  ;;  %v3749_v46 = vrot.slane %v10546_v63, 2  ;;  %v3751_v50 = vrot.slane %v10562_v55, 2  ;;  %v11049_v24 = vld [vmem:[%s13667_s0 + $0x30] sm:$0xff] }
  0x7e   :  { %8938 = vmatprep.mubr.msk.f32.mxu0 %vm383_vm2, %v3738_v22  ;;  %v3756_v22 = vrot.slane %v10605_v32, 2 }
  0x7f   :  { %v3748_v28 = vsel %vm1417_vm3, %v3746_v6, %v3747_v60  ;;  %v3750_v63 = vsel %vm1417_vm3, %v3747_v60, %v3749_v46  ;;  %v3754_v6 = vrot.slane %v10586_v18, 2  ;;  %v3753_v21 = vsel %vm1417_vm3, %v3751_v50, %v3752_v29  ;;  %v11024_v18 = vld [vmem:[%s13667_s0 + $0x18] sm:$0xff] }
  0x80   :  { %8500 = vmatmul.mubr.msk.f32.gmra.mrb[60].mxu1 %vm383_vm2, %v377_v35  ;;  %v11016_v35 = vld [vmem:[%s13667_s0 + $0x8] sm:$0xff]  ;;  %v3766_v50 = vrot.slane %v10656_v42, 2 }
  0x81   :  { %8939 = vmatmul.mubr.msk.f32.gmra.mrb[26].mxu0 %vm383_vm2, %v3740_v30  ;;  %8502 = vmatprep.mubr.msk.f32.mxu1 %vm383_vm2, %v380_v41  ;;  %v3755_v60 = vsel %vm1417_vm3, %v3752_v29, %v3754_v6  ;;  %v3759_v30 = vrot.slane %v7288_v58, 2  ;;  %v3758_v41 = vsel %vm1417_vm3, %v3756_v22, %v3757_v57  ;;  %v3767_v29 = vrot.slane %v10661_v20, 2  ;;  %v11071_v6 = vld [vmem:[%s13667_s0 + $0x38] sm:$0xff] }
  0x82   :  { %8941 = vmatprep.mubr.msk.f32.mxu0 %vm383_vm2, %v3743_v38  ;;  %v7291_v38 = vld [vmem:[%s13667_s0 + $0x208] sm:$0x3] }
  0x83   :  { %v3764_v46 = vrot.slane %v7291_v38, 2  ;;  %v3768_v58 = vsel %vm1417_vm3, %v3766_v50, %v3767_v29  ;;  %v7300_v50 = vld [vmem:[%s13667_s0 + $0x250] sm:$0x3] }
  0x84   :  { %8503 = vmatmul.mubr.msk.f32.gmra.mrb[62].mxu1 %vm383_vm2, %v382_v37  ;;  %v11056_v37 = vld [vmem:[%s13668_s1 + $0xc] sm:$0xf] }
  0x85   :  { %8942 = vmatmul.mubr.msk.f32.gmra.mrb[28].mxu0 %vm383_vm2, %v3745_v0  ;;  %8507 = vmatprep.mubr.msk.f32.mxu1 %vm383_vm2, %v11000_v19  ;;  %v3760_v0 = vsel %vm1417_vm3, %v3757_v57, %v3759_v30  ;;  %v3765_v22 = vsel %vm1417_vm3, %v3762_v5, %v3764_v46  ;;  %v7297_v30 = vld [vmem:[%s13667_s0 + $0x238] sm:$0x3]  ;;  %v3776_v46 = vrot.slane %v10717_v27, 2 }
  0x86   :  { %8944 = vmatprep.mubr.msk.f32.mxu0 %vm383_vm2, %v3748_v28  ;;  %v3763_v28 = vsel %vm1417_vm3, %v3761_v62, %v3762_v5  ;;  %v11102_v62 = vld [vmem:[%s13667_s0 + $0x60] sm:$0xff]  ;;  %v3774_v38 = vrot.slane %v7297_v30, 2  ;;  %v3782_v30 = vrot.slane %v10748_v53, 2 }
  0x88   :  { %8508 = vmatmul.mubr.msk.f32.vlgmr.msra.gmra.mrb[0].mxu1 %vm383_vm2, %v11016_v35 }
  0x89   :  { %8945 = vmatmul.mubr.msk.f32.gmra.mrb[30].mxu0 %vm383_vm2, %v3750_v63  ;;  %8510 = vmatprep.mubr.msk.f32.mxu1 %vm383_vm2, %v11024_v18  ;;  %v7294_v63 = vld [vmem:[%s13667_s0 + $0x220] sm:$0x3] }
  0x8a   :  { %8947 = vmatprep.mubr.msk.f32.mxu0 %vm383_vm2, %v3753_v21  ;;  %8604 = vmatpush3.msk.msra.mxu1 %vm512_vm0, %v13769_v59  ;;  %v11079_v21 = vld [vmem:[%s13667_s0 + $0x48] sm:$0xff]  ;;  %v3769_v57 = vrot.slane %v7294_v63, 2  ;;  %v3772_v59 = vrot.slane %v10694_v14, 2 }
  0x8b   :  { %8701 = vmatprep.subr.msk.mxu1 %vm512_vm0, %v11056_v37  ;;  %v11117_v63 = vld [vmem:[%s13667_s0 + $0x68] sm:$0xff] }
  0x8c   :  { %8511 = vmatmul.mubr.msk.f32.gmra.mrb[2].mxu1 %vm383_vm2, %v11041_v15  ;;  %v3770_v5 = vsel %vm1417_vm3, %v3767_v29, %v3769_v57  ;;  %13770 = vst [vmem:[#allocation6_spill] sm:$0xff] %v11117_v63  ;;  %v11125_v29 = vld [vmem:[%s13667_s0 + $0x78] sm:$0xff]  ;;  %v3779_v57 = vrot.slane %v7300_v50, 2  ;;  %v3786_v50 = vrot.slane %v10769_v17, 2 }
  0x8d   :  { %8948 = vmatmul.mubr.msk.f32.gmra.mrb[32].mxu0 %vm383_vm2, %v3755_v60  ;;  %8513 = vmatprep.mubr.msk.f32.mxu1 %vm383_vm2, %v11049_v24  ;;  %v3771_v60 = vrot.slane %v10689_v49, 2  ;;  %13771 = vst [vmem:[#allocation7_spill] sm:$0xff] %v11125_v29 }
  0x8e   :  { %8950 = vmatprep.mubr.msk.f32.mxu0 %vm383_vm2, %v3758_v41  ;;  %v11094_v41 = vld [vmem:[%s13667_s0 + $0x50] sm:$0xff] }
  0x90   :  { %8514 = vmatmul.mubr.msk.f32.gmra.mrb[4].mxu1 %vm383_vm2, %v11071_v6 }
  0x91   :  { %8951 = vmatmul.mubr.msk.f32.gmra.mrb[34].mxu0 %vm383_vm2, %v3760_v0  ;;  %8516 = vmatprep.mubr.msk.f32.mxu1 %vm383_vm2, %v11079_v21  ;;  %v3773_v0 = vsel %vm1417_vm3, %v3771_v60, %v3772_v59  ;;  %v3781_v60 = vrot.slane %v10743_v33, 2 }
  0x92   :  { %8953 = vmatprep.mubr.msk.f32.mxu0 %vm383_vm2, %v3763_v28  ;;  %v3777_v28 = vrot.slane %v10722_v45, 2 }
  0x94   :  { %8517 = vmatmul.mubr.msk.f32.gmra.mrb[6].mxu1 %vm383_vm2, %v11094_v41 }
  0x95   :  { %8954 = vmatmul.mubr.msk.f32.gmra.mrb[36].mxu0 %vm383_vm2, %v3765_v22  ;;  %8519 = vmatprep.mubr.msk.f32.mxu1 %vm383_vm2, %v11102_v62  ;;  %v3775_v22 = vsel %vm1417_vm3, %v3772_v59, %v3774_v38  ;;  %v11148_v59 = vld [vmem:[%s13667_s0 + $0x90] sm:$0xff]  ;;  %v3780_v38 = vsel %vm1417_vm3, %v3777_v28, %v3779_v57 }
  0x96   :  { %8956 = vmatprep.mubr.msk.f32.mxu0 %vm383_vm2, %v3768_v58  ;;  %v3778_v58 = vsel %vm1417_vm3, %v3776_v46, %v3777_v28  ;;  %13773 = vst [vmem:[#allocation10_spill] sm:$0xff] %v11148_v59  ;;  %v3783_v46 = vsel %vm1417_vm3, %v3781_v60, %v3782_v30  ;;  %v11171_v28 = vld [vmem:[%s13667_s0 + $0xa8] sm:$0xff] }
  0x97   :  { %13775 = vst [vmem:[#allocation14_spill] sm:$0xff] %v11171_v28 }
  0x98   :  { %8520 = vmatmul.mubr.msk.f32.gmra.mrb[8].mxu1 %vm383_vm2, %v11117_v63  ;;  %v11140_v63 = vld [vmem:[%s13667_s0 + $0x80] sm:$0xff] }
  0x99   :  { %8957 = vmatmul.mubr.msk.f32.gmra.mrb[38].mxu0 %vm383_vm2, %v3770_v5  ;;  %8522 = vmatprep.mubr.msk.f32.mxu1 %vm383_vm2, %v11125_v29  ;;  %v7303_v5 = vld [vmem:[%s13667_s0 + $0x268] sm:$0x3]  ;;  %13772 = vst [vmem:[#allocation9_spill] sm:$0xff] %v11140_v63  ;;  %v11163_v29 = vld [vmem:[%s13667_s0 + $0x98] sm:$0xff] }
  0x9a   :  { %8959 = vmatprep.mubr.msk.f32.mxu0 %vm383_vm2, %v3773_v0  ;;  %v3784_v0 = vrot.slane %v7303_v5, 2  ;;  %13774 = vst [vmem:[#allocation11_spill] sm:$0xff] %v11163_v29  ;;  %v3791_v5 = vrot.slane %v10795_v54, 2 }
  0x9c   :  { %8523 = vmatmul.mubr.msk.f32.gmra.mrb[10].mxu1 %vm383_vm2, %v11140_v63  ;;  %v3787_v63 = vrot.slane %v10774_v3, 2  ;;  %v3785_v57 = vsel %vm1417_vm3, %v3782_v30, %v3784_v0  ;;  %v11194_v30 = vld [vmem:[%s13667_s0 + $0xc0] sm:$0xff] }
  0x9d   :  { %8960 = vmatmul.mubr.msk.f32.gmra.mrb[40].mxu0 %vm383_vm2, %v3775_v22  ;;  %8525 = vmatprep.mubr.msk.f32.mxu1 %vm383_vm2, %v11148_v59  ;;  %v7306_v22 = vld [vmem:[%s13667_s0 + $0x280] sm:$0x3]  ;;  %v11186_v59 = vld [vmem:[%s13667_s0 + $0xb0] sm:$0xff]  ;;  %13777 = vst [vmem:[#allocation16_spill] sm:$0xff] %v11194_v30 }
  0x9e   :  { %8962 = vmatprep.mubr.msk.f32.mxu0 %vm383_vm2, %v3778_v58  ;;  %v3789_v58 = vrot.slane %v7306_v22, 2  ;;  %v3788_v60 = vsel %vm1417_vm3, %v3786_v50, %v3787_v63  ;;  %13776 = vst [vmem:[#allocation5_spill] sm:$0xff] %v11186_v59  ;;  %v3796_v22 = vrot.slane %v10821_v40, 2 }
  0xa0   :  { %8526 = vmatmul.mubr.msk.f32.gmra.mrb[12].mxu1 %vm383_vm2, %v11163_v29  ;;  %v3792_v29 = vrot.slane %v10800_v11, 2  ;;  %v3790_v0 = vsel %vm1417_vm3, %v3787_v63, %v3789_v58  ;;  %v11217_v63 = vld [vmem:[%s13667_s0 + $0xd8] sm:$0xff] }
  0xa1   :  { %8963 = vmatmul.mubr.msk.f32.gmra.mrb[42].mxu0 %vm383_vm2, %v3780_v38  ;;  %8528 = vmatprep.mubr.msk.f32.mxu1 %vm383_vm2, %v11171_v28  ;;  %v7309_v38 = vld [vmem:[%s13667_s0 + $0x298] sm:$0x3]  ;;  %v11209_v28 = vld [vmem:[%s13667_s0 + $0xc8] sm:$0xff] }
  0xa2   :  { %8965 = vmatprep.mubr.msk.f32.mxu0 %vm383_vm2, %v3783_v46  ;;  %v3794_v46 = vrot.slane %v7309_v38, 2  ;;  %v3793_v50 = vsel %vm1417_vm3, %v3791_v5, %v3792_v29  ;;  %13778 = vst [vmem:[#allocation17_spill] sm:$0xff] %v11209_v28  ;;  %v3801_v38 = vrot.slane %v10847_v47, 2 }
  0xa4   :  { %8529 = vmatmul.mubr.msk.f32.gmra.mrb[14].mxu1 %vm383_vm2, %v11186_v59  ;;  %v3797_v59 = vrot.slane %v10826_v36, 2  ;;  %v3795_v58 = vsel %vm1417_vm3, %v3792_v29, %v3794_v46 }
  0xa5   :  { %8966 = vmatmul.mubr.msk.f32.gmra.mrb[44].mxu0 %vm383_vm2, %v3785_v57  ;;  %8531 = vmatprep.mubr.msk.f32.mxu1 %vm383_vm2, %v11194_v30  ;;  %v7312_v57 = vld [vmem:[%s13667_s0 + $0x2b0] sm:$0x3]  ;;  %v11232_v30 = vld [vmem:[%s13667_s0 + $0xe0] sm:$0xff] }
  0xa6   :  { %8968 = vmatprep.mubr.msk.f32.mxu0 %vm383_vm2, %v3788_v60  ;;  %v3799_v60 = vrot.slane %v7312_v57, 2  ;;  %v3798_v5 = vsel %vm1417_vm3, %v3796_v22, %v3797_v59  ;;  %13779 = vst [vmem:[#allocation18_spill] sm:$0xff] %v11232_v30  ;;  %v3806_v22 = vrot.slane %v10873_v34, 2  ;;  %v3807_v57 = vrot.slane %v10878_v1, 2 }
  0xa8   :  { %8532 = vmatmul.mubr.msk.f32.gmra.mrb[16].mxu1 %vm383_vm2, %v11209_v28  ;;  %v3802_v28 = vrot.slane %v10852_v61, 2  ;;  %v3800_v29 = vsel %vm1417_vm3, %v3797_v59, %v3799_v60  ;;  %v3808_v60 = vsel %vm1417_vm3, %v3806_v22, %v3807_v57 }
  0xa9   :  { %8969 = vmatmul.mubr.msk.f32.gmra.mrb[46].mxu0 %vm383_vm2, %v3790_v0  ;;  %8534 = vmatprep.mubr.msk.f32.mxu1 %vm383_vm2, %v11217_v63  ;;  %v7315_v0 = vld [vmem:[%s13667_s0 + $0x2c8] sm:$0x3] }
  0xaa   :  { %8971 = vmatprep.mubr.msk.f32.mxu0 %vm383_vm2, %v3793_v50  ;;  %v3804_v46 = vrot.slane %v7315_v0, 2  ;;  %v3803_v50 = vsel %vm1417_vm3, %v3801_v38, %v3802_v28  ;;  %v3812_v38 = vrot.slane %v10904_v7, 2  ;;  %v7321_v0 = vld [vmem:[%s13667_s0 + $0x2f8] sm:$0x3] }
  0xac   :  { %8535 = vmatmul.mubr.msk.f32.gmra.mrb[18].mxu1 %vm383_vm2, %v11232_v30  ;;  %v7318_v30 = vld [vmem:[%s13667_s0 + $0x2e0] sm:$0x3] }
  0xad   :  { %8972 = vmatmul.mubr.msk.f32.gmra.mrb[48].mxu0 %vm383_vm2, %v3795_v58  ;;  %8537 = vmatprep.mubr.msk.f32.mxu1 %vm383_vm2, %v10342_v51  ;;  %v11250_v58 = vld [vmem:[%s13667_s0 + $0xf8] sm:$0xff]  ;;  %v3805_v51 = vsel %vm1417_vm3, %v3802_v28, %v3804_v46  ;;  %v3809_v59 = vrot.slane %v7318_v30, 2  ;;  %v3814_v28 = vrot.slane %v7321_v0, 2  ;;  %v3817_v46 = vrot.slane %v10930_v43, 2 }
  0xae   :  { %8974 = vmatprep.mubr.msk.f32.mxu0 %vm383_vm2, %v3798_v5  ;;  %v3811_v5 = vrot.slane %v10899_v16, 2 }
  0xb0   :  { %8538 = vmatmul.mubr.msk.f32.gmra.mrb[20].mxu1 %vm383_vm2, %v11250_v58  ;;  %v3813_v30 = vsel %vm1417_vm3, %v3811_v5, %v3812_v38 }
  0xb1   :  { %8975 = vmatmul.mubr.msk.f32.gmra.mrb[50].mxu0 %vm383_vm2, %v3800_v29  ;;  %8540 = vmatprep.mubr.msk.f32.mxu1 %vm383_vm2, %v10377_v2  ;;  %v3810_v2 = vsel %vm1417_vm3, %v3807_v57, %v3809_v59  ;;  %v3816_v29 = vrot.slane %v10925_v56, 2  ;;  %v3821_v57 = vrot.slane %v10951_v31, 2  ;;  %v11301_v59 = vld [vmem:[%s13667_s0 + $0x338] sm:$0xff] }
  0xb2   :  { %8977 = vmatprep.mubr.msk.f32.mxu0 %vm383_vm2, %v3803_v50  ;;  %v11311_v0 = vrot.slane %v11301_v59, 2 }
  0xb3   :  { %v3818_v22 = vsel %vm1417_vm3, %v3816_v29, %v3817_v46  ;;  %v13782_v29 = vld [vmem:[#allocation8_spill] sm:$0xff] }
  0xb4   :  { %8541 = vmatmul.mubr.msk.f32.gmra.mrb[22].mxu1 %vm383_vm2, %v10382_v8  ;;  %v7324_v8 = vld [vmem:[%s13667_s0 + $0x310] sm:$0x3]  ;;  %13780 = vst [vmem:[#allocation19_spill] sm:$0xff] %v11311_v0 }
  0xb5   :  { %8978 = vmatmul.mubr.msk.f32.gmra.mrb[52].mxu0 %vm383_vm2, %v3805_v51  ;;  %8543 = vmatprep.mubr.msk.f32.mxu1 %vm383_vm2, %v10405_v25  ;;  %v3815_v25 = vsel %vm1417_vm3, %v3812_v38, %v3814_v28  ;;  %v3819_v50 = vrot.slane %v7324_v8, 2  ;;  %v3822_v51 = vrot.slane %v10956_v4, 2  ;;  %v13784_v8 = vld [vmem:[#allocation13_spill] sm:$0xff] }
  0xb6   :  { %8980 = vmatprep.mubr.msk.f32.mxu0 %vm383_vm2, %v3808_v60 }
  0xb7   :  { %v3820_v60 = vsel %vm1417_vm3, %v3817_v46, %v3819_v50  ;;  %v3823_v5 = vsel %vm1417_vm3, %v3821_v57, %v3822_v51  ;;  %v11339_v46 = vld [vmem:[%s13667_s0 + $0x30] sm:$0xff]  ;;  %v11356_v50 = vld [vmem:[%s13667_s0 + $0x48] sm:$0xff]  ;;  %v11381_v57 = vld [vmem:[%s13667_s0 + $0x60] sm:$0xff] }
  0xb8   :  { %8544 = vmatmul.mubr.msk.f32.gmra.mrb[24].mxu1 %vm383_vm2, %v10410_v26  ;;  %v7327_v26 = vld [vmem:[%s13667_s0 + $0x328] sm:$0x3] }
  0xb9   :  { %8981 = vmatmul.mubr.msk.f32.gmra.mrb[54].mxu0 %vm383_vm2, %v3810_v2  ;;  %8546 = vmatprep.mubr.msk.f32.mxu1 %vm383_vm2, %v10433_v44  ;;  %v11296_v44 = vld [vmem:[%s13667_s0 + $0x330] sm:$0xff]  ;;  %v7330_v2 = vld [vmem:[%s13667_s0 + $0x340] sm:$0x3] }
  0xba   :  { %8983 = vmatprep.mubr.msk.f32.mxu0 %vm383_vm2, %v3813_v30  ;;  %v3826_v38 = vrot.slane %v11296_v44, 2  ;;  %v3829_v28 = vrot.slane %v7330_v2, 2  ;;  %v1428_v2 = vrot.slane %v11049_v24, 2  ;;  %v9834_v24 = vld [vmem:[%s13667_s0 + $0x40] sm:$0x3] }
  0xbc   :  { %8547 = vmatmul.mubr.msk.f32.gmra.mrb[26].mxu1 %vm383_vm2, %v10438_v48  ;;  %v3824_v48 = vrot.slane %v7327_v26, 2  ;;  %v11325_v30 = vsel %vm1417_vm3, %v3826_v38, %v11311_v0  ;;  %v1419_v26 = vrot.slane %v11016_v35, 2  ;;  %v1423_v35 = vrot.slane %v11024_v18, 2  ;;  %v9833_v18 = vld [vmem:[%s13667_s0 + $0x28] sm:$0x3]  ;;  %v11641_v38 = vld [vmem:[%s13667_s0 + $0x1a0] sm:$0xff] }
  0xbd   :  { %8984 = vmatmul.mubr.msk.f32.gmra.mrb[56].mxu0 %vm383_vm2, %v3815_v25  ;;  %8549 = vmatprep.mubr.msk.f32.mxu1 %vm383_vm2, %v10461_v9  ;;  %13781 = vst [vmem:[#allocation20_spill] sm:$0xff] %v11325_v30  ;;  %v11351_v25 = vld [vmem:[%s13667_s0 + $0x38] sm:$0xff] }
  0xbe   :  { %8986 = vmatprep.mubr.msk.f32.mxu0 %vm383_vm2, %v3818_v22  ;;  %v3825_v9 = vsel %vm1417_vm3, %v3822_v51, %v3824_v48  ;;  %v13785_v22 = vld [vmem:[#allocation15_spill] sm:$0xff]  ;;  %v1424_v48 = vrot.slane %v11041_v15, 2  ;;  %v1426_v15 = vrot.slane %v9833_v18, 2 }
  0xbf   :  { %v11401_v51 = vld [vmem:[%s13667_s0 + $0x78] sm:$0xff] }
  0xc0   :  { %8550 = vmatmul.mubr.msk.f32.gmra.mrb[28].mxu1 %vm383_vm2, %v10466_v10  ;;  %v13783_v10 = vld [vmem:[#allocation12_spill] sm:$0xff] }
  0xc1   :  { %8987 = vmatmul.mubr.msk.f32.gmra.mrb[58].mxu0 %vm383_vm2, %v3820_v60  ;;  %8552 = vmatprep.mubr.msk.f32.mxu1 %vm383_vm2, %v13763_v13  ;;  %v3830_v13 = vsel %vm1417_vm3, %v11311_v0, %v3829_v28  ;;  %v11649_v28 = vld [vmem:[%s13667_s0 + $0x1e0] sm:$0xff] }
  0xc2   :  { %8989 = vmatprep.mubr.msk.f32.mxu0 %vm383_vm2, %v3823_v5  ;;  %v11625_v5 = vld [vmem:[%s13667_s0 + $0x198] sm:$0xff] }
  0xc4   :  { %8553 = vmatmul.mubr.msk.f32.gmra.mrb[30].mxu1 %vm383_vm2, %v13782_v29  ;;  %v1427_v29 = vsel %vm1417_vm3, %v1424_v48, %v1426_v15 }
  0xc5   :  { %8990 = vmatmul.mubr.msk.f32.gmra.mrb[60].mxu0 %vm383_vm2, %v3825_v9  ;;  %8555 = vmatprep.mubr.msk.f32.mxu1 %vm383_vm2, %v13783_v10  ;;  %v1429_v9 = vrot.slane %v11071_v6, 2  ;;  %v1431_v10 = vrot.slane %v9834_v24, 2  ;;  %v11664_v6 = vld [vmem:[%s13667_s0 + $0x1e8] sm:$0xff] }
  0xc6   :  { %8992 = vmatprep.mubr.msk.f32.mxu0 %vm383_vm2, %v11325_v30  ;;  %v13788_v24 = vld [vmem:[#allocation9_spill] sm:$0xff] }
  0xc8   :  { %8556 = vmatmul.mubr.msk.f32.gmra.mrb[32].mxu1 %vm383_vm2, %v13784_v8  ;;  %v1433_v8 = vrot.slane %v11079_v21, 2  ;;  %v9836_v21 = vld [vmem:[%s13667_s0 + $0x58] sm:$0x3] }
  0xc9   :  { %8993 = vmatmul.mubr.msk.f32.gmra.mrb[62].mxu0 %vm383_vm2, %v3830_v13  ;;  %8558 = vmatprep.mubr.msk.f32.mxu1 %vm383_vm2, %v10562_v55  ;;  %v11363_v55 = vld [vmem:[%s13668_s1 + $0x20] sm:$0xf]  ;;  %v1430_v13 = vsel %vm1417_vm3, %v1428_v2, %v1429_v9 }
  0xca   :  { %8997 = vmatprep.mubr.msk.f32.mxu0 %vm383_vm2, %v11339_v46 }
  0xcc   :  { %8559 = vmatmul.mubr.msk.f32.gmra.mrb[34].mxu1 %vm383_vm2, %v13768_v52  ;;  %v11376_v52 = vld [vmem:[%s13667_s0 + $0x50] sm:$0xff] }
  0xcd   :  { %8998 = vmatmul.mubr.msk.f32.vlgmr.msra.gmra.mrb[0].mxu0 %vm383_vm2, %v11351_v25  ;;  %8561 = vmatprep.mubr.msk.f32.mxu1 %vm383_vm2, %v10605_v32  ;;  %v11396_v32 = vld [vmem:[%s13667_s0 + $0x68] sm:$0xff] }
  0xce   :  { %9094 = vmatpush3.msk.msra.mxu0 %vm512_vm0, %v13785_v22  ;;  %9000 = vmatprep.mubr.msk.f32.mxu0 %vm383_vm2, %v11356_v50  ;;  %v1434_v22 = vrot.slane %v11094_v41, 2  ;;  %v1436_v41 = vrot.slane %v9836_v21, 2  ;;  %v11742_v21 = vld [vmem:[%s13667_s0 + $0x230] sm:$0xff] }
  0xcf   :  { %9191 = vmatprep.subr.msk.mxu0 %vm512_vm0, %v11363_v55 }
  0xd0   :  { %8562 = vmatmul.mubr.msk.f32.gmra.mrb[36].mxu1 %vm383_vm2, %v10610_v12  ;;  %v11414_v12 = vld [vmem:[%s13667_s0 + $0x80] sm:$0xff]  ;;  %v1437_v18 = vsel %vm1417_vm3, %v1434_v22, %v1436_v41 }
  0xd1   :  { %9001 = vmatmul.mubr.msk.f32.gmra.mrb[2].mxu0 %vm383_vm2, %v11376_v52  ;;  %8564 = vmatprep.mubr.msk.f32.mxu1 %vm383_vm2, %v10630_v39  ;;  %v11419_v39 = vld [vmem:[%s13667_s0 + $0x90] sm:$0xff] }
  0xd2   :  { %9003 = vmatprep.mubr.msk.f32.mxu0 %vm383_vm2, %v11381_v57 }
  0xd4   :  { %8565 = vmatmul.mubr.msk.f32.gmra.mrb[38].mxu1 %vm383_vm2, %v10635_v23  ;;  %v11432_v23 = vld [vmem:[%s13667_s0 + $0x98] sm:$0xff] }
  0xd5   :  { %9004 = vmatmul.mubr.msk.f32.gmra.mrb[4].mxu0 %vm383_vm2, %v11396_v32  ;;  %8567 = vmatprep.mubr.msk.f32.mxu1 %vm383_vm2, %v10656_v42  ;;  %v11437_v42 = vld [vmem:[%s13667_s0 + $0xa8] sm:$0xff] }
  0xd6   :  { %9006 = vmatprep.mubr.msk.f32.mxu0 %vm383_vm2, %v11401_v51 }
  0xd8   :  { %8568 = vmatmul.mubr.msk.f32.gmra.mrb[40].mxu1 %vm383_vm2, %v10661_v20  ;;  %v11450_v20 = vld [vmem:[%s13667_s0 + $0xb0] sm:$0xff] }
  0xd9   :  { %9007 = vmatmul.mubr.msk.f32.gmra.mrb[6].mxu0 %vm383_vm2, %v11414_v12  ;;  %8570 = vmatprep.mubr.msk.f32.mxu1 %vm383_vm2, %v10689_v49  ;;  %v11455_v49 = vld [vmem:[%s13667_s0 + $0xc0] sm:$0xff] }
  0xda   :  { %9009 = vmatprep.mubr.msk.f32.mxu0 %vm383_vm2, %v11419_v39 }
  0xdc   :  { %8571 = vmatmul.mubr.msk.f32.gmra.mrb[42].mxu1 %vm383_vm2, %v10694_v14  ;;  %v11468_v14 = vld [vmem:[%s13667_s0 + $0xc8] sm:$0xff] }
  0xdd   :  { %9010 = vmatmul.mubr.msk.f32.gmra.mrb[8].mxu0 %vm383_vm2, %v11432_v23  ;;  %8573 = vmatprep.mubr.msk.f32.mxu1 %vm383_vm2, %v10717_v27  ;;  %v11473_v27 = vld [vmem:[%s13667_s0 + $0xd8] sm:$0xff] }
  0xde   :  { %9012 = vmatprep.mubr.msk.f32.mxu0 %vm383_vm2, %v11437_v42 }
  0xe0   :  { %8574 = vmatmul.mubr.msk.f32.gmra.mrb[44].mxu1 %vm383_vm2, %v10722_v45  ;;  %v11486_v45 = vld [vmem:[%s13667_s0 + $0xe0] sm:$0xff] }
  0xe1   :  { %9013 = vmatmul.mubr.msk.f32.gmra.mrb[10].mxu0 %vm383_vm2, %v11450_v20  ;;  %8576 = vmatprep.mubr.msk.f32.mxu1 %vm383_vm2, %v10743_v33  ;;  %v11491_v33 = vld [vmem:[%s13667_s0 + $0xf0] sm:$0xff] }
  0xe2   :  { %9015 = vmatprep.mubr.msk.f32.mxu0 %vm383_vm2, %v11455_v49 }
  0xe4   :  { %8577 = vmatmul.mubr.msk.f32.gmra.mrb[46].mxu1 %vm383_vm2, %v10748_v53  ;;  %v11504_v53 = vld [vmem:[%s13667_s0 + $0xf8] sm:$0xff] }
  0xe5   :  { %9016 = vmatmul.mubr.msk.f32.gmra.mrb[12].mxu0 %vm383_vm2, %v11468_v14  ;;  %8579 = vmatprep.mubr.msk.f32.mxu1 %vm383_vm2, %v10769_v17  ;;  %v11509_v17 = vld [vmem:[%s13667_s0 + $0x108] sm:$0xff] }
  0xe6   :  { %9018 = vmatprep.mubr.msk.f32.mxu0 %vm383_vm2, %v11473_v27 }
  0xe8   :  { %8580 = vmatmul.mubr.msk.f32.gmra.mrb[48].mxu1 %vm383_vm2, %v10774_v3  ;;  %v11522_v3 = vld [vmem:[%s13667_s0 + $0x110] sm:$0xff] }
  0xe9   :  { %9019 = vmatmul.mubr.msk.f32.gmra.mrb[14].mxu0 %vm383_vm2, %v11486_v45  ;;  %8582 = vmatprep.mubr.msk.f32.mxu1 %vm383_vm2, %v10795_v54  ;;  %v11527_v54 = vld [vmem:[%s13667_s0 + $0x120] sm:$0xff] }
  0xea   :  { %9021 = vmatprep.mubr.msk.f32.mxu0 %vm383_vm2, %v11491_v33 }
  0xec   :  { %8583 = vmatmul.mubr.msk.f32.gmra.mrb[50].mxu1 %vm383_vm2, %v10800_v11  ;;  %v11540_v11 = vld [vmem:[%s13667_s0 + $0x128] sm:$0xff] }
  0xed   :  { %9022 = vmatmul.mubr.msk.f32.gmra.mrb[16].mxu0 %vm383_vm2, %v11504_v53  ;;  %8585 = vmatprep.mubr.msk.f32.mxu1 %vm383_vm2, %v10821_v40  ;;  %v11545_v40 = vld [vmem:[%s13667_s0 + $0x138] sm:$0xff] }
  0xee   :  { %9024 = vmatprep.mubr.msk.f32.mxu0 %vm383_vm2, %v11509_v17 }
  0xf0   :  { %8586 = vmatmul.mubr.msk.f32.gmra.mrb[52].mxu1 %vm383_vm2, %v10826_v36  ;;  %v11558_v36 = vld [vmem:[%s13667_s0 + $0x140] sm:$0xff] }
  0xf1   :  { %9025 = vmatmul.mubr.msk.f32.gmra.mrb[18].mxu0 %vm383_vm2, %v11522_v3  ;;  %8588 = vmatprep.mubr.msk.f32.mxu1 %vm383_vm2, %v10847_v47  ;;  %v11563_v47 = vld [vmem:[%s13667_s0 + $0x150] sm:$0xff] }
  0xf2   :  { %9027 = vmatprep.mubr.msk.f32.mxu0 %vm383_vm2, %v11527_v54 }
  0xf4   :  { %8589 = vmatmul.mubr.msk.f32.gmra.mrb[54].mxu1 %vm383_vm2, %v10852_v61  ;;  %v11576_v61 = vld [vmem:[%s13667_s0 + $0x158] sm:$0xff] }
  0xf5   :  { %9028 = vmatmul.mubr.msk.f32.gmra.mrb[20].mxu0 %vm383_vm2, %v11540_v11  ;;  %8591 = vmatprep.mubr.msk.f32.mxu1 %vm383_vm2, %v10873_v34  ;;  %v11581_v34 = vld [vmem:[%s13667_s0 + $0x168] sm:$0xff] }
  0xf6   :  { %9030 = vmatprep.mubr.msk.f32.mxu0 %vm383_vm2, %v11545_v40 }
  0xf8   :  { %8592 = vmatmul.mubr.msk.f32.gmra.mrb[56].mxu1 %vm383_vm2, %v10878_v1  ;;  %v11594_v1 = vld [vmem:[%s13667_s0 + $0x170] sm:$0xff] }
  0xf9   :  { %9031 = vmatmul.mubr.msk.f32.gmra.mrb[22].mxu0 %vm383_vm2, %v11558_v36  ;;  %8594 = vmatprep.mubr.msk.f32.mxu1 %vm383_vm2, %v10899_v16  ;;  %v1418_v16 = vrot.slane %v11000_v19, 2  ;;  %v11617_v19 = vld [vmem:[%s13667_s0 + $0x188] sm:$0xff] }
  0xfa   :  { %9033 = vmatprep.mubr.msk.f32.mxu0 %vm383_vm2, %v11563_v47 }
  0xfc   :  { %8595 = vmatmul.mubr.msk.f32.gmra.mrb[58].mxu1 %vm383_vm2, %v10904_v7  ;;  %v11601_v7 = vld [vmem:[%s13667_s0 + $0x180] sm:$0xff] }
  0xfd   :  { %9034 = vmatmul.mubr.msk.f32.gmra.mrb[24].mxu0 %vm383_vm2, %v11576_v61  ;;  %8597 = vmatprep.mubr.msk.f32.mxu1 %vm383_vm2, %v10925_v56  ;;  %v9832_v56 = vld [vmem:[%s13667_s0 + $0x10] sm:$0x3] }
  0xfe   :  { %9036 = vmatprep.mubr.msk.f32.mxu0 %vm383_vm2, %v11581_v34  ;;  %v1421_v60 = vrot.slane %v9832_v56, 2  ;;  %v11696_v56 = vld [vmem:[%s13667_s0 + $0x200] sm:$0xff] }
 0x100   :  { %8598 = vmatmul.mubr.msk.f32.gmra.mrb[60].mxu1 %vm383_vm2, %v10930_v43  ;;  %v1420_v43 = vsel %vm1417_vm3, %v1418_v16, %v1419_v26  ;;  %v11674_v16 = vld [vmem:[%s13667_s0 + $0x1f8] sm:$0xff] }
 0x101   :  { %9037 = vmatmul.mubr.msk.f32.gmra.mrb[26].mxu0 %vm383_vm2, %v11594_v1  ;;  %8600 = vmatprep.mubr.msk.f32.mxu1 %vm383_vm2, %v10951_v31  ;;  %v1422_v31 = vsel %vm1417_vm3, %v1419_v26, %v1421_v60  ;;  %v11679_v26 = vld [vmem:[%s13668_s1 + $0x10] sm:$0xf]  ;;  %v1435_v60 = vsel %vm1417_vm3, %v1433_v8, %v1434_v22  ;;  %v9838_v22 = vld [vmem:[%s13667_s0 + $0x88] sm:$0x3] }
 0x102   :  { %9039 = vmatprep.mubr.msk.f32.mxu0 %vm383_vm2, %v11601_v7 }
 0x104   :  { %8601 = vmatmul.mubr.msk.f32.gmra.mrb[62].mxu1 %vm383_vm2, %v10956_v4  ;;  %v1425_v4 = vsel %vm1417_vm3, %v1423_v35, %v1424_v48  ;;  %v13786_v35 = vld [vmem:[#allocation6_spill] sm:$0xff] }
 0x105   :  { %9040 = vmatmul.mubr.msk.f32.gmra.mrb[28].mxu0 %vm383_vm2, %v11617_v19  ;;  %8605 = vmatprep.mubr.msk.f32.mxu1 %vm383_vm2, %v1420_v43  ;;  %v1438_v43 = vrot.slane %v11102_v62, 2  ;;  %v1439_v48 = vrot.slane %v13786_v35, 2  ;;  %v9837_v62 = vld [vmem:[%s13667_s0 + $0x70] sm:$0x3]  ;;  %v13790_v35 = vld [vmem:[#allocation11_spill] sm:$0xff] }
 0x106   :  { %9042 = vmatprep.mubr.msk.f32.mxu0 %vm383_vm2, %v11625_v5  ;;  %v1441_v15 = vrot.slane %v9837_v62, 2 }
 0x107   :  { %v1440_v2 = vsel %vm1417_vm3, %v1438_v43, %v1439_v48 }
 0x108   :  { %8606 = vmatmul.mubr.msk.f32.vlgmr.msra.gmra.mrb[0].mxu1 %vm383_vm2, %v1422_v31  ;;  %v11704_v31 = vld [vmem:[%s13667_s0 + $0x210] sm:$0xff]  ;;  %v1442_v8 = vsel %vm1417_vm3, %v1439_v48, %v1441_v15  ;;  %v11750_v48 = vld [vmem:[%s13667_s0 + $0x240] sm:$0xff] }
 0x109   :  { %9043 = vmatmul.mubr.msk.f32.gmra.mrb[30].mxu0 %vm383_vm2, %v11641_v38  ;;  %8608 = vmatprep.mubr.msk.f32.mxu1 %vm383_vm2, %v1425_v4  ;;  %v11719_v4 = vld [vmem:[%s13667_s0 + $0x218] sm:$0xff]  ;;  %v9839_v15 = vld [vmem:[%s13667_s0 + $0xa0] sm:$0x3] }
 0x10a   :  { %9045 = vmatprep.mubr.msk.f32.mxu0 %vm383_vm2, %v11649_v28  ;;  %8702 = vmatpush3.msk.msra.mxu1 %vm512_vm0, %v11056_v37  ;;  %v1432_v37 = vsel %vm1417_vm3, %v1429_v9, %v1431_v10  ;;  %v13787_v9 = vld [vmem:[#allocation7_spill] sm:$0xff]  ;;  %v1444_v10 = vrot.slane %v13788_v24, 2  ;;  %v13791_v24 = vld [vmem:[#allocation14_spill] sm:$0xff] }
 0x10b   :  { %9294 = vmatprep.subr.msk.mxu1 %vm512_vm0, %v11679_v26 }
 0x10c   :  { %8609 = vmatmul.mubr.msk.f32.gmra.mrb[2].mxu1 %vm383_vm2, %v1427_v29  ;;  %v1443_v29 = vrot.slane %v13787_v9, 2  ;;  %v11765_v9 = vld [vmem:[%s13667_s0 + $0x248] sm:$0xff] }
 0x10d   :  { %9046 = vmatmul.mubr.msk.f32.gmra.mrb[32].mxu0 %vm383_vm2, %v11664_v6  ;;  %8611 = vmatprep.mubr.msk.f32.mxu1 %vm383_vm2, %v1430_v13  ;;  %v11727_v13 = vld [vmem:[%s13667_s0 + $0x228] sm:$0xff] }
 0x10e   :  { %9048 = vmatprep.mubr.msk.f32.mxu0 %vm383_vm2, %v11674_v16  ;;  %v1445_v41 = vsel %vm1417_vm3, %v1443_v29, %v1444_v10 }
 0x110   :  { %8612 = vmatmul.mubr.msk.f32.gmra.mrb[4].mxu1 %vm383_vm2, %v1432_v37  ;;  %v1446_v37 = vrot.slane %v9838_v22, 2  ;;  %v13792_v22 = vld [vmem:[#allocation5_spill] sm:$0xff] }
 0x111   :  { %9049 = vmatmul.mubr.msk.f32.gmra.mrb[34].mxu0 %vm383_vm2, %v11696_v56  ;;  %8614 = vmatprep.mubr.msk.f32.mxu1 %vm383_vm2, %v1435_v60  ;;  %v13789_v60 = vld [vmem:[#allocation10_spill] sm:$0xff] }
 0x112   :  { %9051 = vmatprep.mubr.msk.f32.mxu0 %vm383_vm2, %v11704_v31  ;;  %v1448_v43 = vrot.slane %v13789_v60, 2  ;;  %v1447_v62 = vsel %vm1417_vm3, %v1444_v10, %v1446_v37  ;;  %v11773_v10 = vld [vmem:[%s13667_s0 + $0x258] sm:$0xff] }
 0x113   :  { %v9840_v60 = vld [vmem:[%s13667_s0 + $0xb8] sm:$0x3] }
 0x114   :  { %8615 = vmatmul.mubr.msk.f32.gmra.mrb[6].mxu1 %vm383_vm2, %v1437_v18  ;;  %v1449_v18 = vrot.slane %v13790_v35, 2  ;;  %v11788_v35 = vld [vmem:[%s13667_s0 + $0x260] sm:$0xff] }
 0x115   :  { %9052 = vmatmul.mubr.msk.f32.gmra.mrb[36].mxu0 %vm383_vm2, %v11719_v4  ;;  %8617 = vmatprep.mubr.msk.f32.mxu1 %vm383_vm2, %v1440_v2  ;;  %v1451_v2 = vrot.slane %v9839_v15, 2  ;;  %v13793_v15 = vld [vmem:[#allocation16_spill] sm:$0xff] }
 0x116   :  { %9054 = vmatprep.mubr.msk.f32.mxu0 %vm383_vm2, %v11727_v13  ;;  %v1450_v29 = vsel %vm1417_vm3, %v1448_v43, %v1449_v18  ;;  %v1456_v43 = vrot.slane %v9840_v60, 2 }
 0x117   :  { %v1452_v37 = vsel %vm1417_vm3, %v1449_v18, %v1451_v2  ;;  %v11796_v18 = vld [vmem:[%s13667_s0 + $0x270] sm:$0xff] }
 0x118   :  { %8618 = vmatmul.mubr.msk.f32.gmra.mrb[8].mxu1 %vm383_vm2, %v1442_v8  ;;  %v1453_v8 = vrot.slane %v13791_v24, 2  ;;  %v1458_v24 = vrot.slane %v13793_v15, 2  ;;  %v11811_v15 = vld [vmem:[%s13667_s0 + $0x278] sm:$0xff] }
 0x119   :  { %9055 = vmatmul.mubr.msk.f32.gmra.mrb[38].mxu0 %vm383_vm2, %v11742_v21  ;;  %8620 = vmatprep.mubr.msk.f32.mxu1 %vm383_vm2, %v1445_v41  ;;  %v1454_v41 = vrot.slane %v13792_v22, 2 }
 0x11a   :  { %9057 = vmatprep.mubr.msk.f32.mxu0 %vm383_vm2, %v11750_v48 }
 0x11b   :  { %v1457_v2 = vsel %vm1417_vm3, %v1454_v41, %v1456_v43 }
 0x11c   :  { %8621 = vmatmul.mubr.msk.f32.gmra.mrb[10].mxu1 %vm383_vm2, %v1447_v62  ;;  %v1455_v62 = vsel %vm1417_vm3, %v1453_v8, %v1454_v41  ;;  %v9841_v8 = vld [vmem:[%s13667_s0 + $0xd0] sm:$0x3]  ;;  %v11819_v41 = vld [vmem:[%s13667_s0 + $0x288] sm:$0xff] }
 0x11d   :  { %9058 = vmatmul.mubr.msk.f32.gmra.mrb[40].mxu0 %vm383_vm2, %v11765_v9  ;;  %8623 = vmatprep.mubr.msk.f32.mxu1 %vm383_vm2, %v1450_v29  ;;  %v13794_v29 = vld [vmem:[#allocation17_spill] sm:$0xff]  ;;  %v1461_v60 = vrot.slane %v9841_v8, 2  ;;  %v11834_v8 = vld [vmem:[%s13667_s0 + $0x290] sm:$0xff] }
 0x11e   :  { %9060 = vmatprep.mubr.msk.f32.mxu0 %vm383_vm2, %v11773_v10  ;;  %v1459_v22 = vrot.slane %v13794_v29, 2  ;;  %v1463_v29 = vrot.slane %v11217_v63, 2  ;;  %v9842_v63 = vld [vmem:[%s13667_s0 + $0xe8] sm:$0x3] }
 0x120   :  { %8624 = vmatmul.mubr.msk.f32.gmra.mrb[12].mxu1 %vm383_vm2, %v1452_v37  ;;  %v1460_v37 = vsel %vm1417_vm3, %v1458_v24, %v1459_v22  ;;  %v1462_v43 = vsel %vm1417_vm3, %v1459_v22, %v1461_v60  ;;  %v1466_v24 = vrot.slane %v9842_v63, 2  ;;  %v1469_v60 = vrot.slane %v11250_v58, 2  ;;  %v9844_v63 = vld [vmem:[%s13667_s0 + $0x100] sm:$0x3]  ;;  %v11862_v58 = vld [vmem:[%s13667_s0 + $0x2a8] sm:$0xff] }
 0x121   :  { %9061 = vmatmul.mubr.msk.f32.gmra.mrb[42].mxu0 %vm383_vm2, %v11788_v35  ;;  %8626 = vmatprep.mubr.msk.f32.mxu1 %vm383_vm2, %v1455_v62  ;;  %v13795_v62 = vld [vmem:[#allocation18_spill] sm:$0xff]  ;;  %v1471_v30 = vrot.slane %v9844_v63, 2  ;;  %13798 = vst [vmem:[#allocation13_spill] sm:$0xff] %v11862_v58 }
 0x122   :  { %9063 = vmatprep.mubr.msk.f32.mxu0 %vm383_vm2, %v11796_v18  ;;  %v1464_v0 = vrot.slane %v13795_v62, 2  ;;  %v11847_v62 = vld [vmem:[%s13667_s0 + $0x2a0] sm:$0xff] }
 0x123   :  { %13797 = vst [vmem:[#allocation12_spill] sm:$0xff] %v11847_v62 }
 0x124   :  { %8627 = vmatmul.mubr.msk.f32.gmra.mrb[14].mxu1 %vm383_vm2, %v1457_v2  ;;  %v1465_v2 = vsel %vm1417_vm3, %v1463_v29, %v1464_v0  ;;  %v1467_v29 = vsel %vm1417_vm3, %v1464_v0, %v1466_v24  ;;  %v11874_v24 = vld [vmem:[%s13667_s0 + $0x110] sm:$0xff] }
 0x125   :  { %9064 = vmatmul.mubr.msk.f32.gmra.mrb[44].mxu0 %vm383_vm2, %v11811_v15  ;;  %8629 = vmatprep.mubr.msk.f32.mxu1 %vm383_vm2, %v1460_v37  ;;  %v11840_v37 = vld [vmem:[%s13667_s0 + $0xf0] sm:$0xff]  ;;  %13800 = vst [vmem:[#allocation6_spill] sm:$0xff] %v11874_v24  ;;  %v1474_v63 = vrot.slane %v11874_v24, 2  ;;  %v11895_v24 = vld [vmem:[%s13667_s0 + $0x2c0] sm:$0xff] }
 0x126   :  { %9066 = vmatprep.mubr.msk.f32.mxu0 %vm383_vm2, %v11819_v41  ;;  %13796 = vst [vmem:[#allocation8_spill] sm:$0xff] %v11840_v37  ;;  %v1468_v22 = vrot.slane %v11840_v37, 2  ;;  %v11880_v37 = vld [vmem:[%s13667_s0 + $0x2b8] sm:$0xff]  ;;  %13802 = vst [vmem:[#allocation9_spill] sm:$0xff] %v11895_v24 }
 0x127   :  { %13801 = vst [vmem:[#allocation7_spill] sm:$0xff] %v11880_v37 }
 0x128   :  { %8630 = vmatmul.mubr.msk.f32.gmra.mrb[16].mxu1 %vm383_vm2, %v1462_v43  ;;  %v1470_v43 = vsel %vm1417_vm3, %v1468_v22, %v1469_v60  ;;  %v1472_v22 = vsel %vm1417_vm3, %v1469_v60, %v1471_v30  ;;  %v11907_v60 = vld [vmem:[%s13667_s0 + $0x128] sm:$0xff] }
 0x129   :  { %9067 = vmatmul.mubr.msk.f32.gmra.mrb[46].mxu0 %vm383_vm2, %v11834_v8  ;;  %8632 = vmatprep.mubr.msk.f32.mxu1 %vm383_vm2, %v1465_v2  ;;  %v11868_v2 = vld [vmem:[%s13667_s0 + $0x108] sm:$0xff]  ;;  %13804 = vst [vmem:[#allocation11_spill] sm:$0xff] %v11907_v60 }
 0x12a   :  { %9069 = vmatprep.mubr.msk.f32.mxu0 %vm383_vm2, %v11847_v62  ;;  %13799 = vst [vmem:[#allocation15_spill] sm:$0xff] %v11868_v2  ;;  %v1473_v0 = vrot.slane %v11868_v2, 2  ;;  %v9847_v2 = vld [vmem:[%s13667_s0 + $0x118] sm:$0x3] }
 0x12b   :  { %v1476_v62 = vrot.slane %v9847_v2, 2  ;;  %v1479_v2 = vrot.slane %v11907_v60, 2  ;;  %v11928_v60 = vld [vmem:[%s13667_s0 + $0x2d8] sm:$0xff] }
 0x12c   :  { %8633 = vmatmul.mubr.msk.f32.gmra.mrb[18].mxu1 %vm383_vm2, %v1467_v29  ;;  %v1475_v29 = vsel %vm1417_vm3, %v1473_v0, %v1474_v63  ;;  %13806 = vst [vmem:[#allocation5_spill] sm:$0xff] %v11928_v60 }
 0x12d   :  { %9070 = vmatmul.mubr.msk.f32.gmra.mrb[48].mxu0 %vm383_vm2, %v11862_v58  ;;  %8635 = vmatprep.mubr.msk.f32.mxu1 %vm383_vm2, %v1470_v43  ;;  %v11901_v43 = vld [vmem:[%s13667_s0 + $0x120] sm:$0xff]  ;;  %v1477_v0 = vsel %vm1417_vm3, %v1474_v63, %v1476_v62 }
 0x12e   :  { %9072 = vmatprep.mubr.msk.f32.mxu0 %vm383_vm2, %v11880_v37  ;;  %13803 = vst [vmem:[#allocation10_spill] sm:$0xff] %v11901_v43  ;;  %v1478_v30 = vrot.slane %v11901_v43, 2  ;;  %v11913_v37 = vld [vmem:[%s13667_s0 + $0x2d0] sm:$0xff]  ;;  %v11940_v63 = vld [vmem:[%s13667_s0 + $0x140] sm:$0xff] }
 0x12f   :  { %13805 = vst [vmem:[#allocation14_spill] sm:$0xff] %v11913_v37  ;;  %v9850_v43 = vld [vmem:[%s13667_s0 + $0x130] sm:$0x3]  ;;  %13808 = vst [vmem:[#allocation17_spill] sm:$0xff] %v11940_v63 }
 0x130   :  { %8636 = vmatmul.mubr.msk.f32.gmra.mrb[20].mxu1 %vm383_vm2, %v1472_v22  ;;  %v1481_v58 = vrot.slane %v9850_v43, 2  ;;  %v1480_v22 = vsel %vm1417_vm3, %v1478_v30, %v1479_v2  ;;  %v1484_v43 = vrot.slane %v11940_v63, 2  ;;  %v11961_v63 = vld [vmem:[%s13667_s0 + $0x2f0] sm:$0xff] }
 0x131   :  { %9073 = vmatmul.mubr.msk.f32.gmra.mrb[50].mxu0 %vm383_vm2, %v11895_v24  ;;  %8638 = vmatprep.mubr.msk.f32.mxu1 %vm383_vm2, %v1475_v29  ;;  %v11934_v29 = vld [vmem:[%s13667_s0 + $0x138] sm:$0xff]  ;;  %13810 = vst [vmem:[#allocation21_spill] sm:$0xff] %v11961_v63 }
 0x132   :  { %9075 = vmatprep.mubr.msk.f32.mxu0 %vm383_vm2, %v11913_v37  ;;  %13807 = vst [vmem:[#allocation16_spill] sm:$0xff] %v11934_v29  ;;  %v1483_v62 = vrot.slane %v11934_v29, 2  ;;  %v11946_v37 = vld [vmem:[%s13667_s0 + $0x2e8] sm:$0xff]  ;;  %v1482_v30 = vsel %vm1417_vm3, %v1479_v2, %v1481_v58  ;;  %v11973_v2 = vld [vmem:[%s13667_s0 + $0x158] sm:$0xff] }
 0x133   :  { %13809 = vst [vmem:[#allocation18_spill] sm:$0xff] %v11946_v37  ;;  %v9853_v29 = vld [vmem:[%s13667_s0 + $0x148] sm:$0x3]  ;;  %13812 = vst [vmem:[#allocation23_spill] sm:$0xff] %v11973_v2 }
 0x134   :  { %8639 = vmatmul.mubr.msk.f32.gmra.mrb[22].mxu1 %vm383_vm2, %v1477_v0  ;;  %v1486_v24 = vrot.slane %v9853_v29, 2  ;;  %v1485_v0 = vsel %vm1417_vm3, %v1483_v62, %v1484_v43  ;;  %v1489_v29 = vrot.slane %v11973_v2, 2  ;;  %v11994_v2 = vld [vmem:[%s13667_s0 + $0x308] sm:$0xff] }
 0x135   :  { %9076 = vmatmul.mubr.msk.f32.gmra.mrb[52].mxu0 %vm383_vm2, %v11928_v60  ;;  %8641 = vmatprep.mubr.msk.f32.mxu1 %vm383_vm2, %v1480_v22  ;;  %v11967_v22 = vld [vmem:[%s13667_s0 + $0x150] sm:$0xff]  ;;  %13814 = vst [vmem:[#allocation25_spill] sm:$0xff] %v11994_v2 }
 0x136   :  { %9078 = vmatprep.mubr.msk.f32.mxu0 %vm383_vm2, %v11946_v37  ;;  %13811 = vst [vmem:[#allocation22_spill] sm:$0xff] %v11967_v22  ;;  %v1488_v58 = vrot.slane %v11967_v22, 2  ;;  %v11979_v37 = vld [vmem:[%s13667_s0 + $0x300] sm:$0xff]  ;;  %v1487_v62 = vsel %vm1417_vm3, %v1484_v43, %v1486_v24  ;;  %v12006_v43 = vld [vmem:[%s13667_s0 + $0x170] sm:$0xff] }
 0x137   :  { %13813 = vst [vmem:[#allocation24_spill] sm:$0xff] %v11979_v37  ;;  %v9856_v22 = vld [vmem:[%s13667_s0 + $0x160] sm:$0x3]  ;;  %13816 = vst [vmem:[#allocation27_spill] sm:$0xff] %v12006_v43 }
 0x138   :  { %8642 = vmatmul.mubr.msk.f32.gmra.mrb[24].mxu1 %vm383_vm2, %v1482_v30  ;;  %v1491_v60 = vrot.slane %v9856_v22, 2  ;;  %v1490_v30 = vsel %vm1417_vm3, %v1488_v58, %v1489_v29  ;;  %v1494_v22 = vrot.slane %v12006_v43, 2  ;;  %v12027_v43 = vld [vmem:[%s13667_s0 + $0x320] sm:$0xff] }
 0x139   :  { %9079 = vmatmul.mubr.msk.f32.gmra.mrb[54].mxu0 %vm383_vm2, %v11961_v63  ;;  %8644 = vmatprep.mubr.msk.f32.mxu1 %vm383_vm2, %v1485_v0  ;;  %v12000_v0 = vld [vmem:[%s13667_s0 + $0x168] sm:$0xff]  ;;  %13818 = vst [vmem:[#allocation29_spill] sm:$0xff] %v12027_v43 }
 0x13a   :  { %9081 = vmatprep.mubr.msk.f32.mxu0 %vm383_vm2, %v11979_v37  ;;  %13815 = vst [vmem:[#allocation26_spill] sm:$0xff] %v12000_v0  ;;  %v1493_v24 = vrot.slane %v12000_v0, 2  ;;  %v12012_v37 = vld [vmem:[%s13667_s0 + $0x318] sm:$0xff]  ;;  %v1492_v58 = vsel %vm1417_vm3, %v1489_v29, %v1491_v60 }
 0x13b   :  { %13817 = vst [vmem:[#allocation28_spill] sm:$0xff] %v12012_v37  ;;  %v9859_v0 = vld [vmem:[%s13667_s0 + $0x178] sm:$0x3] }
 0x13c   :  { %8645 = vmatmul.mubr.msk.f32.gmra.mrb[26].mxu1 %vm383_vm2, %v1487_v62  ;;  %v1496_v63 = vrot.slane %v9859_v0, 2  ;;  %v1495_v62 = vsel %vm1417_vm3, %v1493_v24, %v1494_v22  ;;  %v9861_v29 = vld [vmem:[%s13667_s0 + $0x1b8] sm:$0xff]  ;;  %v9862_v24 = vld [vmem:[%s13667_s0 + $0x1c0] sm:$0x3] }
 0x13d   :  { %9082 = vmatmul.mubr.msk.f32.gmra.mrb[56].mxu0 %vm383_vm2, %v11994_v2  ;;  %8647 = vmatprep.mubr.msk.f32.mxu1 %vm383_vm2, %v1490_v30  ;;  %v9860_v30 = vld [vmem:[%s13667_s0 + $0x1b0] sm:$0xff]  ;;  %v1499_v0 = vrot.slane %v9861_v29, 2  ;;  %v1501_v2 = vrot.slane %v9862_v24, 2  ;;  %v5185_v24 = vrot.slane %v11351_v25, 1 }
 0x13e   :  { %9084 = vmatprep.mubr.msk.f32.mxu0 %vm383_vm2, %v12012_v37  ;;  %v1498_v60 = vrot.slane %v9860_v30, 2  ;;  %v1497_v37 = vsel %vm1417_vm3, %v1494_v22, %v1496_v63  ;;  %v12056_v63 = vld [vmem:[%s13667_s0 + $0x1d0] sm:$0xff] }
 0x13f   :  { %13820 = vst [vmem:[#allocation31_spill] sm:$0xff] %v12056_v63  ;;  %v1504_v22 = vrot.slane %v12056_v63, 2  ;;  %v1502_v63 = vsel %vm1417_vm3, %v1499_v0, %v1501_v2  ;;  %v12085_v25 = vld [vmem:[%s13667_s0 + $0x350] sm:$0xff] }
 0x140   :  { %8648 = vmatmul.mubr.msk.f32.gmra.mrb[28].mxu1 %vm383_vm2, %v1492_v58  ;;  %v1500_v30 = vsel %vm1417_vm3, %v1498_v60, %v1499_v0  ;;  %v12050_v58 = vld [vmem:[%s13667_s0 + $0x1c8] sm:$0xff]  ;;  %13823 = vst [vmem:[#allocation34_spill] sm:$0xff] %v12085_v25 }
 0x141   :  { %9085 = vmatmul.mubr.msk.f32.gmra.mrb[58].mxu0 %vm383_vm2, %v12027_v43  ;;  %8650 = vmatprep.mubr.msk.f32.mxu1 %vm383_vm2, %v1495_v62  ;;  %13819 = vst [vmem:[#allocation30_spill] sm:$0xff] %v12050_v58  ;;  %v1503_v29 = vrot.slane %v12050_v58, 2  ;;  %v5184_v62 = vrot.slane %v11339_v46, 1  ;;  %v12068_v60 = vld [vmem:[%s13667_s0 + $0x348] sm:$0xff]  ;;  %v9865_v46 = vld [vmem:[%s13667_s0 + $0x1d8] sm:$0x3] }
 0x142   :  { %9087 = vmatprep.mubr.msk.f32.mxu0 %vm383_vm2, %v11296_v44  ;;  %v12062_v44 = vld [vmem:[%s13667_s0 + $0x40] sm:$0x3]  ;;  %13822 = vst [vmem:[#allocation33_spill] sm:$0xff] %v12068_v60  ;;  %v1506_v58 = vrot.slane %v9865_v46, 2  ;;  %v12097_v0 = vld [vmem:[%s13667_s0 + $0x1e8] sm:$0xff]  ;;  %v5189_v46 = vrot.slane %v11356_v50, 1 }
 0x143   :  { %13821 = vst [vmem:[#allocation32_spill] sm:$0xff] %v12062_v44  ;;  %v5187_v43 = vrot.slane %v12062_v44, 1  ;;  %13825 = vst [vmem:[#allocation36_spill] sm:$0xff] %v12097_v0  ;;  %v5190_v44 = vrot.slane %v11376_v52, 1  ;;  %v9868_v52 = vld [vmem:[%s13667_s0 + $0x1f0] sm:$0x3] }
 0x144   :  { %8651 = vmatmul.mubr.msk.f32.gmra.mrb[30].mxu1 %vm383_vm2, %v1497_v37  ;;  %v12091_v37 = vld [vmem:[%s13667_s0 + $0x1e0] sm:$0xff] }
 0x145   :  { %9088 = vmatmul.mubr.msk.f32.gmra.mrb[60].mxu0 %vm383_vm2, %v11301_v59  ;;  %8653 = vmatprep.mubr.msk.f32.mxu1 %vm383_vm2, %v1500_v30  ;;  %v1505_v59 = vsel %vm1417_vm3, %v1503_v29, %v1504_v22  ;;  %13824 = vst [vmem:[#allocation35_spill] sm:$0xff] %v12091_v37  ;;  %v1508_v2 = vrot.slane %v12091_v37, 2  ;;  %v1509_v30 = vrot.slane %v12097_v0, 2  ;;  %v5186_v29 = vsel %vm222_vm1, %v5184_v62, %v5185_v24 }
 0x146   :  { %9090 = vmatprep.mubr.msk.f32.mxu0 %vm383_vm2, %v12068_v60  ;;  %v12106_v60 = vld [vmem:[%s13667_s0 + $0x58] sm:$0x3]  ;;  %v1507_v0 = vsel %vm1417_vm3, %v1504_v22, %v1506_v58  ;;  %v5188_v50 = vsel %vm222_vm1, %v5185_v24, %v5187_v43  ;;  %v1511_v62 = vrot.slane %v9868_v52, 2  ;;  %v12129_v43 = vld [vmem:[%s13667_s0 + $0x200] sm:$0xff]  ;;  %v12135_v24 = vld [vmem:[%s13667_s0 + $0x70] sm:$0x3] }
 0x147   :  { %13826 = vst [vmem:[#allocation37_spill] sm:$0xff] %v12106_v60  ;;  %v1510_v37 = vsel %vm1417_vm3, %v1508_v2, %v1509_v30  ;;  %13828 = vst [vmem:[#allocation39_spill] sm:$0xff] %v12129_v43  ;;  %v1514_v22 = vrot.slane %v12129_v43, 2  ;;  %v5195_v2 = vrot.slane %v11396_v32, 1  ;;  %v9871_v43 = vld [vmem:[%s13667_s0 + $0x208] sm:$0x3] }
 0x148   :  { %8654 = vmatmul.mubr.msk.f32.gmra.mrb[32].mxu1 %vm383_vm2, %v1502_v63  ;;  %v5192_v63 = vrot.slane %v12106_v60, 1  ;;  %v1512_v52 = vsel %vm1417_vm3, %v1509_v30, %v1511_v62  ;;  %v5197_v60 = vrot.slane %v12135_v24, 1  ;;  %v12162_v30 = vld [vmem:[%s13667_s0 + $0x218] sm:$0xff]  ;;  %v12171_v62 = vld [vmem:[%s13667_s0 + $0x88] sm:$0x3] }
 0x149   :  { %9091 = vmatmul.mubr.msk.f32.gmra.mrb[62].mxu0 %vm383_vm2, %v12085_v25  ;;  %8656 = vmatprep.mubr.msk.f32.mxu1 %vm383_vm2, %v1505_v59  ;;  %v12123_v25 = vld [vmem:[%s13667_s0 + $0x1f8] sm:$0xff]  ;;  %v5194_v59 = vrot.slane %v11381_v57, 1 }
 0x14a   :  { %9095 = vmatprep.mubr.msk.f32.mxu0 %vm383_vm2, %v5186_v29  ;;  %13827 = vst [vmem:[#allocation38_spill] sm:$0xff] %v12123_v25  ;;  %v1513_v58 = vrot.slane %v12123_v25, 2  ;;  %v5191_v29 = vsel %vm222_vm1, %v5189_v46, %v5190_v44  ;;  %v1516_v25 = vrot.slane %v9871_v43, 2  ;;  %v5193_v57 = vsel %vm222_vm1, %v5190_v44, %v5192_v63 }
 0x14b   :  { %v5199_v46 = vrot.slane %v11401_v51, 1  ;;  %v5200_v44 = vrot.slane %v11414_v12, 1  ;;  %v9874_v51 = vld [vmem:[%s13667_s0 + $0x220] sm:$0x3] }
 0x14c   :  { %8657 = vmatmul.mubr.msk.f32.gmra.mrb[34].mxu1 %vm383_vm2, %v1507_v0  ;;  %v1515_v32 = vsel %vm1417_vm3, %v1513_v58, %v1514_v22  ;;  %v1517_v63 = vsel %vm1417_vm3, %v1514_v22, %v1516_v25  ;;  %v5198_v58 = vsel %vm222_vm1, %v5195_v2, %v5197_v60  ;;  %v1521_v12 = vrot.slane %v9874_v51, 2  ;;  %v12193_v60 = vld [vmem:[%s13667_s0 + $0x230] sm:$0xff] }
 0x14d   :  { %9096 = vmatmul.mubr.msk.f32.vlgmr.msra.gmra.mrb[0].mxu0 %vm383_vm2, %v5188_v50  ;;  %8659 = vmatprep.mubr.msk.f32.mxu1 %vm383_vm2, %v1510_v37  ;;  %v12156_v37 = vld [vmem:[%s13667_s0 + $0x210] sm:$0xff]  ;;  %v5196_v50 = vsel %vm222_vm1, %v5194_v59, %v5195_v2  ;;  %v5202_v59 = vrot.slane %v12171_v62, 1  ;;  %13829 = vst [vmem:[#allocation40_spill] sm:$0xff] %v12193_v60  ;;  %v1524_v22 = vrot.slane %v12193_v60, 2  ;;  %v12199_v2 = vld [vmem:[%s13667_s0 + $0xa0] sm:$0x3] }
 0x14e   :  { %9192 = vmatpush3.msk.msra.mxu0 %vm512_vm0, %v11363_v55  ;;  %9098 = vmatprep.mubr.msk.f32.mxu0 %vm383_vm2, %v5191_v29  ;;  %v1518_v0 = vrot.slane %v12156_v37, 2  ;;  %v1519_v55 = vrot.slane %v12162_v30, 2  ;;  %v12187_v29 = vld [vmem:[%s13667_s0 + $0x228] sm:$0xff]  ;;  %v5207_v60 = vrot.slane %v12199_v2, 1 }
 0x14f   :  { %v1523_v25 = vrot.slane %v12187_v29, 2 }
 0x150   :  { %8660 = vmatmul.mubr.msk.f32.gmra.mrb[36].mxu1 %vm383_vm2, %v1512_v52  ;;  %v1520_v43 = vsel %vm1417_vm3, %v1518_v0, %v1519_v55  ;;  %v5204_v52 = vrot.slane %v11419_v39, 1  ;;  %v1522_v0 = vsel %vm1417_vm3, %v1519_v55, %v1521_v12  ;;  %v5203_v39 = vsel %vm222_vm1, %v5200_v44, %v5202_v59  ;;  %v12233_v59 = vld [vmem:[%s13667_s0 + $0xb8] sm:$0x3] }
 0x151   :  { %9099 = vmatmul.mubr.msk.f32.gmra.mrb[2].mxu0 %vm383_vm2, %v5193_v57  ;;  %8662 = vmatprep.mubr.msk.f32.mxu1 %vm383_vm2, %v1515_v32  ;;  %v5205_v57 = vrot.slane %v11432_v23, 1  ;;  %v5201_v32 = vsel %vm222_vm1, %v5199_v46, %v5200_v44  ;;  %v1525_v23 = vsel %vm1417_vm3, %v1523_v25, %v1524_v22  ;;  %v12218_v46 = vld [vmem:[%s13667_s0 + $0x240] sm:$0xff]  ;;  %v5209_v12 = vrot.slane %v11437_v42, 1  ;;  %v9880_v42 = vld [vmem:[%s13667_s0 + $0x250] sm:$0x3] }
 0x152   :  { %9101 = vmatprep.mubr.msk.f32.mxu0 %vm383_vm2, %v5196_v50  ;;  %v9877_v50 = vld [vmem:[%s13667_s0 + $0x238] sm:$0x3]  ;;  %v1528_v55 = vrot.slane %v12218_v46, 2  ;;  %v5210_v44 = vrot.slane %v11450_v20, 1  ;;  %v1531_v20 = vrot.slane %v9880_v42, 2 }
 0x153   :  { %v1526_v51 = vrot.slane %v9877_v50, 2  ;;  %v5212_v50 = vrot.slane %v12233_v59, 1  ;;  %v9883_v42 = vld [vmem:[%s13667_s0 + $0x268] sm:$0x3] }
 0x154   :  { %8663 = vmatmul.mubr.msk.f32.gmra.mrb[38].mxu1 %vm383_vm2, %v1517_v63  ;;  %v12224_v63 = vld [vmem:[%s13667_s0 + $0x248] sm:$0xff] }
 0x155   :  { %9102 = vmatmul.mubr.msk.f32.gmra.mrb[4].mxu0 %vm383_vm2, %v5198_v58  ;;  %8665 = vmatprep.mubr.msk.f32.mxu1 %vm383_vm2, %v1520_v43  ;;  %v1529_v58 = vrot.slane %v12224_v63, 2  ;;  %v5206_v43 = vsel %vm222_vm1, %v5204_v52, %v5205_v57  ;;  %v1527_v25 = vsel %vm1417_vm3, %v1524_v22, %v1526_v51  ;;  %v12261_v51 = vld [vmem:[%s13667_s0 + $0xd0] sm:$0x3] }
 0x156   :  { %9104 = vmatprep.mubr.msk.f32.mxu0 %vm383_vm2, %v5201_v32  ;;  %v5208_v32 = vsel %vm222_vm1, %v5205_v57, %v5207_v60  ;;  %v12255_v60 = vld [vmem:[%s13667_s0 + $0x260] sm:$0xff] }
 0x157   :  { %v1530_v52 = vsel %vm1417_vm3, %v1528_v55, %v1529_v58  ;;  %13831 = vst [vmem:[#allocation42_spill] sm:$0xff] %v12255_v60  ;;  %v1534_v57 = vrot.slane %v12255_v60, 2  ;;  %v5211_v55 = vsel %vm222_vm1, %v5209_v12, %v5210_v44  ;;  %v1536_v60 = vrot.slane %v9883_v42, 2  ;;  %v12280_v12 = vld [vmem:[%s13667_s0 + $0x270] sm:$0xff] }
 0x158   :  { %8666 = vmatmul.mubr.msk.f32.gmra.mrb[40].mxu1 %vm383_vm2, %v1522_v0  ;;  %v12249_v0 = vld [vmem:[%s13667_s0 + $0x258] sm:$0xff] }
 0x159   :  { %9105 = vmatmul.mubr.msk.f32.gmra.mrb[6].mxu0 %vm383_vm2, %v5203_v39  ;;  %8668 = vmatprep.mubr.msk.f32.mxu1 %vm383_vm2, %v1525_v23  ;;  %13830 = vst [vmem:[#allocation41_spill] sm:$0xff] %v12249_v0  ;;  %v1533_v22 = vrot.slane %v12249_v0, 2  ;;  %v5214_v39 = vrot.slane %v11455_v49, 1  ;;  %v5215_v23 = vrot.slane %v11468_v14, 1  ;;  %v5217_v0 = vrot.slane %v12261_v51, 1 }
 0x15a   :  { %9107 = vmatprep.mubr.msk.f32.mxu0 %vm383_vm2, %v5206_v43  ;;  %v1532_v43 = vsel %vm1417_vm3, %v1529_v58, %v1531_v20  ;;  %v5213_v49 = vsel %vm222_vm1, %v5210_v44, %v5212_v50  ;;  %v1538_v58 = vrot.slane %v12280_v12, 2  ;;  %v5219_v20 = vrot.slane %v11473_v27, 1  ;;  %v12295_v50 = vld [vmem:[%s13667_s0 + $0xe8] sm:$0x3]  ;;  %v9886_v27 = vld [vmem:[%s13667_s0 + $0x280] sm:$0x3] }
 0x15b   :  { %v1535_v14 = vsel %vm1417_vm3, %v1533_v22, %v1534_v57  ;;  %v5220_v44 = vrot.slane %v11486_v45, 1  ;;  %v1537_v22 = vsel %vm1417_vm3, %v1534_v57, %v1536_v60  ;;  %v1541_v45 = vrot.slane %v9886_v27, 2  ;;  %v9889_v27 = vld [vmem:[%s13667_s0 + $0x298] sm:$0x3] }
 0x15c   :  { %8669 = vmatmul.mubr.msk.f32.gmra.mrb[42].mxu1 %vm383_vm2, %v1527_v25  ;;  %v12286_v25 = vld [vmem:[%s13667_s0 + $0x278] sm:$0xff]  ;;  %v5222_v42 = vrot.slane %v12295_v50, 1 }
 0x15d   :  { %9108 = vmatmul.mubr.msk.f32.gmra.mrb[8].mxu0 %vm383_vm2, %v5208_v32  ;;  %8671 = vmatprep.mubr.msk.f32.mxu1 %vm383_vm2, %v1530_v52  ;;  %v1539_v32 = vrot.slane %v12286_v25, 2  ;;  %v5216_v52 = vsel %vm222_vm1, %v5214_v39, %v5215_v23 }
 0x15e   :  { %9110 = vmatprep.mubr.msk.f32.mxu0 %vm383_vm2, %v5211_v55  ;;  %v5218_v55 = vsel %vm222_vm1, %v5215_v23, %v5217_v0  ;;  %v12317_v0 = vld [vmem:[%s13667_s0 + $0x290] sm:$0xff]  ;;  %v12323_v23 = vld [vmem:[%s13667_s0 + $0x100] sm:$0x3] }
 0x15f   :  { %v1540_v39 = vsel %vm1417_vm3, %v1538_v58, %v1539_v32  ;;  %13833 = vst [vmem:[#allocation44_spill] sm:$0xff] %v12317_v0  ;;  %v1544_v57 = vrot.slane %v12317_v0, 2  ;;  %v5221_v58 = vsel %vm222_vm1, %v5219_v20, %v5220_v44  ;;  %v1546_v0 = vrot.slane %v9889_v27, 2  ;;  %v12342_v20 = vld [vmem:[%s13667_s0 + $0x2a0] sm:$0xff] }
 0x160   :  { %8672 = vmatmul.mubr.msk.f32.gmra.mrb[44].mxu1 %vm383_vm2, %v1532_v43  ;;  %v12311_v43 = vld [vmem:[%s13667_s0 + $0x288] sm:$0xff] }
 0x161   :  { %9111 = vmatmul.mubr.msk.f32.gmra.mrb[10].mxu0 %vm383_vm2, %v5213_v49  ;;  %8674 = vmatprep.mubr.msk.f32.mxu1 %vm383_vm2, %v1535_v14  ;;  %13832 = vst [vmem:[#allocation43_spill] sm:$0xff] %v12311_v43  ;;  %v1543_v60 = vrot.slane %v12311_v43, 2  ;;  %v5224_v49 = vrot.slane %v11491_v33, 1  ;;  %v5225_v14 = vrot.slane %v11504_v53, 1  ;;  %v5227_v43 = vrot.slane %v12323_v23, 1 }
 0x162   :  { %9113 = vmatprep.mubr.msk.f32.mxu0 %vm383_vm2, %v5216_v52  ;;  %v1542_v52 = vsel %vm1417_vm3, %v1539_v32, %v1541_v45  ;;  %v5223_v33 = vsel %vm222_vm1, %v5220_v44, %v5222_v42  ;;  %v1548_v32 = vrot.slane %v12342_v20, 2  ;;  %v5229_v45 = vrot.slane %v11509_v17, 1  ;;  %v12357_v42 = vld [vmem:[%s13667_s0 + $0x118] sm:$0x3]  ;;  %v9892_v17 = vld [vmem:[%s13667_s0 + $0x2b0] sm:$0x3] }
 0x163   :  { %v1545_v53 = vsel %vm1417_vm3, %v1543_v60, %v1544_v57  ;;  %v5230_v44 = vrot.slane %v11522_v3, 1  ;;  %v1547_v60 = vsel %vm1417_vm3, %v1544_v57, %v1546_v0  ;;  %v1551_v3 = vrot.slane %v9892_v17, 2  ;;  %v9895_v17 = vld [vmem:[%s13667_s0 + $0x2c8] sm:$0x3] }
 0x164   :  { %8675 = vmatmul.mubr.msk.f32.gmra.mrb[46].mxu1 %vm383_vm2, %v1537_v22  ;;  %v12348_v22 = vld [vmem:[%s13667_s0 + $0x2a8] sm:$0xff]  ;;  %v5232_v27 = vrot.slane %v12357_v42, 1 }
 0x165   :  { %9114 = vmatmul.mubr.msk.f32.gmra.mrb[12].mxu0 %vm383_vm2, %v5218_v55  ;;  %8677 = vmatprep.mubr.msk.f32.mxu1 %vm383_vm2, %v1540_v39  ;;  %v1549_v55 = vrot.slane %v12348_v22, 2  ;;  %v5226_v39 = vsel %vm222_vm1, %v5224_v49, %v5225_v14 }
 0x166   :  { %9116 = vmatprep.mubr.msk.f32.mxu0 %vm383_vm2, %v5221_v58  ;;  %v5228_v58 = vsel %vm222_vm1, %v5225_v14, %v5227_v43  ;;  %v12379_v43 = vld [vmem:[%s13667_s0 + $0x2c0] sm:$0xff]  ;;  %v12385_v14 = vld [vmem:[%s13667_s0 + $0x130] sm:$0x3] }
 0x167   :  { %v1550_v49 = vsel %vm1417_vm3, %v1548_v32, %v1549_v55  ;;  %13835 = vst [vmem:[#allocation46_spill] sm:$0xff] %v12379_v43  ;;  %v1554_v57 = vrot.slane %v12379_v43, 2  ;;  %v5231_v32 = vsel %vm222_vm1, %v5229_v45, %v5230_v44  ;;  %v1556_v43 = vrot.slane %v9895_v17, 2  ;;  %v12404_v45 = vld [vmem:[%s13667_s0 + $0x2d0] sm:$0xff] }
 0x168   :  { %8678 = vmatmul.mubr.msk.f32.gmra.mrb[48].mxu1 %vm383_vm2, %v1542_v52  ;;  %v12373_v52 = vld [vmem:[%s13667_s0 + $0x2b8] sm:$0xff] }
 0x169   :  { %9117 = vmatmul.mubr.msk.f32.gmra.mrb[14].mxu0 %vm383_vm2, %v5223_v33  ;;  %8680 = vmatprep.mubr.msk.f32.mxu1 %vm383_vm2, %v1545_v53  ;;  %13834 = vst [vmem:[#allocation45_spill] sm:$0xff] %v12373_v52  ;;  %v1553_v0 = vrot.slane %v12373_v52, 2  ;;  %v5234_v33 = vrot.slane %v11527_v54, 1  ;;  %v5235_v53 = vrot.slane %v11540_v11, 1  ;;  %v5237_v52 = vrot.slane %v12385_v14, 1 }
 0x16a   :  { %9119 = vmatprep.mubr.msk.f32.mxu0 %vm383_vm2, %v5226_v39  ;;  %v1552_v39 = vsel %vm1417_vm3, %v1549_v55, %v1551_v3  ;;  %v5233_v54 = vsel %vm222_vm1, %v5230_v44, %v5232_v27  ;;  %v1558_v55 = vrot.slane %v12404_v45, 2  ;;  %v5239_v3 = vrot.slane %v11545_v40, 1  ;;  %v12419_v27 = vld [vmem:[%s13667_s0 + $0x148] sm:$0x3]  ;;  %v9898_v40 = vld [vmem:[%s13667_s0 + $0x2e0] sm:$0x3] }
 0x16b   :  { %v1555_v11 = vsel %vm1417_vm3, %v1553_v0, %v1554_v57  ;;  %v5240_v44 = vrot.slane %v11558_v36, 1  ;;  %v1557_v0 = vsel %vm1417_vm3, %v1554_v57, %v1556_v43  ;;  %v1561_v36 = vrot.slane %v9898_v40, 2  ;;  %v9901_v40 = vld [vmem:[%s13667_s0 + $0x2f8] sm:$0x3] }
 0x16c   :  { %8681 = vmatmul.mubr.msk.f32.gmra.mrb[50].mxu1 %vm383_vm2, %v1547_v60  ;;  %v12410_v60 = vld [vmem:[%s13667_s0 + $0x2d8] sm:$0xff]  ;;  %v5242_v17 = vrot.slane %v12419_v27, 1 }
 0x16d   :  { %9120 = vmatmul.mubr.msk.f32.gmra.mrb[16].mxu0 %vm383_vm2, %v5228_v58  ;;  %8683 = vmatprep.mubr.msk.f32.mxu1 %vm383_vm2, %v1550_v49  ;;  %v1559_v58 = vrot.slane %v12410_v60, 2  ;;  %v5236_v49 = vsel %vm222_vm1, %v5234_v33, %v5235_v53 }
 0x16e   :  { %9122 = vmatprep.mubr.msk.f32.mxu0 %vm383_vm2, %v5231_v32  ;;  %v5238_v32 = vsel %vm222_vm1, %v5235_v53, %v5237_v52  ;;  %v12441_v52 = vld [vmem:[%s13667_s0 + $0x2f0] sm:$0xff]  ;;  %v12447_v53 = vld [vmem:[%s13667_s0 + $0x160] sm:$0x3] }
 0x16f   :  { %v1560_v33 = vsel %vm1417_vm3, %v1558_v55, %v1559_v58  ;;  %13837 = vst [vmem:[#allocation48_spill] sm:$0xff] %v12441_v52  ;;  %v1564_v57 = vrot.slane %v12441_v52, 2  ;;  %v5241_v55 = vsel %vm222_vm1, %v5239_v3, %v5240_v44  ;;  %v1566_v52 = vrot.slane %v9901_v40, 2  ;;  %v12466_v3 = vld [vmem:[%s13667_s0 + $0x300] sm:$0xff] }
 0x170   :  { %8684 = vmatmul.mubr.msk.f32.gmra.mrb[52].mxu1 %vm383_vm2, %v1552_v39  ;;  %v12435_v39 = vld [vmem:[%s13667_s0 + $0x2e8] sm:$0xff] }
 0x171   :  { %9123 = vmatmul.mubr.msk.f32.gmra.mrb[18].mxu0 %vm383_vm2, %v5233_v54  ;;  %8686 = vmatprep.mubr.msk.f32.mxu1 %vm383_vm2, %v1555_v11  ;;  %13836 = vst [vmem:[#allocation47_spill] sm:$0xff] %v12435_v39  ;;  %v1563_v43 = vrot.slane %v12435_v39, 2  ;;  %v5244_v54 = vrot.slane %v11563_v47, 1  ;;  %v5245_v11 = vrot.slane %v11576_v61, 1  ;;  %v5247_v39 = vrot.slane %v12447_v53, 1 }
 0x172   :  { %9125 = vmatprep.mubr.msk.f32.mxu0 %vm383_vm2, %v5236_v49  ;;  %v1562_v49 = vsel %vm1417_vm3, %v1559_v58, %v1561_v36  ;;  %v5243_v47 = vsel %vm222_vm1, %v5240_v44, %v5242_v17  ;;  %v1568_v58 = vrot.slane %v12466_v3, 2  ;;  %v5249_v36 = vrot.slane %v11581_v34, 1  ;;  %v12481_v17 = vld [vmem:[%s13667_s0 + $0x178] sm:$0x3]  ;;  %v9904_v34 = vld [vmem:[%s13667_s0 + $0x310] sm:$0x3] }
 0x173   :  { %v1565_v61 = vsel %vm1417_vm3, %v1563_v43, %v1564_v57  ;;  %v5250_v44 = vrot.slane %v11594_v1, 1  ;;  %v1567_v43 = vsel %vm1417_vm3, %v1564_v57, %v1566_v52  ;;  %v1571_v1 = vrot.slane %v9904_v34, 2 }
 0x174   :  { %8687 = vmatmul.mubr.msk.f32.gmra.mrb[54].mxu1 %vm383_vm2, %v1557_v0  ;;  %v12472_v0 = vld [vmem:[%s13667_s0 + $0x308] sm:$0xff]  ;;  %v5252_v40 = vrot.slane %v12481_v17, 1 }
 0x175   :  { %9126 = vmatmul.mubr.msk.f32.gmra.mrb[20].mxu0 %vm383_vm2, %v5238_v32  ;;  %8689 = vmatprep.mubr.msk.f32.mxu1 %vm383_vm2, %v1560_v33  ;;  %v1569_v32 = vrot.slane %v12472_v0, 2  ;;  %v5246_v33 = vsel %vm222_vm1, %v5244_v54, %v5245_v11 }
 0x176   :  { %9128 = vmatprep.mubr.msk.f32.mxu0 %vm383_vm2, %v5241_v55  ;;  %v5248_v55 = vsel %vm222_vm1, %v5245_v11, %v5247_v39  ;;  %v12503_v39 = vld [vmem:[%s13667_s0 + $0x320] sm:$0xff]  ;;  %v5254_v11 = vrot.slane %v11601_v7, 1  ;;  %v9907_v7 = vld [vmem:[%s13667_s0 + $0x328] sm:$0x3] }
 0x177   :  { %v1570_v54 = vsel %vm1417_vm3, %v1568_v58, %v1569_v32  ;;  %13838 = vst [vmem:[#allocation49_spill] sm:$0xff] %v12503_v39  ;;  %v1574_v57 = vrot.slane %v12503_v39, 2  ;;  %v12512_v58 = vld [vmem:[%s13667_s0 + $0x190] sm:$0x3] }
 0x178   :  { %8690 = vmatmul.mubr.msk.f32.gmra.mrb[56].mxu1 %vm383_vm2, %v1562_v49  ;;  %v12497_v49 = vld [vmem:[%s13667_s0 + $0x318] sm:$0xff]  ;;  %v5257_v39 = vrot.slane %v12512_v58, 1 }
 0x179   :  { %9129 = vmatmul.mubr.msk.f32.gmra.mrb[22].mxu0 %vm383_vm2, %v5243_v47  ;;  %8692 = vmatprep.mubr.msk.f32.mxu1 %vm383_vm2, %v1565_v61  ;;  %v1573_v52 = vrot.slane %v12497_v49, 2  ;;  %v5255_v47 = vrot.slane %v11617_v19, 1  ;;  %v5251_v61 = vsel %vm222_vm1, %v5249_v36, %v5250_v44  ;;  %v1576_v19 = vrot.slane %v9907_v7, 2  ;;  %v9909_v7 = vld [vmem:[%s13667_s0 + $0x20] sm:$0xff] }
 0x17a   :  { %9131 = vmatprep.mubr.msk.f32.mxu0 %vm383_vm2, %v5246_v33  ;;  %v1572_v33 = vsel %vm1417_vm3, %v1569_v32, %v1571_v1  ;;  %v5253_v36 = vsel %vm222_vm1, %v5250_v44, %v5252_v40  ;;  %v12531_v32 = vld [vmem:[%s13667_s0 + $0x1a8] sm:$0x3]  ;;  %v5264_v1 = vrot.slane %v11649_v28, 1  ;;  %v5265_v40 = vrot.slane %v11664_v6, 1 }
 0x17b   :  { %v1575_v34 = vsel %vm1417_vm3, %v1573_v52, %v1574_v57  ;;  %v1577_v44 = vsel %vm1417_vm3, %v1574_v57, %v1576_v19  ;;  %v5269_v57 = vrot.slane %v11674_v16, 1  ;;  %v9910_v16 = vld [vmem:[%s13667_s0 + $0x30] sm:$0xff] }
 0x17c   :  { %8693 = vmatmul.mubr.msk.f32.gmra.mrb[58].mxu1 %vm383_vm2, %v1567_v43  ;;  %v5259_v43 = vrot.slane %v11625_v5, 1  ;;  %v5258_v5 = vsel %vm222_vm1, %v5255_v47, %v5257_v39  ;;  %v9908_v39 = vld [vmem:[%s13667_s0 + $0x18] sm:$0xff] }
 0x17d   :  { %9132 = vmatmul.mubr.msk.f32.gmra.mrb[24].mxu0 %vm383_vm2, %v5248_v55  ;;  %8695 = vmatprep.mubr.msk.f32.mxu1 %vm383_vm2, %v1570_v54  ;;  %v5260_v55 = vrot.slane %v11641_v38, 1  ;;  %v5256_v54 = vsel %vm222_vm1, %v5254_v11, %v5255_v47  ;;  %v5262_v38 = vrot.slane %v12531_v32, 1  ;;  %v12546_v11 = vld [vmem:[%s13667_s0 + $0x1f0] sm:$0x3]  ;;  %v5270_v47 = vrot.slane %v11696_v56, 1 }
 0x17e   :  { %9134 = vmatprep.mubr.msk.f32.mxu0 %vm383_vm2, %v5251_v61  ;;  %v5267_v6 = vrot.slane %v12546_v11, 1  ;;  %v5266_v61 = vsel %vm222_vm1, %v5264_v1, %v5265_v40  ;;  %v12605_v1 = vld [vmem:[%s13667_s0 + $0x238] sm:$0x3] }
 0x17f   :  { %v5261_v52 = vsel %vm222_vm1, %v5259_v43, %v5260_v55  ;;  %v5263_v28 = vsel %vm222_vm1, %v5260_v55, %v5262_v38  ;;  %v5271_v43 = vsel %vm222_vm1, %v5269_v57, %v5270_v47  ;;  %v12585_v55 = vld [vmem:[%s13667_s0 + $0x220] sm:$0x3]  ;;  %v12625_v57 = vld [vmem:[%s13667_s0 + $0x250] sm:$0x3] }
 0x180   :  { %8696 = vmatmul.mubr.msk.f32.gmra.mrb[60].mxu1 %vm383_vm2, %v1572_v33  ;;  %v12563_v33 = vld [vmem:[%s13667_s0 + $0x208] sm:$0x3]  ;;  %v5268_v56 = vsel %vm222_vm1, %v5265_v40, %v5267_v6  ;;  %v9913_v40 = vld [vmem:[%s13667_s0 + $0x50] sm:$0xff] }
 0x181   :  { %9135 = vmatmul.mubr.msk.f32.gmra.mrb[26].mxu0 %vm383_vm2, %v5253_v36  ;;  %8698 = vmatprep.mubr.msk.f32.mxu1 %vm383_vm2, %v1575_v34  ;;  %v5272_v19 = vrot.slane %v12563_v33, 1  ;;  %v5274_v36 = vrot.slane %v11704_v31, 1  ;;  %v5275_v34 = vrot.slane %v11719_v4, 1  ;;  %v5277_v4 = vrot.slane %v12585_v55, 1 }
 0x182   :  { %9137 = vmatprep.mubr.msk.f32.mxu0 %vm383_vm2, %v5256_v54  ;;  %v9911_v54 = vld [vmem:[%s13667_s0 + $0x38] sm:$0xff] }
 0x183   :  { %v5273_v31 = vsel %vm222_vm1, %v5270_v47, %v5272_v19  ;;  %v5276_v38 = vsel %vm222_vm1, %v5274_v36, %v5275_v34  ;;  %v9915_v47 = vld [vmem:[%s13667_s0 + $0x68] sm:$0xff]  ;;  %v9917_v36 = vld [vmem:[%s13667_s0 + $0x80] sm:$0xff] }
 0x184   :  { %8699 = vmatmul.mubr.msk.f32.gmra.mrb[62].mxu1 %vm383_vm2, %v1577_v44  ;;  %v5279_v44 = vrot.slane %v11727_v13, 1  ;;  %v9914_v13 = vld [vmem:[%s13667_s0 + $0x60] sm:$0xff]  ;;  %v12645_v19 = vld [vmem:[%s13667_s0 + $0x268] sm:$0x3] }
 0x185   :  { %9138 = vmatmul.mubr.msk.f32.gmra.mrb[28].mxu0 %vm383_vm2, %v5258_v5  ;;  %8703 = vmatprep.mubr.msk.f32.mxu1 %vm383_vm2, %v9908_v39  ;;  %v5280_v5 = vrot.slane %v11742_v21, 1  ;;  %v5278_v21 = vsel %vm222_vm1, %v5275_v34, %v5277_v4  ;;  %v5284_v39 = vrot.slane %v11750_v48, 1  ;;  %v9916_v48 = vld [vmem:[%s13667_s0 + $0x78] sm:$0xff]  ;;  %v5292_v34 = vrot.slane %v12645_v19, 1 }
 0x186   :  { %9140 = vmatprep.mubr.msk.f32.mxu0 %vm383_vm2, %v5261_v52  ;;  %v5282_v52 = vrot.slane %v12605_v1, 1  ;;  %v9919_v4 = vld [vmem:[%s13667_s0 + $0x98] sm:$0xff] }
 0x187   :  { %v5281_v6 = vsel %vm222_vm1, %v5279_v44, %v5280_v5 }
 0x188   :  { %8704 = vmatmul.mubr.msk.f32.vlgmr.msra.gmra.mrb[0].mxu1 %vm383_vm2, %v9909_v7  ;;  %v5289_v7 = vrot.slane %v11773_v10, 1  ;;  %v9918_v10 = vld [vmem:[%s13667_s0 + $0x90] sm:$0xff] }
 0x189   :  { %9141 = vmatmul.mubr.msk.f32.gmra.mrb[30].mxu0 %vm383_vm2, %v5263_v28  ;;  %8706 = vmatprep.mubr.msk.f32.mxu1 %vm383_vm2, %v9910_v16  ;;  %v5285_v28 = vrot.slane %v11765_v9, 1  ;;  %v5283_v9 = vsel %vm222_vm1, %v5280_v5, %v5282_v52  ;;  %v5290_v16 = vrot.slane %v11788_v35, 1  ;;  %v5299_v5 = vrot.slane %v11819_v41, 1  ;;  %v9922_v41 = vld [vmem:[%s13667_s0 + $0xc0] sm:$0xff] }
 0x18a   :  { %9143 = vmatprep.mubr.msk.f32.mxu0 %vm383_vm2, %v5266_v61  ;;  %9295 = vmatpush3.msk.msra.mxu1 %vm512_vm0, %v11679_v26  ;;  %v9912_v26 = vld [vmem:[%s13667_s0 + $0x48] sm:$0xff]  ;;  %v5287_v61 = vrot.slane %v12625_v57, 1 }
 0x18c   :  { %8707 = vmatmul.mubr.msk.f32.gmra.mrb[2].mxu1 %vm383_vm2, %v9911_v54  ;;  %v5288_v35 = vsel %vm222_vm1, %v5285_v28, %v5287_v61  ;;  %v5295_v54 = vrot.slane %v11811_v15, 1  ;;  %v5293_v15 = vsel %vm222_vm1, %v5290_v16, %v5292_v34  ;;  %v9923_v61 = vld [vmem:[%s13667_s0 + $0xc8] sm:$0xff] }
 0x18d   :  { %9144 = vmatmul.mubr.msk.f32.gmra.mrb[32].mxu0 %vm383_vm2, %v5268_v56  ;;  %8709 = vmatprep.mubr.msk.f32.mxu1 %vm383_vm2, %v9912_v26  ;;  %v5286_v56 = vsel %vm222_vm1, %v5284_v39, %v5285_v28  ;;  %v5291_v26 = vsel %vm222_vm1, %v5289_v7, %v5290_v16  ;;  %v13839_v39 = vld [vmem:[#allocation12_spill] sm:$0xff] }
 0x18e   :  { %9146 = vmatprep.mubr.msk.f32.mxu0 %vm383_vm2, %v5271_v43  ;;  %v5294_v43 = vrot.slane %v11796_v18, 1  ;;  %v9920_v18 = vld [vmem:[%s13667_s0 + $0xa8] sm:$0xff]  ;;  %v5304_v28 = vrot.slane %v13839_v39, 1  ;;  %v9924_v7 = vld [vmem:[%s13667_s0 + $0xd8] sm:$0xff] }
 0x190   :  { %8710 = vmatmul.mubr.msk.f32.gmra.mrb[4].mxu1 %vm383_vm2, %v9913_v40  ;;  %v5296_v40 = vsel %vm222_vm1, %v5294_v43, %v5295_v54 }
 0x191   :  { %9147 = vmatmul.mubr.msk.f32.gmra.mrb[34].mxu0 %vm383_vm2, %v5273_v31  ;;  %8712 = vmatprep.mubr.msk.f32.mxu1 %vm383_vm2, %v9914_v13  ;;  %v12665_v31 = vld [vmem:[%s13667_s0 + $0x280] sm:$0x3]  ;;  %v12685_v13 = vld [vmem:[%s13667_s0 + $0x298] sm:$0x3] }
 0x192   :  { %9149 = vmatprep.mubr.msk.f32.mxu0 %vm383_vm2, %v5276_v38  ;;  %v5297_v44 = vrot.slane %v12665_v31, 1  ;;  %v5300_v38 = vrot.slane %v11834_v8, 1  ;;  %v5302_v52 = vrot.slane %v12685_v13, 1 }
 0x194   :  { %8713 = vmatmul.mubr.msk.f32.gmra.mrb[6].mxu1 %vm383_vm2, %v9915_v47  ;;  %v5298_v8 = vsel %vm222_vm1, %v5295_v54, %v5297_v44  ;;  %v5303_v16 = vsel %vm222_vm1, %v5300_v38, %v5302_v52  ;;  %v12725_v54 = vld [vmem:[%s13667_s0 + $0x2c8] sm:$0x3]  ;;  %v13844_v44 = vld [vmem:[#allocation14_spill] sm:$0xff]  ;;  %v13846_v52 = vld [vmem:[#allocation15_spill] sm:$0xff] }
 0x195   :  { %9150 = vmatmul.mubr.msk.f32.gmra.mrb[36].mxu0 %vm383_vm2, %v5278_v21  ;;  %8715 = vmatprep.mubr.msk.f32.mxu1 %vm383_vm2, %v9916_v48  ;;  %v9921_v21 = vld [vmem:[%s13667_s0 + $0xb0] sm:$0xff]  ;;  %v5301_v48 = vsel %vm222_vm1, %v5299_v5, %v5300_v38  ;;  %v5314_v5 = vrot.slane %v13844_v44, 1  ;;  %v13845_v38 = vld [vmem:[#allocation5_spill] sm:$0xff] }
 0x196   :  { %9152 = vmatprep.mubr.msk.f32.mxu0 %vm383_vm2, %v5281_v6  ;;  %v13840_v6 = vld [vmem:[#allocation13_spill] sm:$0xff]  ;;  %v13853_v44 = vld [vmem:[#allocation11_spill] sm:$0xff] }
 0x197   :  { %v5305_v47 = vrot.slane %v13840_v6, 1  ;;  %v13847_v6 = vld [vmem:[#allocation18_spill] sm:$0xff] }
 0x198   :  { %8716 = vmatmul.mubr.msk.f32.gmra.mrb[8].mxu1 %vm383_vm2, %v9917_v36  ;;  %v13841_v36 = vld [vmem:[#allocation7_spill] sm:$0xff] }
 0x199   :  { %9153 = vmatmul.mubr.msk.f32.gmra.mrb[38].mxu0 %vm383_vm2, %v5283_v9  ;;  %8718 = vmatprep.mubr.msk.f32.mxu1 %vm383_vm2, %v9918_v10  ;;  %v12705_v9 = vld [vmem:[%s13667_s0 + $0x2b0] sm:$0x3]  ;;  %v5309_v10 = vrot.slane %v13841_v36, 1  ;;  %v5306_v43 = vsel %vm222_vm1, %v5304_v28, %v5305_v47 }
 0x19a   :  { %9155 = vmatprep.mubr.msk.f32.mxu0 %vm383_vm2, %v5286_v56  ;;  %v5307_v56 = vrot.slane %v12705_v9, 1  ;;  %v13850_v36 = vld [vmem:[#allocation10_spill] sm:$0xff] }
 0x19c   :  { %8719 = vmatmul.mubr.msk.f32.gmra.mrb[10].mxu1 %vm383_vm2, %v9919_v4  ;;  %v13843_v4 = vld [vmem:[#allocation8_spill] sm:$0xff] }
 0x19d   :  { %9156 = vmatmul.mubr.msk.f32.gmra.mrb[40].mxu0 %vm383_vm2, %v5288_v35  ;;  %8721 = vmatprep.mubr.msk.f32.mxu1 %vm383_vm2, %v9920_v18  ;;  %v13842_v35 = vld [vmem:[#allocation9_spill] sm:$0xff]  ;;  %v5308_v18 = vsel %vm222_vm1, %v5305_v47, %v5307_v56  ;;  %v5319_v47 = vrot.slane %v13847_v6, 1  ;;  %v13849_v56 = vld [vmem:[#allocation6_spill] sm:$0xff] }
 0x19e   :  { %9158 = vmatprep.mubr.msk.f32.mxu0 %vm383_vm2, %v5291_v26  ;;  %v5310_v34 = vrot.slane %v13842_v35, 1  ;;  %v9925_v26 = vld [vmem:[%s13667_s0 + $0xe0] sm:$0xff]  ;;  %v12793_v6 = vld [vmem:[%s13667_s0 + $0x328] sm:$0x3] }
 0x1a0   :  { %8722 = vmatmul.mubr.msk.f32.gmra.mrb[12].mxu1 %vm383_vm2, %v9921_v21  ;;  %v5311_v21 = vsel %vm222_vm1, %v5309_v10, %v5310_v34 }
 0x1a1   :  { %9159 = vmatmul.mubr.msk.f32.gmra.mrb[42].mxu0 %vm383_vm2, %v5293_v15  ;;  %8724 = vmatprep.mubr.msk.f32.mxu1 %vm383_vm2, %v9922_v41  ;;  %v5312_v15 = vrot.slane %v12725_v54, 1  ;;  %v12743_v41 = vld [vmem:[%s13667_s0 + $0x2e0] sm:$0x3] }
 0x1a2   :  { %9161 = vmatprep.mubr.msk.f32.mxu0 %vm383_vm2, %v5296_v40  ;;  %v5315_v40 = vrot.slane %v13845_v38, 1  ;;  %v5317_v28 = vrot.slane %v12743_v41, 1 }
 0x1a3   :  { %v5313_v39 = vsel %vm222_vm1, %v5310_v34, %v5312_v15  ;;  %v13851_v34 = vld [vmem:[#allocation24_spill] sm:$0xff]  ;;  %v12777_v15 = vld [vmem:[%s13667_s0 + $0x310] sm:$0x3] }
 0x1a4   :  { %8725 = vmatmul.mubr.msk.f32.gmra.mrb[14].mxu1 %vm383_vm2, %v9923_v61  ;;  %v5318_v10 = vsel %vm222_vm1, %v5315_v40, %v5317_v28 }
 0x1a5   :  { %9162 = vmatmul.mubr.msk.f32.gmra.mrb[44].mxu0 %vm383_vm2, %v5298_v8  ;;  %8727 = vmatprep.mubr.msk.f32.mxu1 %vm383_vm2, %v9924_v7  ;;  %v9926_v8 = vld [vmem:[%s13667_s0 + $0xf8] sm:$0xff]  ;;  %v5316_v7 = vsel %vm222_vm1, %v5314_v5, %v5315_v40  ;;  %v5327_v40 = vrot.slane %v12777_v15, 1 }
 0x1a6   :  { %9164 = vmatprep.mubr.msk.f32.mxu0 %vm383_vm2, %v5301_v48  ;;  %v13848_v48 = vld [vmem:[#allocation21_spill] sm:$0xff]  ;;  %v13854_v5 = vld [vmem:[#allocation16_spill] sm:$0xff] }
 0x1a7   :  { %v5320_v61 = vrot.slane %v13848_v48, 1  ;;  %v13858_v48 = vld [vmem:[#allocation22_spill] sm:$0xff] }
 0x1a8   :  { %8728 = vmatmul.mubr.msk.f32.gmra.mrb[16].mxu1 %vm383_vm2, %v9925_v26  ;;  %v13852_v26 = vld [vmem:[#allocation25_spill] sm:$0xff] }
 0x1a9   :  { %9165 = vmatmul.mubr.msk.f32.gmra.mrb[46].mxu0 %vm383_vm2, %v5303_v16  ;;  %8730 = vmatprep.mubr.msk.f32.mxu1 %vm383_vm2, %v13843_v4  ;;  %v12761_v16 = vld [vmem:[%s13667_s0 + $0x2f8] sm:$0x3]  ;;  %v5325_v4 = vrot.slane %v13852_v26, 1 }
 0x1aa   :  { %9167 = vmatprep.mubr.msk.f32.mxu0 %vm383_vm2, %v5306_v43  ;;  %v5322_v35 = vrot.slane %v12761_v16, 1  ;;  %v5324_v43 = vrot.slane %v13851_v34, 1  ;;  %v13859_v26 = vld [vmem:[#allocation23_spill] sm:$0xff] }
 0x1ac   :  { %8731 = vmatmul.mubr.msk.f32.gmra.mrb[18].mxu1 %vm383_vm2, %v9926_v8  ;;  %v5323_v38 = vsel %vm222_vm1, %v5320_v61, %v5322_v35  ;;  %v5326_v28 = vsel %vm222_vm1, %v5324_v43, %v5325_v4  ;;  %v12821_v43 = vld [vmem:[%s13667_s0 + $0x340] sm:$0x3] }
 0x1ad   :  { %9168 = vmatmul.mubr.msk.f32.gmra.mrb[48].mxu0 %vm383_vm2, %v5308_v18  ;;  %8733 = vmatprep.mubr.msk.f32.mxu1 %vm383_vm2, %v13846_v52  ;;  %v5321_v18 = vsel %vm222_vm1, %v5319_v47, %v5320_v61  ;;  %v13856_v52 = vld [vmem:[#allocation29_spill] sm:$0xff]  ;;  %v5328_v61 = vsel %vm222_vm1, %v5325_v4, %v5327_v40  ;;  %v13860_v4 = vld [vmem:[#allocation26_spill] sm:$0xff] }
 0x1ae   :  { %9170 = vmatprep.mubr.msk.f32.mxu0 %vm383_vm2, %v5311_v21  ;;  %v13855_v21 = vld [vmem:[#allocation28_spill] sm:$0xff]  ;;  %v13857_v47 = vld [vmem:[#allocation17_spill] sm:$0xff]  ;;  %v13862_v40 = vld [vmem:[#allocation34_spill] sm:$0xff] }
 0x1af   :  { %v5329_v8 = vrot.slane %v13855_v21, 1  ;;  %v5340_v21 = vrot.slane %v13862_v40, 1  ;;  %v9933_v40 = vld [vmem:[%s13667_s0 + $0x48] sm:$0xff] }
 0x1b0   :  { %8734 = vmatmul.mubr.msk.f32.gmra.mrb[20].mxu1 %vm383_vm2, %v13849_v56  ;;  %v12806_v56 = vld [vmem:[%s13667_s0 + $0x330] sm:$0xff] }
 0x1b1   :  { %9171 = vmatmul.mubr.msk.f32.gmra.mrb[50].mxu0 %vm383_vm2, %v5313_v39  ;;  %8736 = vmatprep.mubr.msk.f32.mxu1 %vm383_vm2, %v13850_v36  ;;  %v5330_v39 = vrot.slane %v13856_v52, 1  ;;  %v5334_v36 = vrot.slane %v12806_v56, 1  ;;  %v12840_v52 = vld [vmem:[%s13667_s0 + $0x358] sm:$0x3] }
 0x1b2   :  { %9173 = vmatprep.mubr.msk.f32.mxu0 %vm383_vm2, %v5316_v7  ;;  %v5332_v7 = vrot.slane %v12793_v6, 1 }
 0x1b3   :  { %v5331_v34 = vsel %vm222_vm1, %v5329_v8, %v5330_v39 }
 0x1b4   :  { %8737 = vmatmul.mubr.msk.f32.gmra.mrb[22].mxu1 %vm383_vm2, %v13853_v44  ;;  %v5337_v44 = vrot.slane %v12821_v43, 1 }
 0x1b5   :  { %9174 = vmatmul.mubr.msk.f32.gmra.mrb[52].mxu0 %vm383_vm2, %v5318_v10  ;;  %8739 = vmatprep.mubr.msk.f32.mxu1 %vm383_vm2, %v13854_v5  ;;  %v12812_v10 = vld [vmem:[%s13667_s0 + $0x338] sm:$0xff]  ;;  %v13861_v5 = vld [vmem:[#allocation33_spill] sm:$0xff] }
 0x1b6   :  { %9176 = vmatprep.mubr.msk.f32.mxu0 %vm383_vm2, %v5321_v18  ;;  %v12815_v35 = vrot.slane %v12812_v10, 1  ;;  %v5333_v18 = vsel %vm222_vm1, %v5330_v39, %v5332_v7  ;;  %v9929_v39 = vld [vmem:[%s13667_s0 + $0x180] sm:$0xff] }
 0x1b8   :  { %8740 = vmatmul.mubr.msk.f32.gmra.mrb[24].mxu1 %vm383_vm2, %v13857_v47  ;;  %v12835_v8 = vsel %vm222_vm1, %v5334_v36, %v12815_v35  ;;  %v5338_v47 = vsel %vm222_vm1, %v12815_v35, %v5337_v44 }
 0x1b9   :  { %9177 = vmatmul.mubr.msk.f32.gmra.mrb[54].mxu0 %vm383_vm2, %v5323_v38  ;;  %8742 = vmatprep.mubr.msk.f32.mxu1 %vm383_vm2, %v13858_v48  ;;  %v5339_v38 = vrot.slane %v13861_v5, 1  ;;  %v5342_v48 = vrot.slane %v12840_v52, 1  ;;  %v13865_v5 = vld [vmem:[#allocation32_spill] sm:$0xff] }
 0x1ba   :  { %9179 = vmatprep.mubr.msk.f32.mxu0 %vm383_vm2, %v5326_v28  ;;  %v13863_v28 = vld [vmem:[#allocation27_spill] sm:$0xff] }
 0x1bb   :  { %v5341_v36 = vsel %vm222_vm1, %v5339_v38, %v5340_v21  ;;  %v5343_v44 = vsel %vm222_vm1, %v5340_v21, %v5342_v48  ;;  %v5927_v38 = vrot.slane %v13865_v5, 2  ;;  %v13867_v21 = vld [vmem:[#allocation35_spill] sm:$0xff] }
 0x1bc   :  { %8743 = vmatmul.mubr.msk.f32.gmra.mrb[26].mxu1 %vm383_vm2, %v13859_v26 }
 0x1bd   :  { %9180 = vmatmul.mubr.msk.f32.gmra.mrb[56].mxu0 %vm383_vm2, %v5328_v61  ;;  %8745 = vmatprep.mubr.msk.f32.mxu1 %vm383_vm2, %v13860_v4  ;;  %v9930_v61 = vld [vmem:[%s13667_s0 + $0x30] sm:$0xff]  ;;  %v9932_v4 = vld [vmem:[%s13667_s0 + $0x188] sm:$0xff] }
 0x1be   :  { %9182 = vmatprep.mubr.msk.f32.mxu0 %vm383_vm2, %v5331_v34  ;;  %v5924_v7 = vrot.slane %v9930_v61, 2  ;;  %v9931_v34 = vld [vmem:[%s13667_s0 + $0x38] sm:$0xff] }
 0x1bf   :  { %v5925_v26 = vrot.slane %v9931_v34, 2  ;;  %v13866_v34 = vld [vmem:[#allocation31_spill] sm:$0xff] }
 0x1c0   :  { %8746 = vmatmul.mubr.msk.f32.gmra.mrb[28].mxu1 %vm383_vm2, %v13863_v28  ;;  %v5929_v28 = vrot.slane %v9933_v40, 2 }
 0x1c1   :  { %9183 = vmatmul.mubr.msk.f32.gmra.mrb[58].mxu0 %vm383_vm2, %v5333_v18  ;;  %8748 = vmatprep.mubr.msk.f32.mxu1 %vm383_vm2, %v9929_v39  ;;  %v13864_v18 = vld [vmem:[#allocation30_spill] sm:$0xff]  ;;  %v5928_v48 = vsel %vm1417_vm3, %v5925_v26, %v5927_v38 }
 0x1c2   :  { %9185 = vmatprep.mubr.msk.f32.mxu0 %vm383_vm2, %v12835_v8  ;;  %v9934_v39 = vld [vmem:[%s13667_s0 + $0x50] sm:$0xff] }
 0x1c3   :  { %v5930_v61 = vrot.slane %v9934_v39, 2  ;;  %v13869_v39 = vld [vmem:[#allocation36_spill] sm:$0xff] }
 0x1c4   :  { %8749 = vmatmul.mubr.msk.f32.gmra.mrb[30].mxu1 %vm383_vm2, %v9932_v4 }
 0x1c5   :  { %9186 = vmatmul.mubr.msk.f32.gmra.mrb[60].mxu0 %vm383_vm2, %v5338_v47  ;;  %8751 = vmatprep.mubr.msk.f32.mxu1 %vm383_vm2, %v13864_v18  ;;  %v5926_v47 = vsel %vm1417_vm3, %v5924_v7, %v5925_v26  ;;  %v9935_v18 = vld [vmem:[%s13667_s0 + $0x60] sm:$0xff]  ;;  %v9936_v7 = vld [vmem:[%s13667_s0 + $0x68] sm:$0xff] }
 0x1c6   :  { %9188 = vmatprep.mubr.msk.f32.mxu0 %vm383_vm2, %v5341_v36  ;;  %v13868_v36 = vld [vmem:[#allocation37_spill] sm:$0xff]  ;;  %v5934_v5 = vrot.slane %v9935_v18, 2  ;;  %v5935_v40 = vrot.slane %v9936_v7, 2  ;;  %v13870_v26 = vld [vmem:[#allocation38_spill] sm:$0xff]  ;;  %v13871_v18 = vld [vmem:[#allocation39_spill] sm:$0xff] }
 0x1c7   :  { %v5932_v4 = vrot.slane %v13868_v36, 2 }
 0x1c8   :  { %8752 = vmatmul.mubr.msk.f32.gmra.mrb[32].mxu1 %vm383_vm2, %v13866_v34  ;;  %v9937_v34 = vld [vmem:[%s13667_s0 + $0x78] sm:$0xff] }
 0x1c9   :  { %9189 = vmatmul.mubr.msk.f32.gmra.mrb[62].mxu0 %vm383_vm2, %v5343_v44  ;;  %8754 = vmatprep.mubr.msk.f32.mxu1 %vm383_vm2, %v13867_v21  ;;  %v5931_v44 = vsel %vm1417_vm3, %v5929_v28, %v5930_v61  ;;  %v5933_v38 = vsel %vm1417_vm3, %v5930_v61, %v5932_v4  ;;  %v5939_v21 = vrot.slane %v9937_v34, 2  ;;  %v9938_v28 = vld [vmem:[%s13667_s0 + $0x80] sm:$0xff]  ;;  %v5942_v61 = vrot.slane %v12171_v62, 2  ;;  %v9939_v4 = vld [vmem:[%s13667_s0 + $0x90] sm:$0xff] }
 0x1ca   :  { %9193 = vmatprep.mubr.msk.f32.mxu0 %vm383_vm2, %v5926_v47  ;;  %v5937_v47 = vrot.slane %v12135_v24, 2  ;;  %v5940_v36 = vrot.slane %v9938_v28, 2  ;;  %v5944_v7 = vrot.slane %v9939_v4, 2  ;;  %v5947_v62 = vrot.slane %v12199_v2, 2  ;;  %v13872_v34 = vld [vmem:[#allocation40_spill] sm:$0xff] }
 0x1cb   :  { %v5952_v2 = vrot.slane %v12233_v59, 2 }
 0x1cc   :  { %8755 = vmatmul.mubr.msk.f32.gmra.mrb[34].mxu1 %vm383_vm2, %v13869_v39  ;;  %v5938_v24 = vsel %vm1417_vm3, %v5935_v40, %v5937_v47  ;;  %v5941_v39 = vsel %vm1417_vm3, %v5939_v21, %v5940_v36  ;;  %v9943_v21 = vld [vmem:[%s13667_s0 + $0xc0] sm:$0xff] }
 0x1cd   :  { %9194 = vmatmul.mubr.msk.f32.vlgmr.msra.gmra.mrb[0].mxu0 %vm383_vm2, %v5928_v48  ;;  %8757 = vmatprep.mubr.msk.f32.mxu1 %vm383_vm2, %v13870_v26  ;;  %v5936_v48 = vsel %vm1417_vm3, %v5934_v5, %v5935_v40  ;;  %v9940_v5 = vld [vmem:[%s13667_s0 + $0x98] sm:$0xff]  ;;  %v9941_v40 = vld [vmem:[%s13667_s0 + $0xa8] sm:$0xff]  ;;  %v5954_v28 = vrot.slane %v9943_v21, 2 }
 0x1ce   :  { %9196 = vmatprep.mubr.msk.f32.mxu0 %vm383_vm2, %v5931_v44  ;;  %v5945_v44 = vrot.slane %v9940_v5, 2  ;;  %v5949_v26 = vrot.slane %v9941_v40, 2  ;;  %v9948_v40 = vld [vmem:[%s13667_s0 + $0xf8] sm:$0xff] }
 0x1d0   :  { %8758 = vmatmul.mubr.msk.f32.gmra.mrb[36].mxu1 %vm383_vm2, %v13871_v18  ;;  %v5946_v47 = vsel %vm1417_vm3, %v5944_v7, %v5945_v44 }
 0x1d1   :  { %9197 = vmatmul.mubr.msk.f32.gmra.mrb[2].mxu0 %vm383_vm2, %v5933_v38  ;;  %8760 = vmatprep.mubr.msk.f32.mxu1 %vm383_vm2, %v12156_v37  ;;  %v5943_v37 = vsel %vm1417_vm3, %v5940_v36, %v5942_v61  ;;  %v9944_v36 = vld [vmem:[%s13667_s0 + $0xc8] sm:$0xff]  ;;  %v9945_v61 = vld [vmem:[%s13667_s0 + $0xd8] sm:$0xff] }
 0x1d2   :  { %9199 = vmatprep.mubr.msk.f32.mxu0 %vm383_vm2, %v5936_v48  ;;  %v5955_v48 = vrot.slane %v9944_v36, 2  ;;  %v5959_v4 = vrot.slane %v9945_v61, 2  ;;  %v13876_v36 = vld [vmem:[#allocation44_spill] sm:$0xff] }
 0x1d4   :  { %8761 = vmatmul.mubr.msk.f32.gmra.mrb[38].mxu1 %vm383_vm2, %v12162_v30  ;;  %v9942_v30 = vld [vmem:[%s13667_s0 + $0xb0] sm:$0xff]  ;;  %v5956_v5 = vsel %vm1417_vm3, %v5954_v28, %v5955_v48 }
 0x1d5   :  { %9200 = vmatmul.mubr.msk.f32.gmra.mrb[4].mxu0 %vm383_vm2, %v5938_v24  ;;  %8763 = vmatprep.mubr.msk.f32.mxu1 %vm383_vm2, %v12187_v29  ;;  %v5950_v38 = vrot.slane %v9942_v30, 2  ;;  %v5948_v29 = vsel %vm1417_vm3, %v5945_v44, %v5947_v62  ;;  %v5957_v24 = vrot.slane %v12261_v51, 2  ;;  %v13874_v44 = vld [vmem:[#allocation42_spill] sm:$0xff] }
 0x1d6   :  { %9202 = vmatprep.mubr.msk.f32.mxu0 %vm383_vm2, %v5941_v39  ;;  %v5962_v39 = vrot.slane %v12295_v50, 2 }
 0x1d7   :  { %v5951_v18 = vsel %vm1417_vm3, %v5949_v26, %v5950_v38  ;;  %v5953_v59 = vsel %vm1417_vm3, %v5950_v38, %v5952_v2  ;;  %v5958_v51 = vsel %vm1417_vm3, %v5955_v48, %v5957_v24  ;;  %v5965_v26 = vrot.slane %v9948_v40, 2  ;;  %v13875_v38 = vld [vmem:[#allocation43_spill] sm:$0xff]  ;;  %v9952_v24 = vld [vmem:[%s13667_s0 + $0x128] sm:$0xff] }
 0x1d8   :  { %8764 = vmatmul.mubr.msk.f32.gmra.mrb[40].mxu1 %vm383_vm2, %v13872_v34  ;;  %v9949_v34 = vld [vmem:[%s13667_s0 + $0x108] sm:$0xff]  ;;  %v9950_v2 = vld [vmem:[%s13667_s0 + $0x110] sm:$0xff]  ;;  %v5972_v48 = vrot.slane %v12357_v42, 2  ;;  %v5975_v61 = vrot.slane %v9952_v24, 2  ;;  %v13880_v24 = vld [vmem:[#allocation48_spill] sm:$0xff] }
 0x1d9   :  { %9203 = vmatmul.mubr.msk.f32.gmra.mrb[6].mxu0 %vm383_vm2, %v5943_v37  ;;  %8766 = vmatprep.mubr.msk.f32.mxu1 %vm383_vm2, %v12218_v46  ;;  %v13873_v46 = vld [vmem:[#allocation41_spill] sm:$0xff]  ;;  %v9947_v37 = vld [vmem:[%s13667_s0 + $0xf0] sm:$0xff]  ;;  %v5970_v21 = vrot.slane %v9950_v2, 2 }
 0x1da   :  { %9205 = vmatprep.mubr.msk.f32.mxu0 %vm383_vm2, %v5946_v47  ;;  %v5964_v62 = vrot.slane %v9947_v37, 2  ;;  %v5967_v47 = vrot.slane %v12323_v23, 2  ;;  %v13878_v40 = vld [vmem:[#allocation46_spill] sm:$0xff]  ;;  %v13879_v2 = vld [vmem:[#allocation47_spill] sm:$0xff] }
 0x1db   :  { %v5973_v42 = vsel %vm1417_vm3, %v5970_v21, %v5972_v48  ;;  %v9958_v48 = vld [vmem:[%s13667_s0 + $0x170] sm:$0xff] }
 0x1dc   :  { %8767 = vmatmul.mubr.msk.f32.gmra.mrb[42].mxu1 %vm383_vm2, %v12224_v63  ;;  %v9946_v63 = vld [vmem:[%s13667_s0 + $0xe0] sm:$0xff]  ;;  %v5966_v28 = vsel %vm1417_vm3, %v5964_v62, %v5965_v26  ;;  %v5968_v23 = vsel %vm1417_vm3, %v5965_v26, %v5967_v47  ;;  %v5982_v26 = vrot.slane %v12419_v27, 2  ;;  %v9956_v47 = vld [vmem:[%s13667_s0 + $0x158] sm:$0xff] }
 0x1dd   :  { %9206 = vmatmul.mubr.msk.f32.gmra.mrb[8].mxu0 %vm383_vm2, %v5948_v29  ;;  %8769 = vmatprep.mubr.msk.f32.mxu1 %vm383_vm2, %v13873_v46  ;;  %v5960_v7 = vrot.slane %v9946_v63, 2  ;;  %v5969_v29 = vrot.slane %v9949_v34, 2  ;;  %v13877_v63 = vld [vmem:[#allocation45_spill] sm:$0xff]  ;;  %v5985_v34 = vrot.slane %v9956_v47, 2 }
 0x1de   :  { %9208 = vmatprep.mubr.msk.f32.mxu0 %vm383_vm2, %v5951_v18  ;;  %v9951_v18 = vld [vmem:[%s13667_s0 + $0x120] sm:$0xff] }
 0x1df   :  { %v5961_v30 = vsel %vm1417_vm3, %v5959_v4, %v5960_v7  ;;  %v5963_v50 = vsel %vm1417_vm3, %v5960_v7, %v5962_v39  ;;  %v5971_v4 = vsel %vm1417_vm3, %v5969_v29, %v5970_v21  ;;  %v5977_v7 = vrot.slane %v12385_v14, 2  ;;  %v9954_v39 = vld [vmem:[%s13667_s0 + $0x140] sm:$0xff] }
 0x1e0   :  { %8770 = vmatmul.mubr.msk.f32.gmra.mrb[44].mxu1 %vm383_vm2, %v13874_v44  ;;  %v5980_v37 = vrot.slane %v9954_v39, 2  ;;  %v5987_v21 = vrot.slane %v12447_v53, 2  ;;  %v5997_v39 = vrot.slane %v12512_v58, 2  ;;  %v9964_v47 = vld [vmem:[%s13667_s0 + $0x1a0] sm:$0xff] }
 0x1e1   :  { %9209 = vmatmul.mubr.msk.f32.gmra.mrb[10].mxu0 %vm383_vm2, %v5953_v59  ;;  %8772 = vmatprep.mubr.msk.f32.mxu1 %vm383_vm2, %v12280_v12  ;;  %v5974_v59 = vrot.slane %v9951_v18, 2  ;;  %v5978_v14 = vsel %vm1417_vm3, %v5975_v61, %v5977_v7  ;;  %v5990_v18 = vrot.slane %v9958_v48, 2  ;;  %v9960_v7 = vld [vmem:[%s13667_s0 + $0x188] sm:$0xff]  ;;  %v6000_v58 = vrot.slane %v9964_v47, 2 }
 0x1e2   :  { %9211 = vmatprep.mubr.msk.f32.mxu0 %vm383_vm2, %v5956_v5  ;;  %v9953_v5 = vld [vmem:[%s13667_s0 + $0x138] sm:$0xff]  ;;  %v5983_v27 = vsel %vm1417_vm3, %v5980_v37, %v5982_v26  ;;  %v5988_v53 = vsel %vm1417_vm3, %v5985_v34, %v5987_v21 }
 0x1e3   :  { %v5976_v62 = vsel %vm1417_vm3, %v5974_v59, %v5975_v61  ;;  %v5992_v61 = vrot.slane %v12481_v17, 2 }
 0x1e4   :  { %8773 = vmatmul.mubr.msk.f32.gmra.mrb[46].mxu1 %vm383_vm2, %v12286_v25 }
 0x1e5   :  { %9212 = vmatmul.mubr.msk.f32.gmra.mrb[12].mxu0 %vm383_vm2, %v5958_v51  ;;  %8775 = vmatprep.mubr.msk.f32.mxu1 %vm383_vm2, %v13875_v38  ;;  %v5979_v51 = vrot.slane %v9953_v5, 2  ;;  %v5995_v5 = vrot.slane %v9960_v7, 2  ;;  %v5993_v17 = vsel %vm1417_vm3, %v5990_v18, %v5992_v61 }
 0x1e6   :  { %9214 = vmatprep.mubr.msk.f32.mxu0 %vm383_vm2, %v5961_v30  ;;  %v9955_v30 = vld [vmem:[%s13667_s0 + $0x150] sm:$0xff] }
 0x1e7   :  { %v5981_v29 = vsel %vm1417_vm3, %v5979_v51, %v5980_v37  ;;  %v9961_v37 = vld [vmem:[%s13667_s0 + $0x1e0] sm:$0xff] }
 0x1e8   :  { %8776 = vmatmul.mubr.msk.f32.gmra.mrb[48].mxu1 %vm383_vm2, %v13876_v36 }
 0x1e9   :  { %9215 = vmatmul.mubr.msk.f32.gmra.mrb[14].mxu0 %vm383_vm2, %v5963_v50  ;;  %8778 = vmatprep.mubr.msk.f32.mxu1 %vm383_vm2, %v12342_v20  ;;  %v5984_v50 = vrot.slane %v9955_v30, 2  ;;  %v9963_v30 = vld [vmem:[%s13667_s0 + $0x198] sm:$0xff] }
 0x1ea   :  { %9217 = vmatprep.mubr.msk.f32.mxu0 %vm383_vm2, %v5966_v28  ;;  %v9957_v28 = vld [vmem:[%s13667_s0 + $0x168] sm:$0xff] }
 0x1eb   :  { %v5986_v59 = vsel %vm1417_vm3, %v5984_v50, %v5985_v34  ;;  %v5999_v50 = vrot.slane %v9963_v30, 2 }
 0x1ec   :  { %8779 = vmatmul.mubr.msk.f32.gmra.mrb[50].mxu1 %vm383_vm2, %v12348_v22 }
 0x1ed   :  { %9218 = vmatmul.mubr.msk.f32.gmra.mrb[16].mxu0 %vm383_vm2, %v5968_v23  ;;  %8781 = vmatprep.mubr.msk.f32.mxu1 %vm383_vm2, %v13877_v63  ;;  %v5989_v23 = vrot.slane %v9957_v28, 2  ;;  %v6002_v28 = vrot.slane %v12531_v32, 2  ;;  %v9968_v32 = vld [vmem:[%s13667_s0 + $0x1e0] sm:$0xff]  ;;  %v6001_v7 = vsel %vm1417_vm3, %v5999_v50, %v6000_v58  ;;  %v9973_v50 = vld [vmem:[%s13667_s0 + $0x1f8] sm:$0xff] }
 0x1ee   :  { %9220 = vmatprep.mubr.msk.f32.mxu0 %vm383_vm2, %v5971_v4  ;;  %v9959_v4 = vld [vmem:[%s13667_s0 + $0x180] sm:$0xff]  ;;  %v6009_v47 = vrot.slane %v9973_v50, 2  ;;  %v9983_v50 = vld [vmem:[%s13667_s0 + $0x228] sm:$0xff] }
 0x1ef   :  { %v5991_v51 = vsel %vm1417_vm3, %v5989_v23, %v5990_v18  ;;  %v5998_v23 = vsel %vm1417_vm3, %v5995_v5, %v5997_v39  ;;  %v9966_v18 = vld [vmem:[%s13667_s0 + $0x1f8] sm:$0xff] }
 0x1f0   :  { %8782 = vmatmul.mubr.msk.f32.gmra.mrb[52].mxu1 %vm383_vm2, %v13878_v40 }
 0x1f1   :  { %9221 = vmatmul.mubr.msk.f32.gmra.mrb[18].mxu0 %vm383_vm2, %v5973_v42  ;;  %8784 = vmatprep.mubr.msk.f32.mxu1 %vm383_vm2, %v12404_v45  ;;  %v5994_v42 = vrot.slane %v9959_v4, 2  ;;  %v9969_v4 = vld [vmem:[%s13667_s0 + $0x1e8] sm:$0xff] }
 0x1f2   :  { %9223 = vmatprep.mubr.msk.f32.mxu0 %vm383_vm2, %v5976_v62  ;;  %v3016_v62 = vrot.slane %v9961_v37, 1 }
 0x1f3   :  { %v5996_v34 = vsel %vm1417_vm3, %v5994_v42, %v5995_v5  ;;  %v6005_v42 = vrot.slane %v9969_v4, 2  ;;  %v9979_v4 = vld [vmem:[%s13667_s0 + $0x218] sm:$0xff] }
 0x1f4   :  { %8785 = vmatmul.mubr.msk.f32.gmra.mrb[54].mxu1 %vm383_vm2, %v12410_v60 }
 0x1f5   :  { %9224 = vmatmul.mubr.msk.f32.gmra.mrb[20].mxu0 %vm383_vm2, %v5978_v14  ;;  %8787 = vmatprep.mubr.msk.f32.mxu1 %vm383_vm2, %v13879_v2  ;;  %v9962_v14 = vld [vmem:[%s13667_s0 + $0x1e8] sm:$0xff] }
 0x1f6   :  { %9226 = vmatprep.mubr.msk.f32.mxu0 %vm383_vm2, %v5981_v29  ;;  %v3017_v26 = vrot.slane %v9962_v14, 1  ;;  %v13881_v29 = vld [vmem:[#allocation49_spill] sm:$0xff] }
 0x1f8   :  { %8788 = vmatmul.mubr.msk.f32.gmra.mrb[56].mxu1 %vm383_vm2, %v13880_v24  ;;  %v3018_v48 = vsel %vm222_vm1, %v3016_v62, %v3017_v26  ;;  %v6007_v62 = vrot.slane %v12546_v11, 2 }
 0x1f9   :  { %9227 = vmatmul.mubr.msk.f32.gmra.mrb[22].mxu0 %vm383_vm2, %v5983_v27  ;;  %8790 = vmatprep.mubr.msk.f32.mxu1 %vm383_vm2, %v12466_v3  ;;  %v9965_v27 = vld [vmem:[%s13667_s0 + $0x1f0] sm:$0x3] }
 0x1fa   :  { %9229 = vmatprep.mubr.msk.f32.mxu0 %vm383_vm2, %v5986_v59  ;;  %v3019_v21 = vrot.slane %v9965_v27, 1  ;;  %v3021_v59 = vrot.slane %v9966_v18, 1 }
 0x1fc   :  { %8791 = vmatmul.mubr.msk.f32.gmra.mrb[58].mxu1 %vm383_vm2, %v12472_v0  ;;  %v3020_v5 = vsel %vm222_vm1, %v3017_v26, %v3019_v21  ;;  %v9972_v26 = vld [vmem:[%s13667_s0 + $0x218] sm:$0xff]  ;;  %v9975_v21 = vld [vmem:[%s13667_s0 + $0x220] sm:$0x3] }
 0x1fd   :  { %9230 = vmatmul.mubr.msk.f32.gmra.mrb[24].mxu0 %vm383_vm2, %v5988_v53  ;;  %8793 = vmatprep.mubr.msk.f32.mxu1 %vm383_vm2, %v12497_v49  ;;  %v9967_v53 = vld [vmem:[%s13667_s0 + $0x200] sm:$0xff]  ;;  %v3027_v30 = vrot.slane %v9972_v26, 1  ;;  %v9982_v26 = vld [vmem:[%s13667_s0 + $0x248] sm:$0xff] }
 0x1fe   :  { %9232 = vmatprep.mubr.msk.f32.mxu0 %vm383_vm2, %v5991_v51  ;;  %v3022_v61 = vrot.slane %v9967_v53, 1  ;;  %v6003_v51 = vsel %vm1417_vm3, %v6000_v58, %v6002_v28  ;;  %v9974_v58 = vld [vmem:[%s13667_s0 + $0x200] sm:$0xff]  ;;  %v3029_v28 = vrot.slane %v9975_v21, 1 }
 0x1ff   :  { %v6010_v11 = vrot.slane %v9974_v58, 2  ;;  %v9984_v58 = vld [vmem:[%s13667_s0 + $0x230] sm:$0xff] }
 0x200   :  { %8794 = vmatmul.mubr.msk.f32.gmra.mrb[60].mxu1 %vm383_vm2, %v13881_v29  ;;  %v3023_v37 = vsel %vm222_vm1, %v3021_v59, %v3022_v61  ;;  %v9976_v59 = vld [vmem:[%s13667_s0 + $0x228] sm:$0xff] }
 0x201   :  { %9233 = vmatmul.mubr.msk.f32.gmra.mrb[26].mxu0 %vm383_vm2, %v5993_v17  ;;  %8796 = vmatprep.mubr.msk.f32.mxu1 %vm383_vm2, %v12806_v56  ;;  %v6004_v56 = vrot.slane %v9968_v32, 2  ;;  %v9970_v17 = vld [vmem:[%s13667_s0 + $0x208] sm:$0x3]  ;;  %v3031_v53 = vrot.slane %v9976_v59, 1  ;;  %v3042_v59 = vrot.slane %v13874_v44, 1 }
 0x202   :  { %9235 = vmatprep.mubr.msk.f32.mxu0 %vm383_vm2, %v5996_v34  ;;  %v3024_v39 = vrot.slane %v9970_v17, 1  ;;  %v9980_v17 = vld [vmem:[%s13667_s0 + $0x238] sm:$0x3] }
 0x203   :  { %v6006_v34 = vsel %vm1417_vm3, %v6004_v56, %v6005_v42 }
 0x204   :  { %8797 = vmatmul.mubr.msk.f32.gmra.mrb[62].mxu1 %vm383_vm2, %v12812_v10  ;;  %v9971_v10 = vld [vmem:[%s13667_s0 + $0x210] sm:$0xff]  ;;  %v3025_v27 = vsel %vm222_vm1, %v3022_v61, %v3024_v39  ;;  %v3034_v39 = vrot.slane %v9980_v17, 1  ;;  %v9989_v17 = vld [vmem:[%s13667_s0 + $0x258] sm:$0xff] }
 0x205   :  { %9236 = vmatmul.mubr.msk.f32.gmra.mrb[28].mxu0 %vm383_vm2, %v5998_v23  ;;  %8852 = vmatprep.mubr.msk.f32.mxu1 %vm383_vm2, %v3018_v48  ;;  %v3026_v14 = vrot.slane %v9971_v10, 1  ;;  %v6012_v23 = vrot.slane %v12563_v33, 2  ;;  %v6008_v48 = vsel %vm1417_vm3, %v6005_v42, %v6007_v62  ;;  %v9977_v61 = vld [vmem:[%s13667_s0 + $0x230] sm:$0xff]  ;;  %v6015_v42 = vrot.slane %v9979_v4, 2  ;;  %v9981_v10 = vld [vmem:[%s13667_s0 + $0x240] sm:$0xff] }
 0x206   :  { %9238 = vmatprep.mubr.msk.f32.mxu0 %vm383_vm2, %v6001_v7  ;;  %v3032_v32 = vrot.slane %v9977_v61, 1  ;;  %v9978_v33 = vld [vmem:[%s13667_s0 + $0x210] sm:$0xff]  ;;  %v6011_v7 = vsel %vm1417_vm3, %v6009_v47, %v6010_v11  ;;  %v6017_v62 = vrot.slane %v12585_v55, 2  ;;  %v6019_v47 = vrot.slane %v9983_v50, 2 }
 0x207   :  { %v3028_v18 = vsel %vm222_vm1, %v3026_v14, %v3027_v30  ;;  %v6014_v56 = vrot.slane %v9978_v33, 2  ;;  %v3036_v14 = vrot.slane %v9981_v10, 1  ;;  %v6020_v55 = vrot.slane %v9984_v58, 2  ;;  %v9992_v58 = vld [vmem:[%s13667_s0 + $0x270] sm:$0xff] }
 0x208   :  { %8853 = vmatmul.mubr.msk.f32.vlgmr.msra.gmra.mrb[34].mxu1 %vm383_vm2, %v3020_v5  ;;  %v3030_v5 = vsel %vm222_vm1, %v3027_v30, %v3029_v28  ;;  %v3037_v30 = vrot.slane %v9982_v26, 1  ;;  %v6022_v28 = vrot.slane %v12605_v1, 2  ;;  %v3051_v50 = vrot.slane %v13875_v38, 1 }
 0x209   :  { %9239 = vmatmul.mubr.msk.f32.gmra.mrb[30].mxu0 %vm383_vm2, %v6003_v51  ;;  %8855 = vmatprep.mubr.msk.f32.mxu1 %vm383_vm2, %v3023_v37  ;;  %v6013_v51 = vsel %vm1417_vm3, %v6010_v11, %v6012_v23  ;;  %v3033_v37 = vsel %vm222_vm1, %v3031_v53, %v3032_v32  ;;  %v6016_v11 = vsel %vm1417_vm3, %v6014_v56, %v6015_v42  ;;  %v9986_v53 = vld [vmem:[%s13667_s0 + $0x240] sm:$0xff]  ;;  %v9988_v56 = vld [vmem:[%s13667_s0 + $0x268] sm:$0x3] }
 0x20a   :  { %9241 = vmatprep.mubr.msk.f32.mxu0 %vm383_vm2, %v6006_v34  ;;  %v3035_v34 = vsel %vm222_vm1, %v3032_v32, %v3034_v39  ;;  %v6018_v23 = vsel %vm1417_vm3, %v6015_v42, %v6017_v62  ;;  %v6024_v61 = vrot.slane %v9986_v53, 2  ;;  %v9987_v32 = vld [vmem:[%s13667_s0 + $0x248] sm:$0xff]  ;;  %v6021_v33 = vsel %vm1417_vm3, %v6019_v47, %v6020_v55 }
 0x20b   :  { %v6025_v1 = vrot.slane %v9987_v32, 2  ;;  %v6023_v44 = vsel %vm1417_vm3, %v6020_v55, %v6022_v28  ;;  %v3044_v4 = vrot.slane %v9988_v56, 1  ;;  %v6029_v39 = vrot.slane %v9989_v17, 2  ;;  %v10000_v17 = vld [vmem:[%s13667_s0 + $0x2c8] sm:$0x3] }
 0x20c   :  { %8856 = vmatmul.mubr.msk.f32.gmra.mrb[36].mxu1 %vm383_vm2, %v3025_v27  ;;  %v9985_v27 = vld [vmem:[%s13667_s0 + $0x250] sm:$0x3]  ;;  %v3052_v47 = vrot.slane %v13876_v36, 1  ;;  %v6034_v55 = vrot.slane %v9992_v58, 2  ;;  %v3061_v56 = vrot.slane %v13877_v63, 1 }
 0x20d   :  { %9242 = vmatmul.mubr.msk.f32.gmra.mrb[32].mxu0 %vm383_vm2, %v6008_v48  ;;  %8858 = vmatprep.mubr.msk.f32.mxu1 %vm383_vm2, %v3028_v18  ;;  %v3039_v21 = vrot.slane %v9985_v27, 1  ;;  %v3038_v48 = vsel %vm222_vm1, %v3036_v14, %v3037_v30  ;;  %v3041_v18 = vrot.slane %v13873_v46, 1  ;;  %v6026_v10 = vsel %vm1417_vm3, %v6024_v61, %v6025_v1  ;;  %v9994_v27 = vld [vmem:[%s13667_s0 + $0x298] sm:$0x3]  ;;  %v9996_v61 = vld [vmem:[%s13667_s0 + $0x290] sm:$0xff] }
 0x20e   :  { %9244 = vmatprep.mubr.msk.f32.mxu0 %vm383_vm2, %v6011_v7  ;;  %v6027_v7 = vrot.slane %v12625_v57, 2  ;;  %v6032_v14 = vrot.slane %v12645_v19, 2  ;;  %v3053_v28 = vsel %vm222_vm1, %v3051_v50, %v3052_v47  ;;  %v6040_v32 = vrot.slane %v9996_v61, 2  ;;  %v10008_v61 = vld [vmem:[%s13667_s0 + $0x2f0] sm:$0xff] }
 0x20f   :  { %v3040_v46 = vsel %vm222_vm1, %v3037_v30, %v3039_v21  ;;  %v3043_v42 = vsel %vm222_vm1, %v3041_v18, %v3042_v59  ;;  %v3054_v21 = vrot.slane %v9994_v27, 1  ;;  %v3057_v18 = vrot.slane %v12348_v22, 1  ;;  %v9997_v22 = vld [vmem:[%s13667_s0 + $0x2b0] sm:$0x3]  ;;  %v10006_v27 = vld [vmem:[%s13667_s0 + $0x2f8] sm:$0x3] }
 0x210   :  { %8859 = vmatmul.mubr.msk.f32.gmra.mrb[38].mxu1 %vm383_vm2, %v3030_v5  ;;  %v3046_v5 = vrot.slane %v12280_v12, 1  ;;  %v3045_v12 = vsel %vm222_vm1, %v3042_v59, %v3044_v4  ;;  %v6028_v26 = vsel %vm1417_vm3, %v6025_v1, %v6027_v7  ;;  %v9995_v59 = vld [vmem:[%s13667_s0 + $0x288] sm:$0xff]  ;;  %v3062_v4 = vrot.slane %v13878_v40, 1 }
 0x211   :  { %9245 = vmatmul.mubr.msk.f32.gmra.mrb[34].mxu0 %vm383_vm2, %v6013_v51  ;;  %8861 = vmatprep.mubr.msk.f32.mxu1 %vm383_vm2, %v3033_v37  ;;  %v3047_v51 = vrot.slane %v12286_v25, 1  ;;  %v9990_v37 = vld [vmem:[%s13667_s0 + $0x260] sm:$0xff]  ;;  %v6039_v53 = vrot.slane %v9995_v59, 2  ;;  %v6052_v50 = vrot.slane %v12725_v54, 2  ;;  %v10007_v59 = vld [vmem:[%s13667_s0 + $0x2e8] sm:$0xff] }
 0x212   :  { %9247 = vmatprep.mubr.msk.f32.mxu0 %vm383_vm2, %v6016_v11  ;;  %v6030_v62 = vrot.slane %v9990_v37, 2  ;;  %v9991_v25 = vld [vmem:[%s13667_s0 + $0x280] sm:$0x3]  ;;  %v9993_v11 = vld [vmem:[%s13667_s0 + $0x278] sm:$0xff]  ;;  %v3063_v37 = vsel %vm222_vm1, %v3061_v56, %v3062_v4 }
 0x213   :  { %v3049_v57 = vrot.slane %v9991_v25, 1  ;;  %v3048_v30 = vsel %vm222_vm1, %v3046_v5, %v3047_v51  ;;  %v6035_v19 = vrot.slane %v9993_v11, 2  ;;  %v9999_v5 = vld [vmem:[%s13667_s0 + $0x2a8] sm:$0xff]  ;;  %v10001_v25 = vld [vmem:[%s13667_s0 + $0x2b8] sm:$0xff]  ;;  %v3072_v11 = vrot.slane %v13880_v24, 1 }
 0x214   :  { %8862 = vmatmul.mubr.msk.f32.gmra.mrb[40].mxu1 %vm383_vm2, %v3035_v34  ;;  %v6031_v34 = vsel %vm1417_vm3, %v6029_v39, %v6030_v62  ;;  %v6033_v36 = vsel %vm1417_vm3, %v6030_v62, %v6032_v14  ;;  %v3064_v39 = vrot.slane %v10000_v17, 1  ;;  %v6047_v62 = vrot.slane %v12705_v9, 2  ;;  %v10002_v14 = vld [vmem:[%s13667_s0 + $0x2c0] sm:$0xff] }
 0x215   :  { %9248 = vmatmul.mubr.msk.f32.gmra.mrb[36].mxu0 %vm383_vm2, %v6018_v23  ;;  %8864 = vmatprep.mubr.msk.f32.mxu1 %vm383_vm2, %v3038_v48  ;;  %v3050_v38 = vsel %vm222_vm1, %v3047_v51, %v3049_v57  ;;  %v6037_v23 = vrot.slane %v12665_v31, 2  ;;  %v3056_v48 = vrot.slane %v12342_v20, 1  ;;  %v6036_v1 = vsel %vm1417_vm3, %v6034_v55, %v6035_v19  ;;  %v10014_v17 = vld [vmem:[%s13667_s0 + $0x320] sm:$0xff] }
 0x216   :  { %9250 = vmatprep.mubr.msk.f32.mxu0 %vm383_vm2, %v6021_v33  ;;  %v3055_v20 = vsel %vm222_vm1, %v3052_v47, %v3054_v21  ;;  %v3059_v31 = vrot.slane %v9997_v22, 1  ;;  %v6042_v33 = vrot.slane %v12685_v13, 2  ;;  %v6045_v13 = vrot.slane %v9999_v5, 2 }
 0x217   :  { %v6041_v51 = vsel %vm1417_vm3, %v6039_v53, %v6040_v32  ;;  %v6049_v57 = vrot.slane %v10001_v25, 2  ;;  %v3071_v55 = vrot.slane %v13879_v2, 1  ;;  %v3074_v21 = vrot.slane %v10006_v27, 1 }
 0x218   :  { %8865 = vmatmul.mubr.msk.f32.gmra.mrb[42].mxu1 %vm383_vm2, %v3040_v46  ;;  %v6038_v46 = vsel %vm1417_vm3, %v6035_v19, %v6037_v23  ;;  %v3060_v63 = vsel %vm222_vm1, %v3057_v18, %v3059_v31  ;;  %v6043_v40 = vsel %vm1417_vm3, %v6040_v32, %v6042_v33  ;;  %v6048_v47 = vsel %vm1417_vm3, %v6045_v13, %v6047_v62  ;;  %v10004_v19 = vld [vmem:[%s13667_s0 + $0x2d0] sm:$0xff]  ;;  %v10015_v62 = vld [vmem:[%s13667_s0 + $0x340] sm:$0x3] }
 0x219   :  { %9251 = vmatmul.mubr.msk.f32.gmra.mrb[38].mxu0 %vm383_vm2, %v6023_v44  ;;  %8867 = vmatprep.mubr.msk.f32.mxu1 %vm383_vm2, %v3043_v42  ;;  %v3058_v44 = vsel %vm222_vm1, %v3056_v48, %v3057_v18  ;;  %v9998_v42 = vld [vmem:[%s13667_s0 + $0x2a0] sm:$0xff]  ;;  %v6057_v23 = vrot.slane %v12743_v41, 2  ;;  %v3076_v48 = vrot.slane %v12466_v3, 1  ;;  %v3077_v18 = vrot.slane %v12472_v0, 1  ;;  %v10009_v0 = vld [vmem:[%s13667_s0 + $0x310] sm:$0x3] }
 0x21a   :  { %9253 = vmatprep.mubr.msk.f32.mxu0 %vm383_vm2, %v6026_v10  ;;  %v6044_v7 = vrot.slane %v9998_v42, 2  ;;  %v3066_v10 = vrot.slane %v12404_v45, 1  ;;  %v3065_v45 = vsel %vm222_vm1, %v3062_v4, %v3064_v39  ;;  %v6059_v53 = vrot.slane %v10007_v59, 2  ;;  %v10011_v4 = vld [vmem:[%s13667_s0 + $0x308] sm:$0xff] }
 0x21b   :  { %v6060_v32 = vrot.slane %v10008_v61, 2  ;;  %v3075_v3 = vsel %vm222_vm1, %v3072_v11, %v3074_v21  ;;  %v3079_v41 = vrot.slane %v10009_v0, 1  ;;  %v3078_v31 = vsel %vm222_vm1, %v3076_v48, %v3077_v18  ;;  %v6940_v0 = vld [vmem:[%s13670_s3] sm:$0xff] }
 0x21c   :  { %8868 = vmatmul.mubr.msk.f32.gmra.mrb[44].mxu1 %vm383_vm2, %v3045_v12  ;;  %v3067_v12 = vrot.slane %v12410_v60, 1  ;;  %v10003_v60 = vld [vmem:[%s13667_s0 + $0x2e0] sm:$0x3]  ;;  %v3081_v33 = vrot.slane %v12497_v49, 1  ;;  %v6070_v39 = vrot.slane %v10014_v17, 2  ;;  %v6072_v25 = vrot.slane %v12793_v6, 2 }
 0x21d   :  { %9254 = vmatmul.mubr.msk.f32.gmra.mrb[40].mxu0 %vm383_vm2, %v6028_v26  ;;  %8870 = vmatprep.mubr.msk.f32.mxu1 %vm383_vm2, %v3048_v30  ;;  %v6050_v26 = vrot.slane %v10002_v14, 2  ;;  %v6046_v30 = vsel %vm1417_vm3, %v6044_v7, %v6045_v13  ;;  %v3069_v9 = vrot.slane %v10003_v60, 1  ;;  %v6061_v42 = vsel %vm1417_vm3, %v6059_v53, %v6060_v32  ;;  %v10012_v7 = vld [vmem:[%s13667_s0 + $0x328] sm:$0x3]  ;;  %v10017_v60 = vld [vmem:[%s13667_s0 + $0x350] sm:$0xff] }
 0x21e   :  { %9256 = vmatprep.mubr.msk.f32.mxu0 %vm383_vm2, %v6031_v34  ;;  %v3068_v58 = vsel %vm222_vm1, %v3066_v10, %v3067_v12  ;;  %v6054_v34 = vrot.slane %v10004_v19, 2  ;;  %v3080_v49 = vsel %vm222_vm1, %v3077_v18, %v3079_v41  ;;  %v3084_v5 = vrot.slane %v10012_v7, 1  ;;  %v10016_v6 = vld [vmem:[%s13667_s0 + $0x348] sm:$0xff] }
 0x21f   :  { %v3070_v2 = vsel %vm222_vm1, %v3067_v12, %v3069_v9  ;;  %v6053_v24 = vsel %vm1417_vm3, %v6050_v26, %v6052_v50  ;;  %v3089_v10 = vrot.slane %v10015_v62, 1  ;;  %v6080_v9 = vrot.slane %v10017_v60, 2 }
 0x220   :  { %8871 = vmatmul.mubr.msk.f32.gmra.mrb[46].mxu1 %vm383_vm2, %v3050_v38  ;;  %v10005_v38 = vld [vmem:[%s13667_s0 + $0x2d8] sm:$0xff]  ;;  %v6082_v50 = vrot.slane %v12840_v52, 2 }
 0x221   :  { %9257 = vmatmul.mubr.msk.f32.gmra.mrb[42].mxu0 %vm383_vm2, %v6033_v36  ;;  %8873 = vmatprep.mubr.msk.f32.mxu1 %vm383_vm2, %v3053_v28  ;;  %v6055_v54 = vrot.slane %v10005_v38, 2  ;;  %v6051_v36 = vsel %vm1417_vm3, %v6049_v57, %v6050_v26  ;;  %v3073_v28 = vsel %vm222_vm1, %v3071_v55, %v3072_v11  ;;  %v3090_v14 = vsel %vm222_vm1, %v12815_v35, %v3089_v10  ;;  %v13882_v35 = vld [vmem:[#allocation20_spill] sm:$0xff] }
 0x222   :  { %9259 = vmatprep.mubr.msk.f32.mxu0 %vm383_vm2, %v6036_v1  ;;  %v6073_v26 = vsel %vm1417_vm3, %v6070_v39, %v6072_v25 }
 0x223   :  { %v6056_v1 = vsel %vm1417_vm3, %v6054_v34, %v6055_v54  ;;  %v6058_v22 = vsel %vm1417_vm3, %v6055_v54, %v6057_v23 }
 0x224   :  { %8874 = vmatmul.mubr.msk.f32.gmra.mrb[48].mxu1 %vm383_vm2, %v3055_v20  ;;  %v6062_v20 = vrot.slane %v12761_v16, 2  ;;  %v6065_v16 = vrot.slane %v10011_v4, 2 }
 0x225   :  { %9260 = vmatmul.mubr.msk.f32.gmra.mrb[44].mxu0 %vm383_vm2, %v6038_v46  ;;  %8876 = vmatprep.mubr.msk.f32.mxu1 %vm383_vm2, %v3058_v44  ;;  %v3082_v46 = vrot.slane %v13881_v29, 1  ;;  %v10010_v44 = vld [vmem:[%s13667_s0 + $0x300] sm:$0xff] }
 0x226   :  { %9262 = vmatprep.mubr.msk.f32.mxu0 %vm383_vm2, %v6041_v51  ;;  %v6064_v56 = vrot.slane %v10010_v44, 2  ;;  %v6063_v29 = vsel %vm1417_vm3, %v6060_v32, %v6062_v20  ;;  %v6067_v51 = vrot.slane %v12777_v15, 2 }
 0x227   :  { %v3083_v13 = vsel %vm222_vm1, %v3081_v33, %v3082_v46  ;;  %v3085_v15 = vsel %vm222_vm1, %v3082_v46, %v3084_v5  ;;  %v13489_v5 = vld [vmem:[%s13669_s2] ss:$0 sm:$0xff] }
 0x228   :  { %8877 = vmatmul.mubr.msk.f32.gmra.mrb[50].mxu1 %vm383_vm2, %v3060_v63  ;;  %v10013_v63 = vld [vmem:[%s13667_s0 + $0x318] sm:$0xff]  ;;  %v6068_v12 = vsel %vm1417_vm3, %v6065_v16, %v6067_v51 }
 0x229   :  { %9263 = vmatmul.mubr.msk.f32.gmra.mrb[46].mxu0 %vm383_vm2, %v6043_v40  ;;  %8879 = vmatprep.mubr.msk.f32.mxu1 %vm383_vm2, %v3063_v37  ;;  %v6069_v40 = vrot.slane %v10013_v63, 2  ;;  %v6066_v37 = vsel %vm1417_vm3, %v6064_v56, %v6065_v16 }
 0x22a   :  { %9265 = vmatprep.mubr.msk.f32.mxu0 %vm383_vm2, %v6046_v30  ;;  %v6077_v30 = vrot.slane %v12821_v43, 2 }
 0x22b   :  { %v6071_v57 = vsel %vm1417_vm3, %v6069_v40, %v6070_v39 }
 0x22c   :  { %8880 = vmatmul.mubr.msk.f32.gmra.mrb[52].mxu1 %vm383_vm2, %v3065_v45  ;;  %v6079_v45 = vrot.slane %v10016_v6, 2 }
 0x22d   :  { %9266 = vmatmul.mubr.msk.f32.gmra.mrb[48].mxu0 %vm383_vm2, %v6048_v47  ;;  %8882 = vmatprep.mubr.msk.f32.mxu1 %vm383_vm2, %v3068_v58  ;;  %v6083_v58 = vsel %vm1417_vm3, %v6080_v9, %v6082_v50 }
 0x22e   :  { %9268 = vmatprep.mubr.msk.f32.mxu0 %vm383_vm2, %v6051_v36  ;;  %v6081_v47 = vsel %vm1417_vm3, %v6079_v45, %v6080_v9 }
 0x230   :  { %8883 = vmatmul.mubr.msk.f32.gmra.mrb[54].mxu1 %vm383_vm2, %v3070_v2 }
 0x231   :  { %9269 = vmatmul.mubr.msk.f32.gmra.mrb[50].mxu0 %vm383_vm2, %v6053_v24  ;;  %8885 = vmatprep.mubr.msk.f32.mxu1 %vm383_vm2, %v3073_v28 }
 0x232   :  { %9271 = vmatprep.mubr.msk.f32.mxu0 %vm383_vm2, %v6056_v1  ;;  %v10042_v1 = vmov 0.0  }
 0x233   :  { %9289 = vmatprep.subr.mxu1 %v10042_v1 }
 0x234   :  { %8886 = vmatmul.mubr.msk.f32.gmra.mrb[56].mxu1 %vm383_vm2, %v3075_v3 }
 0x235   :  { %9272 = vmatmul.mubr.msk.f32.gmra.mrb[52].mxu0 %vm383_vm2, %v6058_v22  ;;  %8888 = vmatprep.mubr.msk.f32.mxu1 %vm383_vm2, %v3078_v31 }
 0x236   :  { %9274 = vmatprep.mubr.msk.f32.mxu0 %vm383_vm2, %v6061_v42  ;;  %9290 = vmatpush3.msra.mxu1 %v6940_v0 }
 0x238   :  { %8889 = vmatmul.mubr.msk.f32.gmra.mrb[58].mxu1 %vm383_vm2, %v3080_v49 }
 0x239   :  { %9275 = vmatmul.mubr.msk.f32.gmra.mrb[54].mxu0 %vm383_vm2, %v6063_v29  ;;  %8891 = vmatprep.mubr.msk.f32.mxu1 %vm383_vm2, %v3083_v13 }
 0x23a   :  { %9277 = vmatprep.mubr.msk.f32.mxu0 %vm383_vm2, %v6066_v37 }
 0x23c   :  { %8892 = vmatmul.mubr.msk.f32.gmra.mrb[60].mxu1 %vm383_vm2, %v3085_v15 }
 0x23d   :  { %9278 = vmatmul.mubr.msk.f32.gmra.mrb[56].mxu0 %vm383_vm2, %v6068_v12  ;;  %8894 = vmatprep.mubr.msk.f32.mxu1 %vm383_vm2, %v12835_v8  ;;  %v13883_v8 = vld [vmem:[#allocation19_spill] sm:$0xff] }
 0x23e   :  { %9280 = vmatprep.mubr.msk.f32.mxu0 %vm383_vm2, %v6071_v57  ;;  %v6078_v43 = vsel %vm1417_vm3, %v13883_v8, %v6077_v30 }
 0x240   :  { %8895 = vmatmul.mubr.msk.f32.gmra.mrb[62].mxu1 %vm383_vm2, %v3090_v14 }
 0x241   :  { %9281 = vmatmul.mubr.msk.f32.gmra.mrb[58].mxu0 %vm383_vm2, %v6073_v26  ;;  %9291 = vmatprep.mubr.msk.f32.mxu1 %vm10043_vm5, %v10042_v1 }
 0x242   :  { %9283 = vmatprep.mubr.msk.f32.mxu0 %vm383_vm2, %v13882_v35 }
 0x245   :  { %9284 = vmatmul.mubr.msk.f32.gmra.mrb[60].mxu0 %vm383_vm2, %v6078_v43 }
 0x246   :  { %9286 = vmatprep.mubr.msk.f32.mxu0 %vm383_vm2, %v6081_v47 }
 0x249   :  { %9287 = vmatmul.mubr.msk.f32.gmra.mrb[62].mxu0 %vm383_vm2, %v6083_v58 }
 0x25b   :  { %v8705_v55 = vpop.f32.mrb[0].mxu1 }
 0x25c   :  { %v2516_v11 = vpop.f32.mrb[1].mxu1 }
 0x25f   :  { %v8708_v19 = vpop.f32.mrb[2].mxu1 }
 0x260   :  { %v2526_v34 = vpop.f32.mrb[3].mxu1 }
 0x263   :  { %v8711_v38 = vpop.f32.mrb[4].mxu1 }
 0x264   :  { %v2536_v54 = vpop.f32.mrb[5].mxu1 }
 0x267   :  { %v8714_v36 = vpop.f32.mrb[6].mxu1 }
 0x268   :  { %v13428_v2 = vpop.f32.mrb[7].mxu1 }
 0x26b   :  { %v13430_v52 = vpop.f32.mrb[8].mxu1 }
 0x26c   :  { %v13432_v24 = vpop.f32.mrb[9].mxu1 }
 0x26f   :  { %v13434_v27 = vpop.f32.mrb[10].mxu1 }
 0x270   :  { %v13436_v21 = vpop.f32.mrb[11].mxu1 }
 0x273   :  { %v13438_v28 = vpop.f32.mrb[12].mxu1 }
 0x274   :  { %v13440_v23 = vpop.f32.mrb[13].mxu1 }
 0x277   :  { %v13442_v48 = vpop.f32.mrb[14].mxu1 }
 0x278   :  { %v13444_v18 = vpop.f32.mrb[15].mxu1 }
 0x27b   :  { %v13446_v59 = vpop.f32.mrb[16].mxu1 }
 0x27c   :  { %v13448_v53 = vpop.f32.mrb[17].mxu1 }
 0x27f   :  { %v13450_v61 = vpop.f32.mrb[18].mxu1 }
 0x280   :  { %v13452_v32 = vpop.f32.mrb[19].mxu1 }
 0x283   :  { %v13455_v3 = vpop.f32.mrb[20].mxu1 }
 0x284   :  { %v13460_v41 = vpop.f32.mrb[21].mxu1 }
 0x287   :  { %v13462_v20 = vpop.f32.mrb[22].mxu1 }
 0x288   :  { %v13464_v22 = vpop.f32.mrb[23].mxu1 }
 0x28b   :  { %v13466_v31 = vpop.f32.mrb[24].mxu1 }
 0x28c   :  { %v13468_v33 = vpop.f32.mrb[25].mxu1 }
 0x28f   :  { %v13470_v46 = vpop.f32.mrb[26].mxu1 }
 0x290   :  { %v13472_v44 = vpop.f32.mrb[27].mxu1 }
 0x293   :  { %v13474_v56 = vpop.f32.mrb[28].mxu1 }
 0x294   :  { %v13476_v4 = vpop.f32.mrb[29].mxu1 }
 0x297   :  { %v13478_v16 = vpop.f32.mrb[30].mxu1 }
 0x298   :  { %v13480_v42 = vpop.f32.mrb[31].mxu1 }
 0x29b   :  { %v13482_v49 = vpop.f32.mrb[32].mxu1 }
 0x29c   :  { %v13484_v29 = vpop.f32.mrb[33].mxu1 }
 0x2a0   :  { %v9195_v7 = vpop.f32.mrb[0].mxu0 }
 0x2a1   :  { %v9296_v13 = vadd.f32 %v9195_v7, %v8705_v55  ;;  %v6281_v51 = vpop.f32.mrb[1].mxu0 }
 0x2a2   :  { %v9297_v63 = vadd.f32 %v6281_v51, %v2516_v11 }
 0x2a3   :  { %v6672_v40 = vadd.f32 %v9296_v13, %v13489_v5 }
 0x2a4   :  { %v6671_v17 = vadd.f32 %v9297_v63, %v13489_v5  ;;  %v9198_v39 = vpop.f32.mrb[2].mxu0 }
 0x2a5   :  { %v6736_v37 = vmax.f32 %v6672_v40, 0.0  ;;  %v9298_v15 = vadd.f32 %v9198_v39, %v8708_v19  ;;  %v6291_v62 = vpop.f32.mrb[3].mxu0 }
 0x2a6   :  { %v6735_v10 = vmax.f32 %v6671_v17, 0.0  ;;  %v9299_v12 = vadd.f32 %v6291_v62, %v2526_v34 }
 0x2a7   :  { %v6801_v25 = vsel %vm6799_vm4, %v6736_v37, 0.0  ;;  %v6674_v57 = vadd.f32 %v9298_v15, %v13489_v5 }
 0x2a8   :  { %v6800_v14 = vsel %vm6799_vm4, %v6735_v10, 0.0  ;;  %v6673_v26 = vadd.f32 %v9299_v12, %v13489_v5  ;;  %v9201_v30 = vpop.f32.mrb[4].mxu0 }
 0x2a9   :  { %v6802_v6 = vadd.f32 %v6801_v25, %v6800_v14  ;;  %v9300_v45 = vadd.f32 %v9201_v30, %v8711_v38  ;;  %v6301_v60 = vpop.f32.mrb[5].mxu0  ;;  %v6738_v9 = vmax.f32 %v6674_v57, 0.0 }
 0x2aa   :  { %v6737_v35 = vmax.f32 %v6673_v26, 0.0  ;;  %v9301_v8 = vadd.f32 %v6301_v60, %v2536_v54 }
 0x2ab   :  { %v6676_v43 = vadd.f32 %v9300_v45, %v13489_v5  ;;  %v6805_v34 = vsel %vm6799_vm4, %v6738_v9, 0.0 }
 0x2ac   :  { %v6803_v50 = vsel %vm6799_vm4, %v6737_v35, 0.0  ;;  %v6675_v47 = vadd.f32 %v9301_v8, %v13489_v5  ;;  %v9204_v58 = vpop.f32.mrb[6].mxu0 }
 0x2ad   :  { %v6804_v55 = vadd.f32 %v6803_v50, %v6802_v6  ;;  %v9302_v11 = vadd.f32 %v9204_v58, %v8714_v36  ;;  %v6311_v19 = vpop.f32.mrb[7].mxu0  ;;  %v6740_v0 = vmax.f32 %v6676_v43, 0.0 }
 0x2ae   :  { %v6739_v7 = vmax.f32 %v6675_v47, 0.0  ;;  %v9303_v38 = vadd.f32 %v6311_v19, %v13428_v2 }
 0x2af   :  { %v6806_v13 = vadd.f32 %v6805_v34, %v6804_v55  ;;  %v6678_v51 = vadd.f32 %v9302_v11, %v13489_v5  ;;  %v6809_v36 = vsel %vm6799_vm4, %v6740_v0, 0.0 }
 0x2b0   :  { %v6807_v54 = vsel %vm6799_vm4, %v6739_v7, 0.0  ;;  %v6677_v63 = vadd.f32 %v9303_v38, %v13489_v5  ;;  %v9207_v40 = vpop.f32.mrb[8].mxu0 }
 0x2b1   :  { %v6808_v17 = vadd.f32 %v6807_v54, %v6806_v13  ;;  %v9304_v39 = vadd.f32 %v9207_v40, %v13430_v52  ;;  %v6321_v37 = vpop.f32.mrb[9].mxu0  ;;  %v6742_v15 = vmax.f32 %v6678_v51, 0.0 }
 0x2b2   :  { %v6741_v62 = vmax.f32 %v6677_v63, 0.0  ;;  %v9305_v10 = vadd.f32 %v6321_v37, %v13432_v24 }
 0x2b3   :  { %v6810_v2 = vadd.f32 %v6809_v36, %v6808_v17  ;;  %v6680_v12 = vadd.f32 %v9304_v39, %v13489_v5  ;;  %v6813_v6 = vsel %vm6799_vm4, %v6742_v15, 0.0 }
 0x2b4   :  { %v6811_v25 = vsel %vm6799_vm4, %v6741_v62, 0.0  ;;  %v6679_v57 = vadd.f32 %v9305_v10, %v13489_v5  ;;  %v9210_v14 = vpop.f32.mrb[10].mxu0 }
 0x2b5   :  { %v6812_v26 = vadd.f32 %v6811_v25, %v6810_v2  ;;  %v9306_v52 = vadd.f32 %v9210_v14, %v13434_v27  ;;  %v6331_v30 = vpop.f32.mrb[11].mxu0  ;;  %v6744_v45 = vmax.f32 %v6680_v12, 0.0 }
 0x2b6   :  { %v6743_v60 = vmax.f32 %v6679_v57, 0.0  ;;  %v9307_v24 = vadd.f32 %v6331_v30, %v13436_v21 }
 0x2b7   :  { %v6814_v9 = vadd.f32 %v6813_v6, %v6812_v26  ;;  %v6682_v1 = vadd.f32 %v9306_v52, %v13489_v5  ;;  %v6817_v27 = vsel %vm6799_vm4, %v6744_v45, 0.0 }
 0x2b8   :  { %v6815_v35 = vsel %vm6799_vm4, %v6743_v60, 0.0  ;;  %v6681_v8 = vadd.f32 %v9307_v24, %v13489_v5  ;;  %v9213_v43 = vpop.f32.mrb[12].mxu0 }
 0x2b9   :  { %v6816_v50 = vadd.f32 %v6815_v35, %v6814_v9  ;;  %v9308_v47 = vadd.f32 %v9213_v43, %v13438_v28  ;;  %v6341_v58 = vpop.f32.mrb[13].mxu0  ;;  %v6746_v55 = vmax.f32 %v6682_v1, 0.0 }
 0x2ba   :  { %v6745_v11 = vmax.f32 %v6681_v8, 0.0  ;;  %v9309_v19 = vadd.f32 %v6341_v58, %v13440_v23 }
 0x2bb   :  { %v6818_v34 = vadd.f32 %v6817_v27, %v6816_v50  ;;  %v6684_v21 = vadd.f32 %v9308_v47, %v13489_v5  ;;  %v6821_v28 = vsel %vm6799_vm4, %v6746_v55, 0.0 }
 0x2bc   :  { %v6819_v0 = vsel %vm6799_vm4, %v6745_v11, 0.0  ;;  %v6683_v7 = vadd.f32 %v9309_v19, %v13489_v5  ;;  %v9216_v38 = vpop.f32.mrb[14].mxu0 }
 0x2bd   :  { %v6820_v13 = vadd.f32 %v6819_v0, %v6818_v34  ;;  %v9310_v51 = vadd.f32 %v9216_v38, %v13442_v48  ;;  %v6351_v54 = vpop.f32.mrb[15].mxu0  ;;  %v6748_v63 = vmax.f32 %v6684_v21, 0.0 }
 0x2be   :  { %v6747_v40 = vmax.f32 %v6683_v7, 0.0  ;;  %v9311_v17 = vadd.f32 %v6351_v54, %v13444_v18 }
 0x2bf   :  { %v6822_v39 = vadd.f32 %v6821_v28, %v6820_v13  ;;  %v6686_v23 = vadd.f32 %v9310_v51, %v13489_v5  ;;  %v6825_v48 = vsel %vm6799_vm4, %v6748_v63, 0.0 }
 0x2c0   :  { %v6823_v37 = vsel %vm6799_vm4, %v6747_v40, 0.0  ;;  %v6685_v36 = vadd.f32 %v9311_v17, %v13489_v5  ;;  %v9219_v15 = vpop.f32.mrb[16].mxu0 }
 0x2c1   :  { %v6824_v62 = vadd.f32 %v6823_v37, %v6822_v39  ;;  %v9312_v10 = vadd.f32 %v9219_v15, %v13446_v59  ;;  %v6361_v2 = vpop.f32.mrb[17].mxu0  ;;  %v6750_v12 = vmax.f32 %v6686_v23, 0.0 }
 0x2c2   :  { %v6749_v25 = vmax.f32 %v6685_v36, 0.0  ;;  %v9313_v57 = vadd.f32 %v6361_v2, %v13448_v53 }
 0x2c3   :  { %v6826_v14 = vadd.f32 %v6825_v48, %v6824_v62  ;;  %v6688_v18 = vadd.f32 %v9312_v10, %v13489_v5  ;;  %v6829_v59 = vsel %vm6799_vm4, %v6750_v12, 0.0 }
 0x2c4   :  { %v6827_v26 = vsel %vm6799_vm4, %v6749_v25, 0.0  ;;  %v6687_v52 = vadd.f32 %v9313_v57, %v13489_v5  ;;  %v9222_v30 = vpop.f32.mrb[18].mxu0 }
 0x2c5   :  { %v6828_v6 = vadd.f32 %v6827_v26, %v6826_v14  ;;  %v9314_v45 = vadd.f32 %v9222_v30, %v13450_v61  ;;  %v6371_v60 = vpop.f32.mrb[19].mxu0  ;;  %v6752_v24 = vmax.f32 %v6688_v18, 0.0 }
 0x2c6   :  { %v6751_v9 = vmax.f32 %v6687_v52, 0.0  ;;  %v9315_v1 = vadd.f32 %v6371_v60, %v13452_v32 }
 0x2c7   :  { %v6830_v35 = vadd.f32 %v6829_v59, %v6828_v6  ;;  %v6690_v53 = vadd.f32 %v9314_v45, %v13489_v5  ;;  %v6833_v61 = vsel %vm6799_vm4, %v6752_v24, 0.0 }
 0x2c8   :  { %v6831_v8 = vsel %vm6799_vm4, %v6751_v9, 0.0  ;;  %v6689_v43 = vadd.f32 %v9315_v1, %v13489_v5  ;;  %v9225_v50 = vpop.f32.mrb[20].mxu0 }
 0x2c9   :  { %v6832_v47 = vadd.f32 %v6831_v8, %v6830_v35  ;;  %v9316_v58 = vadd.f32 %v9225_v50, %v13455_v3  ;;  %v6381_v27 = vpop.f32.mrb[21].mxu0  ;;  %v6754_v55 = vmax.f32 %v6690_v53, 0.0 }
 0x2ca   :  { %v6753_v11 = vmax.f32 %v6689_v43, 0.0  ;;  %v9317_v19 = vadd.f32 %v6381_v27, %v13460_v41 }
 0x2cb   :  { %v6834_v34 = vadd.f32 %v6833_v61, %v6832_v47  ;;  %v6692_v32 = vadd.f32 %v9316_v58, %v13489_v5  ;;  %v6837_v3 = vsel %vm6799_vm4, %v6754_v55, 0.0 }
 0x2cc   :  { %v6835_v21 = vsel %vm6799_vm4, %v6753_v11, 0.0  ;;  %v6691_v0 = vadd.f32 %v9317_v19, %v13489_v5  ;;  %v9228_v7 = vpop.f32.mrb[22].mxu0 }
 0x2cd   :  { %v6836_v38 = vadd.f32 %v6835_v21, %v6834_v34  ;;  %v9318_v13 = vadd.f32 %v9228_v7, %v13462_v20  ;;  %v6391_v51 = vpop.f32.mrb[23].mxu0  ;;  %v6756_v54 = vmax.f32 %v6692_v32, 0.0 }
 0x2ce   :  { %v6755_v28 = vmax.f32 %v6691_v0, 0.0  ;;  %v9319_v63 = vadd.f32 %v6391_v51, %v13464_v22 }
 0x2cf   :  { %v6838_v40 = vadd.f32 %v6837_v3, %v6836_v38  ;;  %v6694_v41 = vadd.f32 %v9318_v13, %v13489_v5  ;;  %v6841_v20 = vsel %vm6799_vm4, %v6756_v54, 0.0 }
 0x2d0   :  { %v6839_v17 = vsel %vm6799_vm4, %v6755_v28, 0.0  ;;  %v6693_v39 = vadd.f32 %v9319_v63, %v13489_v5  ;;  %v9231_v23 = vpop.f32.mrb[24].mxu0 }
 0x2d1   :  { %v6840_v37 = vadd.f32 %v6839_v17, %v6838_v40  ;;  %v9320_v36 = vadd.f32 %v9231_v23, %v13466_v31  ;;  %v6401_v15 = vpop.f32.mrb[25].mxu0  ;;  %v6758_v62 = vmax.f32 %v6694_v41, 0.0 }
 0x2d2   :  { %v6757_v10 = vmax.f32 %v6693_v39, 0.0  ;;  %v9321_v2 = vadd.f32 %v6401_v15, %v13468_v33 }
 0x2d3   :  { %v6842_v48 = vadd.f32 %v6841_v20, %v6840_v37  ;;  %v6696_v22 = vadd.f32 %v9320_v36, %v13489_v5  ;;  %v6845_v31 = vsel %vm6799_vm4, %v6758_v62, 0.0 }
 0x2d4   :  { %v6843_v12 = vsel %vm6799_vm4, %v6757_v10, 0.0  ;;  %v6695_v25 = vadd.f32 %v9321_v2, %v13489_v5  ;;  %v9234_v57 = vpop.f32.mrb[26].mxu0 }
 0x2d5   :  { %v6844_v14 = vadd.f32 %v6843_v12, %v6842_v48  ;;  %v9322_v18 = vadd.f32 %v9234_v57, %v13470_v46  ;;  %v6411_v26 = vpop.f32.mrb[27].mxu0  ;;  %v6760_v52 = vmax.f32 %v6696_v22, 0.0 }
 0x2d6   :  { %v6759_v30 = vmax.f32 %v6695_v25, 0.0  ;;  %v9323_v6 = vadd.f32 %v6411_v26, %v13472_v44 }
 0x2d7   :  { %v6846_v45 = vadd.f32 %v6845_v31, %v6844_v14  ;;  %v6698_v33 = vadd.f32 %v9322_v18, %v13489_v5  ;;  %v6849_v46 = vsel %vm6799_vm4, %v6760_v52, 0.0 }
 0x2d8   :  { %v6847_v60 = vsel %vm6799_vm4, %v6759_v30, 0.0  ;;  %v6697_v59 = vadd.f32 %v9323_v6, %v13489_v5  ;;  %v9237_v24 = vpop.f32.mrb[28].mxu0 }
 0x2d9   :  { %v6848_v9 = vadd.f32 %v6847_v60, %v6846_v45  ;;  %v9324_v1 = vadd.f32 %v9237_v24, %v13474_v56  ;;  %v6421_v35 = vpop.f32.mrb[29].mxu0  ;;  %v6762_v53 = vmax.f32 %v6698_v33, 0.0 }
 0x2da   :  { %v6761_v8 = vmax.f32 %v6697_v59, 0.0  ;;  %v9325_v43 = vadd.f32 %v6421_v35, %v13476_v4 }
 0x2db   :  { %v6850_v50 = vadd.f32 %v6849_v46, %v6848_v9  ;;  %v6700_v44 = vadd.f32 %v9324_v1, %v13489_v5  ;;  %v8854_v47 = vpop.f32.mrb[34].mxu1  ;;  %v6853_v34 = vsel %vm6799_vm4, %v6762_v53, 0.0 }
 0x2dc   :  { %v6851_v58 = vsel %vm6799_vm4, %v6761_v8, 0.0  ;;  %v6699_v27 = vadd.f32 %v9325_v43, %v13489_v5  ;;  %v9240_v61 = vpop.f32.mrb[30].mxu0  ;;  %v3458_v55 = vpop.f32.mrb[35].mxu1 }
 0x2dd   :  { %v6852_v11 = vadd.f32 %v6851_v58, %v6850_v50  ;;  %v9326_v56 = vadd.f32 %v9240_v61, %v13478_v16  ;;  %v6431_v19 = vpop.f32.mrb[31].mxu0  ;;  %v6764_v32 = vmax.f32 %v6700_v44, 0.0 }
 0x2de   :  { %v6763_v21 = vmax.f32 %v6699_v27, 0.0  ;;  %v9327_v4 = vadd.f32 %v6431_v19, %v13480_v42 }
 0x2df   :  { %v6854_v0 = vadd.f32 %v6853_v34, %v6852_v11  ;;  %v6702_v7 = vadd.f32 %v9326_v56, %v13489_v5  ;;  %v8857_v38 = vpop.f32.mrb[36].mxu1  ;;  %v6857_v40 = vsel %vm6799_vm4, %v6764_v32, 0.0 }
 0x2e0   :  { %v6855_v13 = vsel %vm6799_vm4, %v6763_v21, 0.0  ;;  %v6701_v51 = vadd.f32 %v9327_v4, %v13489_v5  ;;  %v9243_v3 = vpop.f32.mrb[32].mxu0  ;;  %v3468_v54 = vpop.f32.mrb[37].mxu1 }
 0x2e1   :  { %v6856_v28 = vadd.f32 %v6855_v13, %v6854_v0  ;;  %v9328_v16 = vadd.f32 %v9243_v3, %v13482_v49  ;;  %v6441_v63 = vpop.f32.mrb[33].mxu0  ;;  %v6766_v41 = vmax.f32 %v6702_v7, 0.0 }
 0x2e2   :  { %v6765_v17 = vmax.f32 %v6701_v51, 0.0  ;;  %v9329_v42 = vadd.f32 %v6441_v63, %v13484_v29 }
 0x2e3   :  { %v6858_v39 = vadd.f32 %v6857_v40, %v6856_v28  ;;  %v6704_v23 = vadd.f32 %v9328_v16, %v13489_v5  ;;  %v8860_v37 = vpop.f32.mrb[38].mxu1  ;;  %v6861_v22 = vsel %vm6799_vm4, %v6766_v41, 0.0 }
 0x2e4   :  { %v6859_v36 = vsel %vm6799_vm4, %v6765_v17, 0.0  ;;  %v6703_v15 = vadd.f32 %v9329_v42, %v13489_v5  ;;  %v9246_v20 = vpop.f32.mrb[34].mxu0  ;;  %v3478_v62 = vpop.f32.mrb[39].mxu1 }
 0x2e5   :  { %v6860_v10 = vadd.f32 %v6859_v36, %v6858_v39  ;;  %v6768_v2 = vmax.f32 %v6704_v23, 0.0  ;;  %v9330_v49 = vadd.f32 %v9246_v20, %v8854_v47  ;;  %v6451_v48 = vpop.f32.mrb[35].mxu0 }
 0x2e6   :  { %v6767_v12 = vmax.f32 %v6703_v15, 0.0  ;;  %v9331_v25 = vadd.f32 %v6451_v48, %v3458_v55 }
 0x2e7   :  { %v13585_v57 = vadd.f32 %v6861_v22, %v6860_v10  ;;  %v6870_v29 = vsel %vm6799_vm4, %v6768_v2, 0.0  ;;  %v6706_v14 = vadd.f32 %v9330_v49, %v13489_v5  ;;  %v8863_v18 = vpop.f32.mrb[40].mxu1 }
 0x2e8   :  { %v6869_v26 = vsel %vm6799_vm4, %v6767_v12, 0.0  ;;  %v6705_v31 = vadd.f32 %v9331_v25, %v13489_v5  ;;  %v9249_v52 = vpop.f32.mrb[36].mxu0  ;;  %v3488_v30 = vpop.f32.mrb[41].mxu1 }
 0x2e9   :  { %v6871_v6 = vadd.f32 %v6870_v29, %v6869_v26  ;;  %v9332_v45 = vadd.f32 %v9249_v52, %v8857_v38  ;;  %v6461_v33 = vpop.f32.mrb[37].mxu0  ;;  %v6770_v60 = vmax.f32 %v6706_v14, 0.0 }
 0x2ea   :  { %v6769_v59 = vmax.f32 %v6705_v31, 0.0  ;;  %v9333_v24 = vadd.f32 %v6461_v33, %v3468_v54 }
 0x2eb   :  { %v6708_v9 = vadd.f32 %v9332_v45, %v13489_v5  ;;  %v8866_v1 = vpop.f32.mrb[42].mxu1  ;;  %v6874_v47 = vsel %vm6799_vm4, %v6770_v60, 0.0 }
 0x2ec   :  { %v6872_v35 = vsel %vm6799_vm4, %v6769_v59, 0.0  ;;  %v6707_v46 = vadd.f32 %v9333_v24, %v13489_v5  ;;  %v9252_v53 = vpop.f32.mrb[38].mxu0  ;;  %v3498_v8 = vpop.f32.mrb[43].mxu1 }
 0x2ed   :  { %v6873_v43 = vadd.f32 %v6872_v35, %v6871_v6  ;;  %v9334_v50 = vadd.f32 %v9252_v53, %v8860_v37  ;;  %v6471_v44 = vpop.f32.mrb[39].mxu0  ;;  %v6772_v58 = vmax.f32 %v6708_v9, 0.0 }
 0x2ee   :  { %v6771_v27 = vmax.f32 %v6707_v46, 0.0  ;;  %v9335_v61 = vadd.f32 %v6471_v44, %v3478_v62 }
 0x2ef   :  { %v6875_v55 = vadd.f32 %v6874_v47, %v6873_v43  ;;  %v6710_v11 = vadd.f32 %v9334_v50, %v13489_v5  ;;  %v8869_v56 = vpop.f32.mrb[44].mxu1  ;;  %v6878_v38 = vsel %vm6799_vm4, %v6772_v58, 0.0 }
 0x2f0   :  { %v6876_v19 = vsel %vm6799_vm4, %v6771_v27, 0.0  ;;  %v6709_v34 = vadd.f32 %v9335_v61, %v13489_v5  ;;  %v9255_v32 = vpop.f32.mrb[40].mxu0  ;;  %v3508_v21 = vpop.f32.mrb[45].mxu1 }
 0x2f1   :  { %v6877_v4 = vadd.f32 %v6876_v19, %v6875_v55  ;;  %v9336_v0 = vadd.f32 %v9255_v32, %v8863_v18  ;;  %v6481_v7 = vpop.f32.mrb[41].mxu0  ;;  %v6774_v13 = vmax.f32 %v6710_v11, 0.0 }
 0x2f2   :  { %v6773_v51 = vmax.f32 %v6709_v34, 0.0  ;;  %v9337_v3 = vadd.f32 %v6481_v7, %v3488_v30 }
 0x2f3   :  { %v6879_v54 = vadd.f32 %v6878_v38, %v6877_v4  ;;  %v6712_v28 = vadd.f32 %v9336_v0, %v13489_v5  ;;  %v8872_v16 = vpop.f32.mrb[46].mxu1  ;;  %v6882_v37 = vsel %vm6799_vm4, %v6774_v13, 0.0 }
 0x2f4   :  { %v6880_v63 = vsel %vm6799_vm4, %v6773_v51, 0.0  ;;  %v6711_v40 = vadd.f32 %v9337_v3, %v13489_v5  ;;  %v9258_v41 = vpop.f32.mrb[42].mxu0  ;;  %v3518_v17 = vpop.f32.mrb[47].mxu1 }
 0x2f5   :  { %v6881_v42 = vadd.f32 %v6880_v63, %v6879_v54  ;;  %v9338_v39 = vadd.f32 %v9258_v41, %v8866_v1  ;;  %v6491_v23 = vpop.f32.mrb[43].mxu0  ;;  %v6776_v36 = vmax.f32 %v6712_v28, 0.0 }
 0x2f6   :  { %v6775_v15 = vmax.f32 %v6711_v40, 0.0  ;;  %v9339_v20 = vadd.f32 %v6491_v23, %v3498_v8 }
 0x2f7   :  { %v6883_v62 = vadd.f32 %v6882_v37, %v6881_v42  ;;  %v6714_v10 = vadd.f32 %v9338_v39, %v13489_v5  ;;  %v8875_v2 = vpop.f32.mrb[48].mxu1  ;;  %v6886_v18 = vsel %vm6799_vm4, %v6776_v36, 0.0 }
 0x2f8   :  { %v6884_v49 = vsel %vm6799_vm4, %v6775_v15, 0.0  ;;  %v6713_v48 = vadd.f32 %v9339_v20, %v13489_v5  ;;  %v9261_v22 = vpop.f32.mrb[44].mxu0  ;;  %v3528_v12 = vpop.f32.mrb[49].mxu1 }
 0x2f9   :  { %v6885_v25 = vadd.f32 %v6884_v49, %v6883_v62  ;;  %v9340_v29 = vadd.f32 %v9261_v22, %v8869_v56  ;;  %v6501_v14 = vpop.f32.mrb[45].mxu0  ;;  %v6778_v26 = vmax.f32 %v6714_v10, 0.0 }
 0x2fa   :  { %v6777_v31 = vmax.f32 %v6713_v48, 0.0  ;;  %v9341_v52 = vadd.f32 %v6501_v14, %v3508_v21 }
 0x2fb   :  { %v6887_v30 = vadd.f32 %v6886_v18, %v6885_v25  ;;  %v6716_v6 = vadd.f32 %v9340_v29, %v13489_v5  ;;  %v8878_v45 = vpop.f32.mrb[50].mxu1  ;;  %v6890_v46 = vsel %vm6799_vm4, %v6778_v26, 0.0 }
 0x2fc   :  { %v6888_v33 = vsel %vm6799_vm4, %v6777_v31, 0.0  ;;  %v6715_v60 = vadd.f32 %v9341_v52, %v13489_v5  ;;  %v9264_v59 = vpop.f32.mrb[46].mxu0  ;;  %v3538_v24 = vpop.f32.mrb[51].mxu1 }
 0x2fd   :  { %v6889_v9 = vadd.f32 %v6888_v33, %v6887_v30  ;;  %v9342_v1 = vadd.f32 %v9264_v59, %v8872_v16  ;;  %v6511_v35 = vpop.f32.mrb[47].mxu0  ;;  %v6780_v53 = vmax.f32 %v6716_v6, 0.0 }
 0x2fe   :  { %v6779_v8 = vmax.f32 %v6715_v60, 0.0  ;;  %v9343_v43 = vadd.f32 %v6511_v35, %v3518_v17 }
 0x2ff   :  { %v6891_v50 = vadd.f32 %v6890_v46, %v6889_v9  ;;  %v6718_v44 = vadd.f32 %v9342_v1, %v13489_v5  ;;  %v8881_v47 = vpop.f32.mrb[52].mxu1  ;;  %v6894_v34 = vsel %vm6799_vm4, %v6780_v53, 0.0 }
 0x300   :  { %v6892_v58 = vsel %vm6799_vm4, %v6779_v8, 0.0  ;;  %v6717_v27 = vadd.f32 %v9343_v43, %v13489_v5  ;;  %v9267_v61 = vpop.f32.mrb[48].mxu0  ;;  %v3548_v55 = vpop.f32.mrb[53].mxu1 }
 0x301   :  { %v6893_v11 = vadd.f32 %v6892_v58, %v6891_v50  ;;  %v9344_v56 = vadd.f32 %v9267_v61, %v8875_v2  ;;  %v6521_v19 = vpop.f32.mrb[49].mxu0  ;;  %v6782_v32 = vmax.f32 %v6718_v44, 0.0 }
 0x302   :  { %v6781_v21 = vmax.f32 %v6717_v27, 0.0  ;;  %v9345_v4 = vadd.f32 %v6521_v19, %v3528_v12 }
 0x303   :  { %v6895_v0 = vadd.f32 %v6894_v34, %v6893_v11  ;;  %v6720_v7 = vadd.f32 %v9344_v56, %v13489_v5  ;;  %v8884_v38 = vpop.f32.mrb[54].mxu1  ;;  %v6898_v40 = vsel %vm6799_vm4, %v6782_v32, 0.0 }
 0x304   :  { %v6896_v13 = vsel %vm6799_vm4, %v6781_v21, 0.0  ;;  %v6719_v51 = vadd.f32 %v9345_v4, %v13489_v5  ;;  %v9270_v3 = vpop.f32.mrb[50].mxu0  ;;  %v3558_v54 = vpop.f32.mrb[55].mxu1 }
 0x305   :  { %v6897_v28 = vadd.f32 %v6896_v13, %v6895_v0  ;;  %v9346_v16 = vadd.f32 %v9270_v3, %v8878_v45  ;;  %v6531_v63 = vpop.f32.mrb[51].mxu0  ;;  %v6784_v41 = vmax.f32 %v6720_v7, 0.0 }
 0x306   :  { %v6783_v17 = vmax.f32 %v6719_v51, 0.0  ;;  %v9347_v42 = vadd.f32 %v6531_v63, %v3538_v24 }
 0x307   :  { %v6899_v39 = vadd.f32 %v6898_v40, %v6897_v28  ;;  %v6722_v23 = vadd.f32 %v9346_v16, %v13489_v5  ;;  %v8887_v37 = vpop.f32.mrb[56].mxu1  ;;  %v6902_v48 = vsel %vm6799_vm4, %v6784_v41, 0.0 }
 0x308   :  { %v6900_v36 = vsel %vm6799_vm4, %v6783_v17, 0.0  ;;  %v6721_v15 = vadd.f32 %v9347_v42, %v13489_v5  ;;  %v9273_v20 = vpop.f32.mrb[52].mxu0  ;;  %v3568_v62 = vpop.f32.mrb[57].mxu1 }
 0x309   :  { %v6901_v10 = vadd.f32 %v6900_v36, %v6899_v39  ;;  %v9348_v2 = vadd.f32 %v9273_v20, %v8881_v47  ;;  %v6541_v49 = vpop.f32.mrb[53].mxu0  ;;  %v6786_v22 = vmax.f32 %v6722_v23, 0.0 }
 0x30a   :  { %v6785_v12 = vmax.f32 %v6721_v15, 0.0  ;;  %v9349_v25 = vadd.f32 %v6541_v49, %v3548_v55 }
 0x30b   :  { %v6903_v29 = vadd.f32 %v6902_v48, %v6901_v10  ;;  %v6724_v14 = vadd.f32 %v9348_v2, %v13489_v5  ;;  %v8890_v18 = vpop.f32.mrb[58].mxu1  ;;  %v6906_v60 = vsel %vm6799_vm4, %v6786_v22, 0.0  ;;  %v6863_v22 = vrot.slane %v13585_v57, 4 }
 0x30c   :  { %v6904_v26 = vsel %vm6799_vm4, %v6785_v12, 0.0  ;;  %v6723_v31 = vadd.f32 %v9349_v25, %v13489_v5  ;;  %v9276_v52 = vpop.f32.mrb[54].mxu0  ;;  %v3578_v30 = vpop.f32.mrb[59].mxu1 }
 0x30d   :  { %v6905_v6 = vadd.f32 %v6904_v26, %v6903_v29  ;;  %v9350_v45 = vadd.f32 %v9276_v52, %v8884_v38  ;;  %v6551_v33 = vpop.f32.mrb[55].mxu0  ;;  %v6788_v59 = vmax.f32 %v6724_v14, 0.0 }
 0x30e   :  { %v6787_v24 = vmax.f32 %v6723_v31, 0.0  ;;  %v9351_v9 = vadd.f32 %v6551_v33, %v3558_v54  ;;  %v6864_v33 = vadd.f32 %v6863_v22, %v13585_v57 }
 0x30f   :  { %v6907_v1 = vadd.f32 %v6906_v60, %v6905_v6  ;;  %v6726_v35 = vadd.f32 %v9350_v45, %v13489_v5  ;;  %v8893_v46 = vpop.f32.mrb[60].mxu1  ;;  %v6910_v27 = vsel %vm6799_vm4, %v6788_v59, 0.0 }
 0x310   :  { %v6908_v53 = vsel %vm6799_vm4, %v6787_v24, 0.0  ;;  %v6725_v8 = vadd.f32 %v9351_v9, %v13489_v5  ;;  %v9279_v43 = vpop.f32.mrb[56].mxu0  ;;  %v3588_v50 = vpop.f32.mrb[61].mxu1 }
 0x311   :  { %v6909_v44 = vadd.f32 %v6908_v53, %v6907_v1  ;;  %v9352_v47 = vadd.f32 %v9279_v43, %v8887_v37  ;;  %v6561_v58 = vpop.f32.mrb[57].mxu0  ;;  %v6790_v61 = vmax.f32 %v6726_v35, 0.0 }
 0x312   :  { %v6789_v55 = vmax.f32 %v6725_v8, 0.0  ;;  %v9353_v11 = vadd.f32 %v6561_v58, %v3568_v62 }
 0x313   :  { %v6911_v56 = vadd.f32 %v6910_v27, %v6909_v44  ;;  %v6728_v19 = vadd.f32 %v9352_v47, %v13489_v5  ;;  %v8896_v34 = vpop.f32.mrb[62].mxu1  ;;  %v6914_v51 = vsel %vm6799_vm4, %v6790_v61, 0.0 }
 0x314   :  { %v6912_v32 = vsel %vm6799_vm4, %v6789_v55, 0.0  ;;  %v6727_v21 = vadd.f32 %v9353_v11, %v13489_v5  ;;  %v9282_v4 = vpop.f32.mrb[58].mxu0  ;;  %v3598_v0 = vpop.f32.mrb[63].mxu1 }
 0x315   :  { %v6913_v7 = vadd.f32 %v6912_v32, %v6911_v56  ;;  %v9354_v38 = vadd.f32 %v9282_v4, %v8890_v18  ;;  %v6571_v13 = vpop.f32.mrb[59].mxu0  ;;  %v6792_v3 = vmax.f32 %v6728_v19, 0.0 }
 0x316   :  { %v6791_v54 = vmax.f32 %v6727_v21, 0.0  ;;  %v9355_v28 = vadd.f32 %v6571_v13, %v3578_v30 }
 0x317   :  { %v6915_v16 = vadd.f32 %v6914_v51, %v6913_v7  ;;  %v6730_v63 = vadd.f32 %v9354_v38, %v13489_v5  ;;  %v6918_v37 = vsel %vm6799_vm4, %v6792_v3, 0.0 }
 0x318   :  { %v6916_v40 = vsel %vm6799_vm4, %v6791_v54, 0.0  ;;  %v6729_v41 = vadd.f32 %v9355_v28, %v13489_v5  ;;  %v9285_v17 = vpop.f32.mrb[60].mxu0 }
 0x319   :  { %v6917_v42 = vadd.f32 %v6916_v40, %v6915_v16  ;;  %v9356_v39 = vadd.f32 %v9285_v17, %v8893_v46  ;;  %v6581_v23 = vpop.f32.mrb[61].mxu0  ;;  %v6794_v36 = vmax.f32 %v6730_v63, 0.0  ;;  %v6865_v46 = vrot.slane %v6864_v33, 2 }
 0x31a   :  { %v6793_v15 = vmax.f32 %v6729_v41, 0.0  ;;  %v9357_v20 = vadd.f32 %v6581_v23, %v3588_v50 }
 0x31b   :  { %v6919_v62 = vadd.f32 %v6918_v37, %v6917_v42  ;;  %v6732_v10 = vadd.f32 %v9356_v39, %v13489_v5  ;;  %v6922_v14 = vsel %vm6799_vm4, %v6794_v36, 0.0  ;;  %v6866_v50 = vadd.f32 %v6865_v46, %v6864_v33 }
 0x31c   :  { %v6920_v2 = vsel %vm6799_vm4, %v6793_v15, 0.0  ;;  %v6731_v49 = vadd.f32 %v9357_v20, %v13489_v5  ;;  %v9288_v48 = vpop.f32.mrb[62].mxu0 }
 0x31d   :  { %v6921_v12 = vadd.f32 %v6920_v2, %v6919_v62  ;;  %v9358_v25 = vadd.f32 %v9288_v48, %v8896_v34  ;;  %v6591_v29 = vpop.f32.mrb[63].mxu0  ;;  %v6796_v18 = vmax.f32 %v6732_v10, 0.0  ;;  %v6867_v58 = vrot.slane %v6866_v50, 1  ;;  %v7818_v34 = vld [vmem:[%s13671_s4] ss:$0 sm:$0xff] }
 0x31e   :  { %v6795_v26 = vmax.f32 %v6731_v49, 0.0  ;;  %v9359_v31 = vadd.f32 %v6591_v29, %v3598_v0 }
 0x31f   :  { %v6923_v52 = vadd.f32 %v6922_v14, %v6921_v12  ;;  %v6734_v30 = vadd.f32 %v9358_v25, %v13489_v5  ;;  %v6926_v59 = vsel %vm6799_vm4, %v6796_v18, 0.0  ;;  %v6868_v61 = vadd.f32 %v6867_v58, %v6866_v50 }
 0x320   :  { %v6924_v6 = vsel %vm6799_vm4, %v6795_v26, 0.0  ;;  %v6733_v45 = vadd.f32 %v9359_v31, %v13489_v5 }
 0x321   :  { %v6925_v60 = vadd.f32 %v6924_v6, %v6923_v52  ;;  %v6798_v24 = vmax.f32 %v6734_v30, 0.0  ;;  %v6938_v11 = vmul.f32 0.00390625, %v6868_v61 }
 0x322   :  { %v6797_v9 = vmax.f32 %v6733_v45, 0.0 }
 0x323   :  { %v6927_v1 = vadd.f32 %v6926_v59, %v6925_v60  ;;  %v6930_v8 = vsel %vm6799_vm4, %v6798_v24, 0.0 }
 0x324   :  { %v6928_v35 = vsel %vm6799_vm4, %v6797_v9, 0.0 }
 0x325   :  { %v6929_v53 = vadd.f32 %v6928_v35, %v6927_v1 }
 0x327   :  { %v6931_v43 = vadd.f32 %v6930_v8, %v6929_v53 }
 0x329   :  { %v6932_v44 = vrot.slane %v6931_v43, 4 }
 0x32b   :  { %v6933_v47 = vadd.f32 %v6932_v44, %v6931_v43 }
 0x32d   :  { %v6934_v5 = vrot.slane %v6933_v47, 2 }
 0x32f   :  { %v6935_v27 = vadd.f32 %v6934_v5, %v6933_v47 }
 0x331   :  { %v6936_v57 = vrot.slane %v6935_v27, 1 }
 0x333   :  { %v6937_v55 = vadd.f32 %v6936_v57, %v6935_v27 }
 0x335   :  { %v6939_v56 = vmul.f32 0.00390625, %v6937_v55 }
 0x337   :  { %v6951_v19 = vsel %vm6950_vm6, %v6939_v56, %v6938_v11 }
 0x338   :  { %9292 = vmatmul.mubr.msk.f32.vlgmr.msra.gmra.mrb[64].mxu1 %vm6799_vm4, %v6951_v19 }
 0x40b   :  { %v7020_v32 = vpop.f32.mrb[64].mxu1 }
 0x40c   :  { %v7021_v21 = vadd.f32 %v7818_v34, %v7020_v32  ;;  %v9293_v4 = vpop.f32.mrb[65].mxu1 }
 0x40e   :  { %7025 = vst.msk [vmem:[#allocation2] sm:$0x3] %vm7024_vm7, %v7021_v21 }
 0x40f   :  { %10029 = shalt.err (!%p10026_p4)
}
 0x410   :  { %s10030_s16 = scalar_lea.hbm %s13672_s5, 32 }
 0x411   :  { %p10031_p5 = scmp.ne.s32.totalorder %s13672_s5, %s10030_s16  ;;  %p10034_p6 = scmp.lt.u32.totalorder %s10030_s16, %s13672_s5 }
 0x413   :  { %p10036_p7 = pnand %p10034_p6, %p10031_p5 }
 0x415   :  { %10039 = shalt.err (!%p10036_p7)
}
 0x416   :  { %7035 = dma.vmem_to_hbm [thread:$0]  %s7033_s12, 32, %s13672_s5, [#allocation3]  }
 0x417   :  { %10040 = dma.done.wait [#allocation3], 32  }
 0x418   :  { %10041 = vsyncadd [#allocation3], 4294967264 }
 0x419   :  { %7039 = vsyncpa [#allocation3], 1 }

</bundles_post_ra>
